<compile_context>
chip_gen: v6e
topology: v6e:2x2x1
jax: 0.10.0
libtpu: 0.0.40
codegen_flags: <defaults>
</compile_context>

<pallas_src>
import numpy as np
import jax
import jax.numpy as jnp
from jax import lax
from jax.experimental import pallas as pl
from jax.experimental.pallas import tpu as pltpu

EPS = 1e-5  # PyTorch InstanceNorm2d default eps

# 3x3 conv taps as (dh, dw), row-major over (kh, kw); matches weight reshape.
_TAPS = tuple((kh - 1, kw - 1) for kh in range(3) for kw in range(3))


def _make_gblock_kernel(H2, W2):
    """Build the fused kernel for the upsampled spatial size (H2, W2)."""
    P = H2 * W2  # flattened full-res spatial size (lane axis)

    def conv_in_relu(h, w_mat, bias, m_ref, col_ref):
        """3x3 same-padding conv (one im2col matmul) + InstanceNorm + ReLU.

        h:       (C, P)   f32, channels on sublanes / flat spatial on lanes
        w_mat:   (Co, 9C) f32, columns ordered (kh, kw, ci)
        bias:    (Co, 1)  f32
        m_ref:   (9, P)   f32 0/1 halo masks (row t <-> tap t; center unused)
        col_ref: (9C, P)  f32 VMEM scratch = im2col buffer
        """
        C = h.shape[0]
        for t, (dh, dw) in enumerate(_TAPS):
            off = dh * W2 + dw
            if off == 0:
                v = h                                      # center tap, no halo
            else:
                # roll so lane p holds h[p + off]; mask zeroes out-of-image
                # (wrap) positions -> replaces jnp.pad.
                v = pltpu.roll(h, shift=(-off) % P, axis=1) * m_ref[pl.ds(t, 1), :]
            col_ref[pl.ds(t * C, C), :] = v
        acc = jnp.dot(w_mat, col_ref[...], preferred_element_type=jnp.float32)
        acc = acc + bias
        # InstanceNorm2d (no affine, biased variance) per channel over the P
        # spatial positions of this sample; lane-axis reduce -> XLU.
        mean = jnp.mean(acc, axis=1, keepdims=True)
        cent = acc - mean
        var = jnp.mean(cent * cent, axis=1, keepdims=True)
        return jnp.maximum(cent * lax.rsqrt(var + EPS), 0.0)

    def kernel(x_ref, u_ref, m_ref, w1_ref, b1_ref, w2_ref, b2_ref,
               o_ref, col_ref):
        # Nearest x2 upsample fused in-kernel as a 0/1 selection matmul (MXU);
        # the upsampled activation lives only in VMEM/vregs.
        up = jnp.dot(x_ref[...], u_ref[...].astype(jnp.float32),
                     preferred_element_type=jnp.float32)          # (Cin, P)

        h1 = conv_in_relu(up, w1_ref[...], b1_ref[...], m_ref, col_ref)
        h2 = conv_in_relu(h1, w2_ref[...], b2_ref[...], m_ref, col_ref)
        o_ref[...] = h2

    return kernel


def gblock_forward(x_nchw, params):
    """GBlock forward. Input/output NCHW (to match PyTorch); no transposes."""
    N, Cin, H, W = x_nchw.shape
    Cout = params["w2"].shape[-1]
    H2, W2 = 2 * H, 2 * W
    HW, P = H * W, H2 * W2

    # Free contiguous reshape: NCHW -> (N, Cin, H*W) lane-dense blocks.
    x_flat = x_nchw.reshape(N, Cin, HW)

    # Static helpers (XLA constants, DMA'd into VMEM once across the grid).
    q = np.arange(P)
    row, col = q // W2, q % W2
    src = (row // 2) * W + (col // 2)               # nearest-x2 source index
    u_sel = jnp.asarray(
        (np.arange(HW)[:, None] == src[None, :]).astype(np.float32),
        dtype=jnp.bfloat16)                          # exact 0/1 in bf16

    # Halo masks per tap: 1.0 where (row+dh, col+dw) stays inside the image.
    masks_np = np.ones((9, P), np.float32)
    for t, (dh, dw) in enumerate(_TAPS):
        valid = ((row + dh >= 0) & (row + dh < H2) &
                 (col + dw >= 0) & (col + dw < W2))
        masks_np[t] = valid.astype(np.float32)
    masks = jnp.asarray(masks_np)

    def wmat(w_hwio):  # (3,3,Ci,Co) -> (Co, 9*Ci), column order (kh, kw, ci)
        co = w_hwio.shape[-1]
        return jnp.transpose(w_hwio, (3, 0, 1, 2)).reshape(co, -1)

    w1 = wmat(params["w1"])
    w2 = wmat(params["w2"])
    b1 = params["b1"].reshape(Cin, 1)
    b2 = params["b2"].reshape(Cout, 1)

    kernel = _make_gblock_kernel(H2, W2)

    out_flat = pl.pallas_call(
        kernel,
        out_shape=jax.ShapeDtypeStruct((N, Cout, P), jnp.float32),
        grid=(N,),
        in_specs=[
            pl.BlockSpec((None, Cin, HW), lambda b: (b, 0, 0)),   # x (per-sample)
            pl.BlockSpec((HW, P), lambda b: (0, 0)),              # upsample matrix
            pl.BlockSpec((9, P), lambda b: (0, 0)),               # halo masks
            pl.BlockSpec((Cin, 9 * Cin), lambda b: (0, 0)),       # w1
            pl.BlockSpec((Cin, 1), lambda b: (0, 0)),             # b1
            pl.BlockSpec((Cout, 9 * Cin), lambda b: (0, 0)),      # w2
            pl.BlockSpec((Cout, 1), lambda b: (0, 0)),            # b2
        ],
        out_specs=pl.BlockSpec((None, Cout, P), lambda b: (b, 0, 0)),
        scratch_shapes=[pltpu.VMEM((9 * Cin, P), jnp.float32)],   # im2col buffer
        compiler_params=pltpu.CompilerParams(
            dimension_semantics=("parallel",),
            vmem_limit_bytes=32 * 1024 * 1024),
    )(x_flat, u_sel, masks, w1, b1, w2, b2)

    # Free contiguous reshape back to NCHW.
    return out_flat.reshape(N, Cout, H2, W2)


def gblock_reference(x_nchw, params):
    """Pure-JAX reference (NCHW, lax conv) for validation."""
    def block(h, w_hwio, b):
        w_oihw = jnp.transpose(w_hwio, (3, 2, 0, 1))
        h = lax.conv_general_dilated(
            h, w_oihw, window_strides=(1, 1), padding="SAME",
            dimension_numbers=("NCHW", "OIHW", "NCHW"))
        h = h + b[None, :, None, None]
        mean = jnp.mean(h, axis=(2, 3), keepdims=True)
        var = jnp.mean((h - mean) ** 2, axis=(2, 3), keepdims=True)
        h = (h - mean) * lax.rsqrt(var + EPS)
        return jnp.maximum(h, 0.0)

    h = jnp.repeat(jnp.repeat(x_nchw, 2, axis=2), 2, axis=3)
    h = block(h, params["w1"], params["b1"])
    h = block(h, params["w2"], params["b2"])
    return h


def init_params(key, in_channels, out_channels, ksize=3):
    k1, k2, k3, k4 = jax.random.split(key, 4)
    scale1 = 1.0 / np.sqrt(in_channels * ksize * ksize)
    scale2 = 1.0 / np.sqrt(in_channels * ksize * ksize)
    return {
        # HWIO weight layout (reshaped to matmul form inside gblock_forward).
        "w1": scale1 * jax.random.normal(
            k1, (ksize, ksize, in_channels, in_channels), jnp.float32),
        "b1": scale1 * jax.random.normal(k2, (in_channels,), jnp.float32),
        "w2": scale2 * jax.random.normal(
            k3, (ksize, ksize, in_channels, out_channels), jnp.float32),
        "b2": scale2 * jax.random.normal(k4, (out_channels,), jnp.float32),
    }


if __name__ == "__main__":
    key = jax.random.PRNGKey(0)
    kx, kp = jax.random.split(key)

    N, Cin, H, W = 2, 4, 16, 16
    Cout = 8
    x = jax.random.normal(kx, (N, Cin, H, W), jnp.float32)  # NCHW like PyTorch
    params = init_params(kp, Cin, Cout, ksize=3)

    fwd = jax.jit(gblock_forward)
    out = jax.block_until_ready(fwd(x, params))

    assert out.shape == (N, Cout, 2 * H, 2 * W), out.shape

    ref = jax.block_until_ready(jax.jit(gblock_reference)(x, params))
    np.testing.assert_allclose(np.asarray(out), np.asarray(ref),
                               rtol=1e-3, atol=1e-3)

    print("KERNEL_OK")
</pallas_src>

<mosaic_0001>
module attributes {stable_mosaic.version = 11 : i64} {
  func.func @kernel(%arg0: i32, %arg1: memref<1x4x256xf32, #tpu.memory_space<vmem>>, %arg2: memref<256x1024xbf16, #tpu.memory_space<vmem>>, %arg3: memref<9x1024xf32, #tpu.memory_space<vmem>>, %arg4: memref<4x36xf32, #tpu.memory_space<vmem>>, %arg5: memref<4x1xf32, #tpu.memory_space<vmem>>, %arg6: memref<8x36xf32, #tpu.memory_space<vmem>>, %arg7: memref<8x1xf32, #tpu.memory_space<vmem>>, %arg8: memref<1x8x1024xf32, #tpu.memory_space<vmem>>, %arg9: memref<36x1024xf32, #tpu.memory_space<vmem>>) attributes {dimension_semantics = [#tpu.dimension_semantics<parallel>], iteration_bounds = array<i64: 2>, scalar_prefetch = 0 : i64, scratch_operands = 1 : i64, tpu.core_type = #tpu.core_type<tc>, window_params = [{transform_indices = @transform_0, window_bounds = array<i64: 1, 4, 256>}, {pipeline_mode = #tpu.pipeline_mode<synchronous>, transform_indices = @transform_1, window_bounds = array<i64: 256, 1024>}, {pipeline_mode = #tpu.pipeline_mode<synchronous>, transform_indices = @transform_2, window_bounds = array<i64: 9, 1024>}, {pipeline_mode = #tpu.pipeline_mode<synchronous>, transform_indices = @transform_3, window_bounds = array<i64: 4, 36>}, {pipeline_mode = #tpu.pipeline_mode<synchronous>, transform_indices = @transform_4, window_bounds = array<i64: 4, 1>}, {pipeline_mode = #tpu.pipeline_mode<synchronous>, transform_indices = @transform_5, window_bounds = array<i64: 8, 36>}, {pipeline_mode = #tpu.pipeline_mode<synchronous>, transform_indices = @transform_6, window_bounds = array<i64: 8, 1>}, {transform_indices = @transform_7, window_bounds = array<i64: 1, 8, 1024>}]} {
    %c0 = arith.constant 0 : index
    %c0_0 = arith.constant 0 : index
    %c0_1 = arith.constant 0 : index
    %0 = vector.load %arg1[%c0, %c0_0, %c0_1] : memref<1x4x256xf32, #tpu.memory_space<vmem>>, vector<1x4x256xf32>
    %1 = vector.shape_cast %0 : vector<1x4x256xf32> to vector<4x256xf32>
    %c0_2 = arith.constant 0 : index
    %c0_3 = arith.constant 0 : index
    %2 = vector.load %arg2[%c0_2, %c0_3] : memref<256x1024xbf16, #tpu.memory_space<vmem>>, vector<256x1024xbf16>
    %3 = arith.extf %2 : vector<256x1024xbf16> to vector<256x1024xf32>
    %cst = arith.constant dense<0.000000e+00> : vector<4x1024xf32>
    %4 = tpu.matmul %1, %3, %cst {dimension_numbers = #tpu.dot_dimension_numbers<[1], [0], [0], [1], [0, 0, 1, 1], [], []>} : vector<4x256xf32>, vector<256x1024xf32>, vector<4x1024xf32> -> vector<4x1024xf32>
    %c0_4 = arith.constant 0 : index
    %c0_5 = arith.constant 0 : index
    %5 = vector.load %arg4[%c0_4, %c0_5] : memref<4x36xf32, #tpu.memory_space<vmem>>, vector<4x36xf32>
    %c0_6 = arith.constant 0 : index
    %c0_7 = arith.constant 0 : index
    %6 = vector.load %arg5[%c0_6, %c0_7] : memref<4x1xf32, #tpu.memory_space<vmem>>, vector<4x1xf32>
    %c33_i32 = arith.constant 33 : i32
    %7 = tpu.dynamic_rotate %4 by %c33_i32 dim 1 : vector<4x1024xf32>, i32 -> vector<4x1024xf32>
    %c0_8 = arith.constant 0 : index
    %c0_9 = arith.constant 0 : index
    %8 = vector.load %arg3[%c0_8, %c0_9] : memref<9x1024xf32, #tpu.memory_space<vmem>>, vector<1x1024xf32>
    %9 = vector.broadcast %8 : vector<1x1024xf32> to vector<4x1024xf32>
    %10 = arith.mulf %7, %9 : vector<4x1024xf32>
    %c0_10 = arith.constant 0 : index
    %c0_11 = arith.constant 0 : index
    %11 = vector.load %arg9[%c0_10, %c0_11] : memref<36x1024xf32, #tpu.memory_space<vmem>>, vector<4x1024xf32>
    tpu.vector_store %arg9[%c0_10, %c0_11], %10 {strides = array<i32>} : memref<36x1024xf32, #tpu.memory_space<vmem>>, vector<4x1024xf32>,
    %c32_i32 = arith.constant 32 : i32
    %12 = tpu.dynamic_rotate %4 by %c32_i32 dim 1 : vector<4x1024xf32>, i32 -> vector<4x1024xf32>
    %c1 = arith.constant 1 : index
    %c0_12 = arith.constant 0 : index
    %13 = vector.load %arg3[%c1, %c0_12] : memref<9x1024xf32, #tpu.memory_space<vmem>>, vector<1x1024xf32>
    %14 = vector.broadcast %13 : vector<1x1024xf32> to vector<4x1024xf32>
    %15 = arith.mulf %12, %14 : vector<4x1024xf32>
    %c4 = arith.constant 4 : index
    %c0_13 = arith.constant 0 : index
    %16 = vector.load %arg9[%c4, %c0_13] : memref<36x1024xf32, #tpu.memory_space<vmem>>, vector<4x1024xf32>
    tpu.vector_store %arg9[%c4, %c0_13], %15 {strides = array<i32>} : memref<36x1024xf32, #tpu.memory_space<vmem>>, vector<4x1024xf32>,
    %c31_i32 = arith.constant 31 : i32
    %17 = tpu.dynamic_rotate %4 by %c31_i32 dim 1 : vector<4x1024xf32>, i32 -> vector<4x1024xf32>
    %c2 = arith.constant 2 : index
    %c0_14 = arith.constant 0 : index
    %18 = vector.load %arg3[%c2, %c0_14] : memref<9x1024xf32, #tpu.memory_space<vmem>>, vector<1x1024xf32>
    %19 = vector.broadcast %18 : vector<1x1024xf32> to vector<4x1024xf32>
    %20 = arith.mulf %17, %19 : vector<4x1024xf32>
    %c8 = arith.constant 8 : index
    %c0_15 = arith.constant 0 : index
    %21 = vector.load %arg9[%c8, %c0_15] : memref<36x1024xf32, #tpu.memory_space<vmem>>, vector<4x1024xf32>
    tpu.vector_store %arg9[%c8, %c0_15], %20 {strides = array<i32>} : memref<36x1024xf32, #tpu.memory_space<vmem>>, vector<4x1024xf32>,
    %c1_i32 = arith.constant 1 : i32
    %22 = tpu.dynamic_rotate %4 by %c1_i32 dim 1 : vector<4x1024xf32>, i32 -> vector<4x1024xf32>
    %c3 = arith.constant 3 : index
    %c0_16 = arith.constant 0 : index
    %23 = vector.load %arg3[%c3, %c0_16] : memref<9x1024xf32, #tpu.memory_space<vmem>>, vector<1x1024xf32>
    %24 = vector.broadcast %23 : vector<1x1024xf32> to vector<4x1024xf32>
    %25 = arith.mulf %22, %24 : vector<4x1024xf32>
    %c12 = arith.constant 12 : index
    %c0_17 = arith.constant 0 : index
    %26 = vector.load %arg9[%c12, %c0_17] : memref<36x1024xf32, #tpu.memory_space<vmem>>, vector<4x1024xf32>
    tpu.vector_store %arg9[%c12, %c0_17], %25 {strides = array<i32>} : memref<36x1024xf32, #tpu.memory_space<vmem>>, vector<4x1024xf32>,
    %c16 = arith.constant 16 : index
    %c0_18 = arith.constant 0 : index
    %27 = vector.load %arg9[%c16, %c0_18] : memref<36x1024xf32, #tpu.memory_space<vmem>>, vector<4x1024xf32>
    tpu.vector_store %arg9[%c16, %c0_18], %4 {strides = array<i32>} : memref<36x1024xf32, #tpu.memory_space<vmem>>, vector<4x1024xf32>,
    %c1023_i32 = arith.constant 1023 : i32
    %28 = tpu.dynamic_rotate %4 by %c1023_i32 dim 1 : vector<4x1024xf32>, i32 -> vector<4x1024xf32>
    %c5 = arith.constant 5 : index
    %c0_19 = arith.constant 0 : index
    %29 = vector.load %arg3[%c5, %c0_19] : memref<9x1024xf32, #tpu.memory_space<vmem>>, vector<1x1024xf32>
    %30 = vector.broadcast %29 : vector<1x1024xf32> to vector<4x1024xf32>
    %31 = arith.mulf %28, %30 : vector<4x1024xf32>
    %c20 = arith.constant 20 : index
    %c0_20 = arith.constant 0 : index
    %32 = vector.load %arg9[%c20, %c0_20] : memref<36x1024xf32, #tpu.memory_space<vmem>>, vector<4x1024xf32>
    tpu.vector_store %arg9[%c20, %c0_20], %31 {strides = array<i32>} : memref<36x1024xf32, #tpu.memory_space<vmem>>, vector<4x1024xf32>,
    %c993_i32 = arith.constant 993 : i32
    %33 = tpu.dynamic_rotate %4 by %c993_i32 dim 1 : vector<4x1024xf32>, i32 -> vector<4x1024xf32>
    %c6 = arith.constant 6 : index
    %c0_21 = arith.constant 0 : index
    %34 = vector.load %arg3[%c6, %c0_21] : memref<9x1024xf32, #tpu.memory_space<vmem>>, vector<1x1024xf32>
    %35 = vector.broadcast %34 : vector<1x1024xf32> to vector<4x1024xf32>
    %36 = arith.mulf %33, %35 : vector<4x1024xf32>
    %c24 = arith.constant 24 : index
    %c0_22 = arith.constant 0 : index
    %37 = vector.load %arg9[%c24, %c0_22] : memref<36x1024xf32, #tpu.memory_space<vmem>>, vector<4x1024xf32>
    tpu.vector_store %arg9[%c24, %c0_22], %36 {strides = array<i32>} : memref<36x1024xf32, #tpu.memory_space<vmem>>, vector<4x1024xf32>,
    %c992_i32 = arith.constant 992 : i32
    %38 = tpu.dynamic_rotate %4 by %c992_i32 dim 1 : vector<4x1024xf32>, i32 -> vector<4x1024xf32>
    %c7 = arith.constant 7 : index
    %c0_23 = arith.constant 0 : index
    %39 = vector.load %arg3[%c7, %c0_23] : memref<9x1024xf32, #tpu.memory_space<vmem>>, vector<1x1024xf32>
    %40 = vector.broadcast %39 : vector<1x1024xf32> to vector<4x1024xf32>
    %41 = arith.mulf %38, %40 : vector<4x1024xf32>
    %c28 = arith.constant 28 : index
    %c0_24 = arith.constant 0 : index
    %42 = vector.load %arg9[%c28, %c0_24] : memref<36x1024xf32, #tpu.memory_space<vmem>>, vector<4x1024xf32>
    tpu.vector_store %arg9[%c28, %c0_24], %41 {strides = array<i32>} : memref<36x1024xf32, #tpu.memory_space<vmem>>, vector<4x1024xf32>,
    %c991_i32 = arith.constant 991 : i32
    %43 = tpu.dynamic_rotate %4 by %c991_i32 dim 1 : vector<4x1024xf32>, i32 -> vector<4x1024xf32>
    %c8_25 = arith.constant 8 : index
    %c0_26 = arith.constant 0 : index
    %44 = vector.load %arg3[%c8_25, %c0_26] : memref<9x1024xf32, #tpu.memory_space<vmem>>, vector<1x1024xf32>
    %45 = vector.broadcast %44 : vector<1x1024xf32> to vector<4x1024xf32>
    %46 = arith.mulf %43, %45 : vector<4x1024xf32>
    %c32 = arith.constant 32 : index
    %c0_27 = arith.constant 0 : index
    %47 = vector.load %arg9[%c32, %c0_27] : memref<36x1024xf32, #tpu.memory_space<vmem>>, vector<4x1024xf32>
    tpu.vector_store %arg9[%c32, %c0_27], %46 {strides = array<i32>} : memref<36x1024xf32, #tpu.memory_space<vmem>>, vector<4x1024xf32>,
    %c0_28 = arith.constant 0 : index
    %c0_29 = arith.constant 0 : index
    %48 = vector.load %arg9[%c0_28, %c0_29] : memref<36x1024xf32, #tpu.memory_space<vmem>>, vector<36x1024xf32>
    %cst_30 = arith.constant dense<0.000000e+00> : vector<4x1024xf32>
    %49 = tpu.matmul %5, %48, %cst_30 {dimension_numbers = #tpu.dot_dimension_numbers<[1], [0], [0], [1], [0, 0, 1, 1], [], []>} : vector<4x36xf32>, vector<36x1024xf32>, vector<4x1024xf32> -> vector<4x1024xf32>
    %50 = vector.broadcast %6 : vector<4x1xf32> to vector<4x1024xf32>
    %51 = arith.addf %49, %50 : vector<4x1024xf32>
    %cst_31 = arith.constant dense<0.000000e+00> : vector<4xf32>
    %52 = vector.multi_reduction <add>, %51, %cst_31 [1] : vector<4x1024xf32> to vector<4xf32>
    %53 = vector.shape_cast %52 : vector<4xf32> to vector<4x1xf32>
    %cst_32 = arith.constant 1.024000e+03 : f32
    %54 = vector.broadcast %cst_32 : f32 to vector<4x1xf32>
    %55 = arith.divf %53, %54 : vector<4x1xf32>
    %56 = vector.broadcast %55 : vector<4x1xf32> to vector<4x1024xf32>
    %57 = arith.subf %51, %56 : vector<4x1024xf32>
    %58 = arith.mulf %57, %57 : vector<4x1024xf32>
    %cst_33 = arith.constant dense<0.000000e+00> : vector<4xf32>
    %59 = vector.multi_reduction <add>, %58, %cst_33 [1] : vector<4x1024xf32> to vector<4xf32>
    %60 = vector.shape_cast %59 : vector<4xf32> to vector<4x1xf32>
    %cst_34 = arith.constant 1.024000e+03 : f32
    %61 = vector.broadcast %cst_34 : f32 to vector<4x1xf32>
    %62 = arith.divf %60, %61 : vector<4x1xf32>
    %cst_35 = arith.constant 9.99999974E-6 : f32
    %63 = vector.broadcast %cst_35 : f32 to vector<4x1xf32>
    %64 = arith.addf %62, %63 : vector<4x1xf32>
    %65 = math.rsqrt %64 : vector<4x1xf32>
    %66 = vector.broadcast %65 : vector<4x1xf32> to vector<4x1024xf32>
    %67 = arith.mulf %57, %66 : vector<4x1024xf32>
    %cst_36 = arith.constant 0.000000e+00 : f32
    %68 = vector.broadcast %cst_36 : f32 to vector<4x1024xf32>
    %69 = arith.maximumf %67, %68 : vector<4x1024xf32>
    %c0_37 = arith.constant 0 : index
    %c0_38 = arith.constant 0 : index
    %70 = vector.load %arg6[%c0_37, %c0_38] : memref<8x36xf32, #tpu.memory_space<vmem>>, vector<8x36xf32>
    %c0_39 = arith.constant 0 : index
    %c0_40 = arith.constant 0 : index
    %71 = vector.load %arg7[%c0_39, %c0_40] : memref<8x1xf32, #tpu.memory_space<vmem>>, vector<8x1xf32>
    %c33_i32_41 = arith.constant 33 : i32
    %72 = tpu.dynamic_rotate %69 by %c33_i32_41 dim 1 : vector<4x1024xf32>, i32 -> vector<4x1024xf32>
    %c0_42 = arith.constant 0 : index
    %c0_43 = arith.constant 0 : index
    %73 = vector.load %arg3[%c0_42, %c0_43] : memref<9x1024xf32, #tpu.memory_space<vmem>>, vector<1x1024xf32>
    %74 = vector.broadcast %73 : vector<1x1024xf32> to vector<4x1024xf32>
    %75 = arith.mulf %72, %74 : vector<4x1024xf32>
    %c0_44 = arith.constant 0 : index
    %c0_45 = arith.constant 0 : index
    %76 = vector.load %arg9[%c0_44, %c0_45] : memref<36x1024xf32, #tpu.memory_space<vmem>>, vector<4x1024xf32>
    tpu.vector_store %arg9[%c0_44, %c0_45], %75 {strides = array<i32>} : memref<36x1024xf32, #tpu.memory_space<vmem>>, vector<4x1024xf32>,
    %c32_i32_46 = arith.constant 32 : i32
    %77 = tpu.dynamic_rotate %69 by %c32_i32_46 dim 1 : vector<4x1024xf32>, i32 -> vector<4x1024xf32>
    %c1_47 = arith.constant 1 : index
    %c0_48 = arith.constant 0 : index
    %78 = vector.load %arg3[%c1_47, %c0_48] : memref<9x1024xf32, #tpu.memory_space<vmem>>, vector<1x1024xf32>
    %79 = vector.broadcast %78 : vector<1x1024xf32> to vector<4x1024xf32>
    %80 = arith.mulf %77, %79 : vector<4x1024xf32>
    %c4_49 = arith.constant 4 : index
    %c0_50 = arith.constant 0 : index
    %81 = vector.load %arg9[%c4_49, %c0_50] : memref<36x1024xf32, #tpu.memory_space<vmem>>, vector<4x1024xf32>
    tpu.vector_store %arg9[%c4_49, %c0_50], %80 {strides = array<i32>} : memref<36x1024xf32, #tpu.memory_space<vmem>>, vector<4x1024xf32>,
    %c31_i32_51 = arith.constant 31 : i32
    %82 = tpu.dynamic_rotate %69 by %c31_i32_51 dim 1 : vector<4x1024xf32>, i32 -> vector<4x1024xf32>
    %c2_52 = arith.constant 2 : index
    %c0_53 = arith.constant 0 : index
    %83 = vector.load %arg3[%c2_52, %c0_53] : memref<9x1024xf32, #tpu.memory_space<vmem>>, vector<1x1024xf32>
    %84 = vector.broadcast %83 : vector<1x1024xf32> to vector<4x1024xf32>
    %85 = arith.mulf %82, %84 : vector<4x1024xf32>
    %c8_54 = arith.constant 8 : index
    %c0_55 = arith.constant 0 : index
    %86 = vector.load %arg9[%c8_54, %c0_55] : memref<36x1024xf32, #tpu.memory_space<vmem>>, vector<4x1024xf32>
    tpu.vector_store %arg9[%c8_54, %c0_55], %85 {strides = array<i32>} : memref<36x1024xf32, #tpu.memory_space<vmem>>, vector<4x1024xf32>,
    %c1_i32_56 = arith.constant 1 : i32
    %87 = tpu.dynamic_rotate %69 by %c1_i32_56 dim 1 : vector<4x1024xf32>, i32 -> vector<4x1024xf32>
    %c3_57 = arith.constant 3 : index
    %c0_58 = arith.constant 0 : index
    %88 = vector.load %arg3[%c3_57, %c0_58] : memref<9x1024xf32, #tpu.memory_space<vmem>>, vector<1x1024xf32>
    %89 = vector.broadcast %88 : vector<1x1024xf32> to vector<4x1024xf32>
    %90 = arith.mulf %87, %89 : vector<4x1024xf32>
    %c12_59 = arith.constant 12 : index
    %c0_60 = arith.constant 0 : index
    %91 = vector.load %arg9[%c12_59, %c0_60] : memref<36x1024xf32, #tpu.memory_space<vmem>>, vector<4x1024xf32>
    tpu.vector_store %arg9[%c12_59, %c0_60], %90 {strides = array<i32>} : memref<36x1024xf32, #tpu.memory_space<vmem>>, vector<4x1024xf32>,
    %c16_61 = arith.constant 16 : index
    %c0_62 = arith.constant 0 : index
    %92 = vector.load %arg9[%c16_61, %c0_62] : memref<36x1024xf32, #tpu.memory_space<vmem>>, vector<4x1024xf32>
    tpu.vector_store %arg9[%c16_61, %c0_62], %69 {strides = array<i32>} : memref<36x1024xf32, #tpu.memory_space<vmem>>, vector<4x1024xf32>,
    %c1023_i32_63 = arith.constant 1023 : i32
    %93 = tpu.dynamic_rotate %69 by %c1023_i32_63 dim 1 : vector<4x1024xf32>, i32 -> vector<4x1024xf32>
    %c5_64 = arith.constant 5 : index
    %c0_65 = arith.constant 0 : index
    %94 = vector.load %arg3[%c5_64, %c0_65] : memref<9x1024xf32, #tpu.memory_space<vmem>>, vector<1x1024xf32>
    %95 = vector.broadcast %94 : vector<1x1024xf32> to vector<4x1024xf32>
    %96 = arith.mulf %93, %95 : vector<4x1024xf32>
    %c20_66 = arith.constant 20 : index
    %c0_67 = arith.constant 0 : index
    %97 = vector.load %arg9[%c20_66, %c0_67] : memref<36x1024xf32, #tpu.memory_space<vmem>>, vector<4x1024xf32>
    tpu.vector_store %arg9[%c20_66, %c0_67], %96 {strides = array<i32>} : memref<36x1024xf32, #tpu.memory_space<vmem>>, vector<4x1024xf32>,
    %c993_i32_68 = arith.constant 993 : i32
    %98 = tpu.dynamic_rotate %69 by %c993_i32_68 dim 1 : vector<4x1024xf32>, i32 -> vector<4x1024xf32>
    %c6_69 = arith.constant 6 : index
    %c0_70 = arith.constant 0 : index
    %99 = vector.load %arg3[%c6_69, %c0_70] : memref<9x1024xf32, #tpu.memory_space<vmem>>, vector<1x1024xf32>
    %100 = vector.broadcast %99 : vector<1x1024xf32> to vector<4x1024xf32>
    %101 = arith.mulf %98, %100 : vector<4x1024xf32>
    %c24_71 = arith.constant 24 : index
    %c0_72 = arith.constant 0 : index
    %102 = vector.load %arg9[%c24_71, %c0_72] : memref<36x1024xf32, #tpu.memory_space<vmem>>, vector<4x1024xf32>
    tpu.vector_store %arg9[%c24_71, %c0_72], %101 {strides = array<i32>} : memref<36x1024xf32, #tpu.memory_space<vmem>>, vector<4x1024xf32>,
    %c992_i32_73 = arith.constant 992 : i32
    %103 = tpu.dynamic_rotate %69 by %c992_i32_73 dim 1 : vector<4x1024xf32>, i32 -> vector<4x1024xf32>
    %c7_74 = arith.constant 7 : index
    %c0_75 = arith.constant 0 : index
    %104 = vector.load %arg3[%c7_74, %c0_75] : memref<9x1024xf32, #tpu.memory_space<vmem>>, vector<1x1024xf32>
    %105 = vector.broadcast %104 : vector<1x1024xf32> to vector<4x1024xf32>
    %106 = arith.mulf %103, %105 : vector<4x1024xf32>
    %c28_76 = arith.constant 28 : index
    %c0_77 = arith.constant 0 : index
    %107 = vector.load %arg9[%c28_76, %c0_77] : memref<36x1024xf32, #tpu.memory_space<vmem>>, vector<4x1024xf32>
    tpu.vector_store %arg9[%c28_76, %c0_77], %106 {strides = array<i32>} : memref<36x1024xf32, #tpu.memory_space<vmem>>, vector<4x1024xf32>,
    %c991_i32_78 = arith.constant 991 : i32
    %108 = tpu.dynamic_rotate %69 by %c991_i32_78 dim 1 : vector<4x1024xf32>, i32 -> vector<4x1024xf32>
    %c8_79 = arith.constant 8 : index
    %c0_80 = arith.constant 0 : index
    %109 = vector.load %arg3[%c8_79, %c0_80] : memref<9x1024xf32, #tpu.memory_space<vmem>>, vector<1x1024xf32>
    %110 = vector.broadcast %109 : vector<1x1024xf32> to vector<4x1024xf32>
    %111 = arith.mulf %108, %110 : vector<4x1024xf32>
    %c32_81 = arith.constant 32 : index
    %c0_82 = arith.constant 0 : index
    %112 = vector.load %arg9[%c32_81, %c0_82] : memref<36x1024xf32, #tpu.memory_space<vmem>>, vector<4x1024xf32>
    tpu.vector_store %arg9[%c32_81, %c0_82], %111 {strides = array<i32>} : memref<36x1024xf32, #tpu.memory_space<vmem>>, vector<4x1024xf32>,
    %c0_83 = arith.constant 0 : index
    %c0_84 = arith.constant 0 : index
    %113 = vector.load %arg9[%c0_83, %c0_84] : memref<36x1024xf32, #tpu.memory_space<vmem>>, vector<36x1024xf32>
    %cst_85 = arith.constant dense<0.000000e+00> : vector<8x1024xf32>
    %114 = tpu.matmul %70, %113, %cst_85 {dimension_numbers = #tpu.dot_dimension_numbers<[1], [0], [0], [1], [0, 0, 1, 1], [], []>} : vector<8x36xf32>, vector<36x1024xf32>, vector<8x1024xf32> -> vector<8x1024xf32>
    %115 = vector.broadcast %71 : vector<8x1xf32> to vector<8x1024xf32>
    %116 = arith.addf %114, %115 : vector<8x1024xf32>
    %cst_86 = arith.constant dense<0.000000e+00> : vector<8xf32>
    %117 = vector.multi_reduction <add>, %116, %cst_86 [1] : vector<8x1024xf32> to vector<8xf32>
    %118 = vector.shape_cast %117 : vector<8xf32> to vector<8x1xf32>
    %cst_87 = arith.constant 1.024000e+03 : f32
    %119 = vector.broadcast %cst_87 : f32 to vector<8x1xf32>
    %120 = arith.divf %118, %119 : vector<8x1xf32>
    %121 = vector.broadcast %120 : vector<8x1xf32> to vector<8x1024xf32>
    %122 = arith.subf %116, %121 : vector<8x1024xf32>
    %123 = arith.mulf %122, %122 : vector<8x1024xf32>
    %cst_88 = arith.constant dense<0.000000e+00> : vector<8xf32>
    %124 = vector.multi_reduction <add>, %123, %cst_88 [1] : vector<8x1024xf32> to vector<8xf32>
    %125 = vector.shape_cast %124 : vector<8xf32> to vector<8x1xf32>
    %cst_89 = arith.constant 1.024000e+03 : f32
    %126 = vector.broadcast %cst_89 : f32 to vector<8x1xf32>
    %127 = arith.divf %125, %126 : vector<8x1xf32>
    %cst_90 = arith.constant 9.99999974E-6 : f32
    %128 = vector.broadcast %cst_90 : f32 to vector<8x1xf32>
    %129 = arith.addf %127, %128 : vector<8x1xf32>
    %130 = math.rsqrt %129 : vector<8x1xf32>
    %131 = vector.broadcast %130 : vector<8x1xf32> to vector<8x1024xf32>
    %132 = arith.mulf %122, %131 : vector<8x1024xf32>
    %cst_91 = arith.constant 0.000000e+00 : f32
    %133 = vector.broadcast %cst_91 : f32 to vector<8x1024xf32>
    %134 = arith.maximumf %132, %133 : vector<8x1024xf32>
    %c0_92 = arith.constant 0 : index
    %c0_93 = arith.constant 0 : index
    %c0_94 = arith.constant 0 : index
    %135 = vector.load %arg8[%c0_92, %c0_93, %c0_94] : memref<1x8x1024xf32, #tpu.memory_space<vmem>>, vector<1x8x1024xf32>
    %136 = vector.shape_cast %135 : vector<1x8x1024xf32> to vector<8x1024xf32>
    %137 = vector.shape_cast %134 : vector<8x1024xf32> to vector<1x8x1024xf32>
    tpu.vector_store %arg8[%c0_92, %c0_93, %c0_94], %137 {strides = array<i32>} : memref<1x8x1024xf32, #tpu.memory_space<vmem>>, vector<1x8x1024xf32>,
    return
  }
  func.func @transform_0(%arg0: i32) -> (i32, i32, i32) {
    %c0_i32 = arith.constant 0 : i32
    %c0_i32_0 = arith.constant 0 : i32
    %c0_i32_1 = arith.constant 0 : i32
    return %arg0, %c0_i32, %c0_i32_0 : i32, i32, i32
  }
  func.func @transform_1(%arg0: i32) -> (i32, i32) {
    %c0_i32 = arith.constant 0 : i32
    %c0_i32_0 = arith.constant 0 : i32
    %c0_i32_1 = arith.constant 0 : i32
    return %c0_i32, %c0_i32_0 : i32, i32
  }
  func.func @transform_2(%arg0: i32) -> (i32, i32) {
    %c0_i32 = arith.constant 0 : i32
    %c0_i32_0 = arith.constant 0 : i32
    %c0_i32_1 = arith.constant 0 : i32
    return %c0_i32, %c0_i32_0 : i32, i32
  }
  func.func @transform_3(%arg0: i32) -> (i32, i32) {
    %c0_i32 = arith.constant 0 : i32
    %c0_i32_0 = arith.constant 0 : i32
    %c0_i32_1 = arith.constant 0 : i32
    return %c0_i32, %c0_i32_0 : i32, i32
  }
  func.func @transform_4(%arg0: i32) -> (i32, i32) {
    %c0_i32 = arith.constant 0 : i32
    %c0_i32_0 = arith.constant 0 : i32
    %c0_i32_1 = arith.constant 0 : i32
    return %c0_i32, %c0_i32_0 : i32, i32
  }
  func.func @transform_5(%arg0: i32) -> (i32, i32) {
    %c0_i32 = arith.constant 0 : i32
    %c0_i32_0 = arith.constant 0 : i32
    %c0_i32_1 = arith.constant 0 : i32
    return %c0_i32, %c0_i32_0 : i32, i32
  }
  func.func @transform_6(%arg0: i32) -> (i32, i32) {
    %c0_i32 = arith.constant 0 : i32
    %c0_i32_0 = arith.constant 0 : i32
    %c0_i32_1 = arith.constant 0 : i32
    return %c0_i32, %c0_i32_0 : i32, i32
  }
  func.func @transform_7(%arg0: i32) -> (i32, i32, i32) {
    %c0_i32 = arith.constant 0 : i32
    %c0_i32_0 = arith.constant 0 : i32
    %c0_i32_1 = arith.constant 0 : i32
    return %arg0, %c0_i32, %c0_i32_0 : i32, i32, i32
  }
}

</mosaic_0001>

<bundles_post_ra>
// kernel: gblock_forward.1
= control target key start
LH: loop header
LB: loop body
LE: loop exit
PB: predicated region body
PF: predicated region fallthrough
CT: control target
= control target key end

     0   :  { %12 = vsyncpa [#allocation4], 0  ;;  %s3648_s24 = smov 0   ;;  %s4895_s0 = inlined_call_operand.vmem [shape: f32[2,4,256], index: 0, kind: input, shape index: {}]   ;;  %s4896_s1 = inlined_call_operand.hbm [shape: bf16[256,1024], index: 1, kind: input, shape index: {}]   ;;  %s4897_s2 = inlined_call_operand.vmem [shape: f32[9,1024], index: 2, kind: input, shape index: {}]   ;;  %s4898_s3 = inlined_call_operand.vmem [shape: f32[4,36], index: 3, kind: input, shape index: {}]   ;;  %s4899_s4 = inlined_call_operand.vmem [shape: f32[4,1], index: 4, kind: input, shape index: {}]   ;;  %s4900_s5 = inlined_call_operand.vmem [shape: f32[8,36], index: 5, kind: input, shape index: {}]   ;;  %s4901_s6 = inlined_call_operand.vmem [shape: f32[8,1], index: 6, kind: input, shape index: {}]   ;;  %s4902_s7 = inlined_call_operand.vmem [shape: f32[2,8,1024], index: 7, kind: output, shape index: {}]  }
   0x1 LB: > { %s3654_s25 = sadd.s32 4294967295, %s3593_s24   ;;  %p3455_p0 = scmp.ge.s32.totalorder %s3593_s24, 1  ;;  %s3593_s24 = sphi %s3648_s24, %s18_s24  }
   0x2   : > { %p201_p1 = scmp.lt.s32.totalorder %s3593_s24, 3  ;;  %s3595_s26 = smov [#allocation3]  }
   0x3   : > { %s213_s27 = sshll.u32 %s3595_s26, 4  ;;  %p3528_p3 = scmp.eq.s32.totalorder %s3654_s25, 0  ;;  %s214_s27 = int_to_ptr.vmem [resolvable:$true] %s213_s27 }
   0x4   : > { %p3658_p2 = pnand %p3455_p0, %p201_p1  ;;  %s3568_s29 = scalar_lea.vmem %s214_s27, 16384 }
   0x5   : > { %p3569_p7 = scmp.ne.s32.totalorder %s214_s27, %s3568_s29  ;;  %p3576_p10 = scmp.lt.s32.totalorder %s214_s27, %s214_s27 }
   0x6   : > { %p3524_p4 = pneg %p3658_p2  ;;  %p3577_p11 = scmp.lt.s32.totalorder %s3568_s29, %s3568_s29 }
   0x8   : > { %p3525_p5 = pnand %p3528_p3, %p3524_p4  ;;  %p3578_p12 = por %p3577_p11, %p3576_p10 }
   0xa   : > { %p3559_p6 = pneg %p3525_p5 }
   0xc   : > { %p3571_p8 = pnand %p3569_p7, %p3559_p6 }
   0xe   : > { %p3572_p9 = pneg %p3571_p8 }
  0x10   : > { %p3579_p13 = pnand %p3578_p12, %p3572_p9 }
  0x12   : > { %3582 = shalt.err (!%p3579_p13)
}
  0x13   : > { %s3596_s30 = smov 512   ;;  %s3597_s8 = smov 32  }
  0x14   : > { %3527 = dma.hbm_to_vmem [thread:$0]  (!%p3525_p5), %s4896_s1, 16384, %s214_s27, [#allocation4], %s3596_s30, %s3596_s30, %s3597_s8  }
  0x15   : > { %252 = sbr.rel (%p3658_p2) target bundleno = 1840 (0x730), region = 48 }
  0x1a   : > { %3588 = dma.done.wait (%p3528_p3), [#allocation4], 16384  }
  0x1b   : > { %3590 = vsyncadd (%p3528_p3), [#allocation4], 4294950912  ;;  %v355_v0 = vld [vmem:[#allocation3 + $0x1e0] sm:$0xff]  ;;  %v356_v1 = vld [vmem:[#allocation3 + $0x1e8] sm:$0xff]  ;;  %p284_p0 = scmp.lt.s32.totalorder %s3654_s25, 1  ;;  %s3598_s15 = smov 95  }
  0x1c   : > { %v351_v2 = vld [vmem:[#allocation3 + $0x1c0] sm:$0xff]  ;;  %v544_v3 = vunpack.c.h.bf16 %v355_v0  ;;  %v546_v4 = vunpack.c.h.bf16 %v356_v1  ;;  %v543_v5 = vunpack.c.l.bf16 %v355_v0  ;;  %v545_v6 = vunpack.c.l.bf16 %v356_v1  ;;  %v352_v7 = vld [vmem:[#allocation3 + $0x1c8] sm:$0xff]  ;;  %s3599_s16 = smov 96   ;;  %s3600_s17 = smov 127  }
  0x1d   : > { %v347_v8 = vld [vmem:[#allocation3 + $0x1a0] sm:$0xff]  ;;  %v348_v9 = vld [vmem:[#allocation3 + $0x1a8] sm:$0xff]  ;;  %v536_v10 = vunpack.c.h.bf16 %v351_v2  ;;  %v538_v11 = vunpack.c.h.bf16 %v352_v7  ;;  %v535_v12 = vunpack.c.l.bf16 %v351_v2  ;;  %v537_v13 = vunpack.c.l.bf16 %v352_v7  ;;  %s4905_s25 = smov (!%p284_p0, %s3654_s25), 1  ;;  %s3601_s18 = smov 97  }
  0x1e   : > { %v343_v14 = vld [vmem:[#allocation3 + $0x180] sm:$0xff]  ;;  %v344_v15 = vld [vmem:[#allocation3 + $0x188] sm:$0xff]  ;;  %682 = vmatprep.subr.mxu0 %v544_v3  ;;  %753 = vmatprep.subr.mxu1 %v546_v4  ;;  %v528_v16 = vunpack.c.h.bf16 %v347_v8  ;;  %v530_v17 = vunpack.c.h.bf16 %v348_v9  ;;  %v527_v18 = vunpack.c.l.bf16 %v347_v8  ;;  %v529_v19 = vunpack.c.l.bf16 %v348_v9  ;;  %s3518_s11 = sshll.u32 %s4905_s25, 3  ;;  %s3602_s19 = smov 1  }
  0x1f   : > { %683 = vmatpush1.msra.mxu0 %v543_v5  ;;  %754 = vmatpush1.msra.mxu1 %v545_v6  ;;  %v339_v20 = vld [vmem:[#allocation3 + $0x160] sm:$0xff]  ;;  %v340_v21 = vld [vmem:[#allocation3 + $0x168] sm:$0xff]  ;;  %v520_v22 = vunpack.c.h.bf16 %v343_v14  ;;  %v522_v23 = vunpack.c.h.bf16 %v344_v15  ;;  %v519_v24 = vunpack.c.l.bf16 %v343_v14  ;;  %v521_v25 = vunpack.c.l.bf16 %v344_v15  ;;  %s288_s14 = scalar_lea.vmem %s4895_s0, %s3518_s11  ;;  %s3603_s20 = smov 32  }
  0x20   : > { %684 = vmatprep.subr.mxu0 %v536_v10  ;;  %755 = vmatprep.subr.mxu1 %v538_v11  ;;  %v335_v26 = vld [vmem:[#allocation3 + $0x140] sm:$0xff]  ;;  %v336_v27 = vld [vmem:[#allocation3 + $0x148] sm:$0xff]  ;;  %v512_v28 = vunpack.c.h.bf16 %v339_v20  ;;  %v514_v29 = vunpack.c.h.bf16 %v340_v21  ;;  %v511_v30 = vunpack.c.l.bf16 %v339_v20  ;;  %v513_v31 = vunpack.c.l.bf16 %v340_v21  ;;  %s3604_s21 = smov 31   ;;  %s3605_s22 = smov 33  }
  0x21   : > { %685 = vmatpush1.msra.mxu0 %v535_v12  ;;  %756 = vmatpush1.msra.mxu1 %v537_v13  ;;  %v331_v32 = vld [vmem:[#allocation3 + $0x120] sm:$0xff]  ;;  %v332_v33 = vld [vmem:[#allocation3 + $0x128] sm:$0xff]  ;;  %v504_v34 = vunpack.c.h.bf16 %v335_v26  ;;  %v506_v35 = vunpack.c.h.bf16 %v336_v27  ;;  %v503_v36 = vunpack.c.l.bf16 %v335_v26  ;;  %v505_v37 = vunpack.c.l.bf16 %v336_v27  ;;  %s3519_s8 = sshll.u32 %s4905_s25, 6 }
  0x22   : > { %686 = vmatprep.subr.mxu0 %v528_v16  ;;  %757 = vmatprep.subr.mxu1 %v530_v17  ;;  %v327_v38 = vld [vmem:[#allocation3 + $0x100] sm:$0xff]  ;;  %v328_v39 = vld [vmem:[#allocation3 + $0x108] sm:$0xff]  ;;  %v496_v40 = vunpack.c.h.bf16 %v331_v32  ;;  %v498_v41 = vunpack.c.h.bf16 %v332_v33  ;;  %v495_v42 = vunpack.c.l.bf16 %v331_v32  ;;  %v497_v43 = vunpack.c.l.bf16 %v332_v33 }
  0x23   : > { %687 = vmatpush1.msra.mxu0 %v527_v18  ;;  %758 = vmatpush1.msra.mxu1 %v529_v19  ;;  %v323_v44 = vld [vmem:[#allocation3 + $0xe0] sm:$0xff]  ;;  %v324_v45 = vld [vmem:[#allocation3 + $0xe8] sm:$0xff]  ;;  %v488_v46 = vunpack.c.h.bf16 %v327_v38  ;;  %v490_v47 = vunpack.c.h.bf16 %v328_v39  ;;  %v487_v48 = vunpack.c.l.bf16 %v327_v38  ;;  %v489_v49 = vunpack.c.l.bf16 %v328_v39 }
  0x24   : > { %688 = vmatprep.subr.mxu0 %v520_v22  ;;  %759 = vmatprep.subr.mxu1 %v522_v23  ;;  %v319_v50 = vld [vmem:[#allocation3 + $0xc0] sm:$0xff]  ;;  %v320_v51 = vld [vmem:[#allocation3 + $0xc8] sm:$0xff]  ;;  %v480_v52 = vunpack.c.h.bf16 %v323_v44  ;;  %v482_v53 = vunpack.c.h.bf16 %v324_v45  ;;  %v479_v54 = vunpack.c.l.bf16 %v323_v44  ;;  %v481_v55 = vunpack.c.l.bf16 %v324_v45 }
  0x25   : > { %689 = vmatpush1.msra.mxu0 %v519_v24  ;;  %760 = vmatpush1.msra.mxu1 %v521_v25  ;;  %v315_v56 = vld [vmem:[#allocation3 + $0xa0] sm:$0xff]  ;;  %v316_v57 = vld [vmem:[#allocation3 + $0xa8] sm:$0xff]  ;;  %v472_v58 = vunpack.c.h.bf16 %v319_v50  ;;  %v474_v59 = vunpack.c.h.bf16 %v320_v51  ;;  %v471_v60 = vunpack.c.l.bf16 %v319_v50  ;;  %v473_v61 = vunpack.c.l.bf16 %v320_v51 }
  0x26   : > { %690 = vmatprep.subr.mxu0 %v512_v28  ;;  %761 = vmatprep.subr.mxu1 %v514_v29  ;;  %v311_v62 = vld [vmem:[#allocation3 + $0x80] sm:$0xff]  ;;  %v312_v63 = vld [vmem:[#allocation3 + $0x88] sm:$0xff]  ;;  %v464_v0 = vunpack.c.h.bf16 %v315_v56  ;;  %v466_v1 = vunpack.c.h.bf16 %v316_v57  ;;  %v463_v2 = vunpack.c.l.bf16 %v315_v56  ;;  %v465_v3 = vunpack.c.l.bf16 %v316_v57 }
  0x27   : > { %691 = vmatpush1.msra.mxu0 %v511_v30  ;;  %762 = vmatpush1.msra.mxu1 %v513_v31  ;;  %v307_v4 = vld [vmem:[#allocation3 + $0x60] sm:$0xff]  ;;  %v308_v5 = vld [vmem:[#allocation3 + $0x68] sm:$0xff]  ;;  %v456_v6 = vunpack.c.h.bf16 %v311_v62  ;;  %v458_v7 = vunpack.c.h.bf16 %v312_v63  ;;  %v455_v8 = vunpack.c.l.bf16 %v311_v62  ;;  %v457_v9 = vunpack.c.l.bf16 %v312_v63 }
  0x28   : > { %692 = vmatprep.subr.mxu0 %v504_v34  ;;  %763 = vmatprep.subr.mxu1 %v506_v35  ;;  %v303_v10 = vld [vmem:[#allocation3 + $0x40] sm:$0xff]  ;;  %v304_v11 = vld [vmem:[#allocation3 + $0x48] sm:$0xff]  ;;  %v448_v12 = vunpack.c.h.bf16 %v307_v4  ;;  %v450_v13 = vunpack.c.h.bf16 %v308_v5  ;;  %v447_v14 = vunpack.c.l.bf16 %v307_v4  ;;  %v449_v15 = vunpack.c.l.bf16 %v308_v5 }
  0x29   : > { %693 = vmatpush1.msra.mxu0 %v503_v36  ;;  %764 = vmatpush1.msra.mxu1 %v505_v37  ;;  %v299_v16 = vld [vmem:[#allocation3 + $0x20] sm:$0xff]  ;;  %v300_v17 = vld [vmem:[#allocation3 + $0x28] sm:$0xff]  ;;  %v440_v18 = vunpack.c.h.bf16 %v303_v10  ;;  %v442_v19 = vunpack.c.h.bf16 %v304_v11  ;;  %v439_v20 = vunpack.c.l.bf16 %v303_v10  ;;  %v441_v21 = vunpack.c.l.bf16 %v304_v11 }
  0x2a   : > { %694 = vmatprep.subr.mxu0 %v496_v40  ;;  %765 = vmatprep.subr.mxu1 %v498_v41  ;;  %v295_v22 = vld [vmem:[#allocation3] sm:$0xff]  ;;  %v296_v23 = vld [vmem:[#allocation3 + $0x8] sm:$0xff]  ;;  %v432_v24 = vunpack.c.h.bf16 %v299_v16  ;;  %v434_v25 = vunpack.c.h.bf16 %v300_v17  ;;  %v431_v26 = vunpack.c.l.bf16 %v299_v16  ;;  %v433_v27 = vunpack.c.l.bf16 %v300_v17 }
  0x2b   : > { %695 = vmatpush1.msra.mxu0 %v495_v42  ;;  %766 = vmatpush1.msra.mxu1 %v497_v43  ;;  %v419_v28 = vld [vmem:[#allocation3 + $0x3e0] sm:$0xff]  ;;  %v420_v29 = vld [vmem:[#allocation3 + $0x3e8] sm:$0xff]  ;;  %v424_v30 = vunpack.c.h.bf16 %v295_v22  ;;  %v426_v31 = vunpack.c.h.bf16 %v296_v23  ;;  %v423_v32 = vunpack.c.l.bf16 %v295_v22  ;;  %v425_v33 = vunpack.c.l.bf16 %v296_v23 }
  0x2c   : > { %696 = vmatprep.subr.mxu0 %v488_v46  ;;  %767 = vmatprep.subr.mxu1 %v490_v47  ;;  %v415_v34 = vld [vmem:[#allocation3 + $0x3c0] sm:$0xff]  ;;  %v416_v35 = vld [vmem:[#allocation3 + $0x3c8] sm:$0xff]  ;;  %v672_v36 = vunpack.c.h.bf16 %v419_v28  ;;  %v674_v37 = vunpack.c.h.bf16 %v420_v29  ;;  %v671_v38 = vunpack.c.l.bf16 %v419_v28  ;;  %v673_v39 = vunpack.c.l.bf16 %v420_v29 }
  0x2d   : > { %697 = vmatpush1.msra.mxu0 %v487_v48  ;;  %768 = vmatpush1.msra.mxu1 %v489_v49  ;;  %v411_v40 = vld [vmem:[#allocation3 + $0x3a0] sm:$0xff]  ;;  %v412_v41 = vld [vmem:[#allocation3 + $0x3a8] sm:$0xff]  ;;  %v664_v42 = vunpack.c.h.bf16 %v415_v34  ;;  %v666_v43 = vunpack.c.h.bf16 %v416_v35  ;;  %v663_v44 = vunpack.c.l.bf16 %v415_v34  ;;  %v665_v45 = vunpack.c.l.bf16 %v416_v35 }
  0x2e   : > { %698 = vmatprep.subr.mxu0 %v480_v52  ;;  %769 = vmatprep.subr.mxu1 %v482_v53  ;;  %v407_v46 = vld [vmem:[#allocation3 + $0x380] sm:$0xff]  ;;  %v408_v47 = vld [vmem:[#allocation3 + $0x388] sm:$0xff]  ;;  %v656_v48 = vunpack.c.h.bf16 %v411_v40  ;;  %v658_v49 = vunpack.c.h.bf16 %v412_v41  ;;  %v655_v50 = vunpack.c.l.bf16 %v411_v40  ;;  %v657_v51 = vunpack.c.l.bf16 %v412_v41 }
  0x2f   : > { %699 = vmatpush1.msra.mxu0 %v479_v54  ;;  %770 = vmatpush1.msra.mxu1 %v481_v55  ;;  %v403_v52 = vld [vmem:[#allocation3 + $0x360] sm:$0xff]  ;;  %v404_v53 = vld [vmem:[#allocation3 + $0x368] sm:$0xff]  ;;  %v648_v54 = vunpack.c.h.bf16 %v407_v46  ;;  %v650_v55 = vunpack.c.h.bf16 %v408_v47  ;;  %v647_v56 = vunpack.c.l.bf16 %v407_v46  ;;  %v649_v57 = vunpack.c.l.bf16 %v408_v47 }
  0x30   : > { %700 = vmatprep.subr.mxu0 %v472_v58  ;;  %771 = vmatprep.subr.mxu1 %v474_v59  ;;  %v399_v58 = vld [vmem:[#allocation3 + $0x340] sm:$0xff]  ;;  %v400_v59 = vld [vmem:[#allocation3 + $0x348] sm:$0xff]  ;;  %v639_v62 = vunpack.c.l.bf16 %v403_v52  ;;  %v641_v63 = vunpack.c.l.bf16 %v404_v53  ;;  %vm1810_vm5 = vcmask 1043456   ;;  %vm1806_vm9 = vcmask 293888  }
  0x31   : > { %701 = vmatpush1.msra.mxu0 %v471_v60  ;;  %772 = vmatpush1.msra.mxu1 %v473_v61  ;;  %v640_v60 = vunpack.c.h.bf16 %v403_v52  ;;  %v642_v61 = vunpack.c.h.bf16 %v404_v53  ;;  %v631_v4 = vunpack.c.l.bf16 %v399_v58  ;;  %v633_v5 = vunpack.c.l.bf16 %v400_v59 }
  0x32   : > { %702 = vmatprep.subr.mxu0 %v464_v0  ;;  %773 = vmatprep.subr.mxu1 %v466_v1  ;;  %v395_v0 = vld [vmem:[#allocation3 + $0x320] sm:$0xff]  ;;  %v396_v1 = vld [vmem:[#allocation3 + $0x328] sm:$0xff] }
  0x33   : > { %703 = vmatpush1.msra.mxu0 %v463_v2  ;;  %774 = vmatpush1.msra.mxu1 %v465_v3  ;;  %v632_v2 = vunpack.c.h.bf16 %v399_v58  ;;  %v634_v3 = vunpack.c.h.bf16 %v400_v59  ;;  %v623_v10 = vunpack.c.l.bf16 %v395_v0  ;;  %v625_v11 = vunpack.c.l.bf16 %v396_v1  ;;  %v3686_v58 = vld [vmem:[%s288_s14] sm:$0xff] }
  0x34   : > { %704 = vmatprep.subr.mxu0 %v456_v6  ;;  %775 = vmatprep.subr.mxu1 %v458_v7  ;;  %v391_v6 = vld [vmem:[#allocation3 + $0x300] sm:$0xff]  ;;  %v392_v7 = vld [vmem:[#allocation3 + $0x308] sm:$0xff] }
  0x35   : > { %705 = vmatpush1.msra.mxu0 %v455_v8  ;;  %776 = vmatpush1.msra.mxu1 %v457_v9  ;;  %v624_v8 = vunpack.c.h.bf16 %v395_v0  ;;  %v626_v9 = vunpack.c.h.bf16 %v396_v1  ;;  %v615_v16 = vunpack.c.l.bf16 %v391_v6  ;;  %v617_v17 = vunpack.c.l.bf16 %v392_v7  ;;  %v357_v1 = vld [vmem:[#allocation3 + $0x1f0] sm:$0xff] }
  0x36   : > { %706 = vmatprep.subr.mxu0 %v448_v12  ;;  %777 = vmatprep.subr.mxu1 %v450_v13  ;;  %v387_v12 = vld [vmem:[#allocation3 + $0x2e0] sm:$0xff]  ;;  %v388_v13 = vld [vmem:[#allocation3 + $0x2e8] sm:$0xff]  ;;  %v3690_v0 = vcombine.high %v3686_v58, %v3686_v58 }
  0x37   : > { %707 = vmatpush1.msra.mxu0 %v447_v14  ;;  %778 = vmatpush1.msra.mxu1 %v449_v15  ;;  %v616_v14 = vunpack.c.h.bf16 %v391_v6  ;;  %v618_v15 = vunpack.c.h.bf16 %v392_v7  ;;  %v607_v22 = vunpack.c.l.bf16 %v387_v12  ;;  %v609_v23 = vunpack.c.l.bf16 %v388_v13 }
  0x38   : > { %708 = vmatprep.subr.mxu0 %v440_v18  ;;  %779 = vmatprep.subr.mxu1 %v442_v19  ;;  %v383_v18 = vld [vmem:[#allocation3 + $0x2c0] sm:$0xff]  ;;  %v384_v19 = vld [vmem:[#allocation3 + $0x2c8] sm:$0xff]  ;;  %v548_v6 = vunpack.c.h.bf16 %v357_v1 }
  0x39   : > { %709 = vmatpush1.msra.mxu0 %v439_v20  ;;  %780 = vmatpush1.msra.mxu1 %v441_v21  ;;  %v608_v20 = vunpack.c.h.bf16 %v387_v12  ;;  %v610_v21 = vunpack.c.h.bf16 %v388_v13  ;;  %v599_v28 = vunpack.c.l.bf16 %v383_v18  ;;  %v601_v29 = vunpack.c.l.bf16 %v384_v19 }
  0x3a   : > { %710 = vmatprep.subr.mxu0 %v432_v24  ;;  %781 = vmatprep.subr.mxu1 %v434_v25  ;;  %v379_v24 = vld [vmem:[#allocation3 + $0x2a0] sm:$0xff]  ;;  %v380_v25 = vld [vmem:[#allocation3 + $0x2a8] sm:$0xff] }
  0x3b   : > { %711 = vmatpush1.msra.mxu0 %v431_v26  ;;  %782 = vmatpush1.msra.mxu1 %v433_v27  ;;  %v600_v26 = vunpack.c.h.bf16 %v383_v18  ;;  %v602_v27 = vunpack.c.h.bf16 %v384_v19  ;;  %v591_v34 = vunpack.c.l.bf16 %v379_v24  ;;  %v593_v35 = vunpack.c.l.bf16 %v380_v25 }
  0x3c   : > { %712 = vmatprep.subr.mxu0 %v424_v30  ;;  %783 = vmatprep.subr.mxu1 %v426_v31  ;;  %v375_v30 = vld [vmem:[#allocation3 + $0x280] sm:$0xff]  ;;  %v376_v31 = vld [vmem:[#allocation3 + $0x288] sm:$0xff] }
  0x3d   : > { %713 = vmatpush1.msra.mxu0 %v423_v32  ;;  %784 = vmatpush1.msra.mxu1 %v425_v33  ;;  %v592_v32 = vunpack.c.h.bf16 %v379_v24  ;;  %v594_v33 = vunpack.c.h.bf16 %v380_v25  ;;  %v583_v40 = vunpack.c.l.bf16 %v375_v30  ;;  %v585_v41 = vunpack.c.l.bf16 %v376_v31 }
  0x3e   : > { %714 = vmatprep.subr.mxu0 %v672_v36  ;;  %785 = vmatprep.subr.mxu1 %v674_v37  ;;  %v371_v36 = vld [vmem:[#allocation3 + $0x260] sm:$0xff]  ;;  %v372_v37 = vld [vmem:[#allocation3 + $0x268] sm:$0xff] }
  0x3f   : > { %715 = vmatpush2.msra.mxu0 %v671_v38  ;;  %786 = vmatpush2.msra.mxu1 %v673_v39  ;;  %v584_v38 = vunpack.c.h.bf16 %v375_v30  ;;  %v586_v39 = vunpack.c.h.bf16 %v376_v31  ;;  %v575_v46 = vunpack.c.l.bf16 %v371_v36  ;;  %v577_v47 = vunpack.c.l.bf16 %v372_v37 }
  0x40   : > { %716 = vmatprep.subr.mxu0 %v664_v42  ;;  %787 = vmatprep.subr.mxu1 %v666_v43  ;;  %v367_v42 = vld [vmem:[#allocation3 + $0x240] sm:$0xff]  ;;  %v368_v43 = vld [vmem:[#allocation3 + $0x248] sm:$0xff] }
  0x41   : > { %717 = vmatpush2.msra.mxu0 %v663_v44  ;;  %788 = vmatpush2.msra.mxu1 %v665_v45  ;;  %v576_v44 = vunpack.c.h.bf16 %v371_v36  ;;  %v578_v45 = vunpack.c.h.bf16 %v372_v37  ;;  %v567_v52 = vunpack.c.l.bf16 %v367_v42  ;;  %v569_v53 = vunpack.c.l.bf16 %v368_v43 }
  0x42   : > { %718 = vmatprep.subr.mxu0 %v656_v48  ;;  %789 = vmatprep.subr.mxu1 %v658_v49  ;;  %v363_v48 = vld [vmem:[#allocation3 + $0x220] sm:$0xff]  ;;  %v364_v49 = vld [vmem:[#allocation3 + $0x228] sm:$0xff] }
  0x43   : > { %719 = vmatpush2.msra.mxu0 %v655_v50  ;;  %790 = vmatpush2.msra.mxu1 %v657_v51  ;;  %v568_v50 = vunpack.c.h.bf16 %v367_v42  ;;  %v570_v51 = vunpack.c.h.bf16 %v368_v43  ;;  %v559_v59 = vunpack.c.l.bf16 %v363_v48 }
  0x44   : > { %720 = vmatprep.subr.mxu0 %v648_v54  ;;  %791 = vmatprep.subr.mxu1 %v650_v55  ;;  %v359_v54 = vld [vmem:[#allocation3 + $0x200] sm:$0xff]  ;;  %v360_v55 = vld [vmem:[#allocation3 + $0x208] sm:$0xff] }
  0x45   : > { %721 = vmatpush2.msra.mxu0 %v647_v56  ;;  %792 = vmatpush2.msra.mxu1 %v649_v57  ;;  %v560_v56 = vunpack.c.h.bf16 %v363_v48  ;;  %v562_v57 = vunpack.c.h.bf16 %v364_v49 }
  0x46   : > { %722 = vmatprep.subr.mxu0 %v640_v60  ;;  %793 = vmatprep.subr.mxu1 %v642_v61  ;;  %v561_v60 = vunpack.c.l.bf16 %v364_v49  ;;  %v552_v61 = vunpack.c.h.bf16 %v359_v54 }
  0x47   : > { %723 = vmatpush2.msra.mxu0 %v639_v62  ;;  %794 = vmatpush2.msra.mxu1 %v641_v63  ;;  %v554_v62 = vunpack.c.h.bf16 %v360_v55  ;;  %v551_v63 = vunpack.c.l.bf16 %v359_v54 }
  0x48   : > { %724 = vmatprep.subr.mxu0 %v632_v2  ;;  %795 = vmatprep.subr.mxu1 %v634_v3  ;;  %v358_v2 = vld [vmem:[#allocation3 + $0x1f8] sm:$0xff]  ;;  %v553_v3 = vunpack.c.l.bf16 %v360_v55 }
  0x49   : > { %725 = vmatpush2.msra.mxu0 %v631_v4  ;;  %796 = vmatpush2.msra.mxu1 %v633_v5  ;;  %v353_v4 = vld [vmem:[#allocation3 + $0x1d0] sm:$0xff]  ;;  %v354_v5 = vld [vmem:[#allocation3 + $0x1d8] sm:$0xff]  ;;  %v550_v7 = vunpack.c.h.bf16 %v358_v2 }
  0x4a   : > { %726 = vmatprep.subr.mxu0 %v624_v8  ;;  %797 = vmatprep.subr.mxu1 %v626_v9  ;;  %v547_v8 = vunpack.c.l.bf16 %v357_v1  ;;  %v349_v9 = vld [vmem:[#allocation3 + $0x1b0] sm:$0xff]  ;;  %v540_v12 = vunpack.c.h.bf16 %v353_v4  ;;  %v542_v13 = vunpack.c.h.bf16 %v354_v5 }
  0x4b   : > { %727 = vmatpush2.msra.mxu0 %v623_v10  ;;  %798 = vmatpush2.msra.mxu1 %v625_v11  ;;  %v549_v10 = vunpack.c.l.bf16 %v358_v2  ;;  %v350_v11 = vld [vmem:[#allocation3 + $0x1b8] sm:$0xff]  ;;  %v532_v18 = vunpack.c.h.bf16 %v349_v9  ;;  %v313_v1 = vld [vmem:[#allocation3 + $0x90] sm:$0xff] }
  0x4c   : > { %728 = vmatprep.subr.mxu0 %v616_v14  ;;  %799 = vmatprep.subr.mxu1 %v618_v15  ;;  %v539_v14 = vunpack.c.l.bf16 %v353_v4  ;;  %v345_v15 = vld [vmem:[#allocation3 + $0x190] sm:$0xff]  ;;  %v534_v19 = vunpack.c.h.bf16 %v350_v11 }
  0x4d   : > { %729 = vmatpush2.msra.mxu0 %v615_v16  ;;  %800 = vmatpush2.msra.mxu1 %v617_v17  ;;  %v541_v16 = vunpack.c.l.bf16 %v354_v5  ;;  %v346_v17 = vld [vmem:[#allocation3 + $0x198] sm:$0xff]  ;;  %v524_v24 = vunpack.c.h.bf16 %v345_v15 }
  0x4e   : > { %730 = vmatprep.subr.mxu0 %v608_v20  ;;  %801 = vmatprep.subr.mxu1 %v610_v21  ;;  %v531_v20 = vunpack.c.l.bf16 %v349_v9  ;;  %v341_v21 = vld [vmem:[#allocation3 + $0x170] sm:$0xff]  ;;  %v526_v25 = vunpack.c.h.bf16 %v346_v17  ;;  %v310_v9 = vld [vmem:[#allocation3 + $0x78] sm:$0xff] }
  0x4f   : > { %731 = vmatpush2.msra.mxu0 %v607_v22  ;;  %802 = vmatpush2.msra.mxu1 %v609_v23  ;;  %v533_v22 = vunpack.c.l.bf16 %v350_v11  ;;  %v342_v23 = vld [vmem:[#allocation3 + $0x178] sm:$0xff]  ;;  %v516_v30 = vunpack.c.h.bf16 %v341_v21 }
  0x50   : > { %732 = vmatprep.subr.mxu0 %v600_v26  ;;  %803 = vmatprep.subr.mxu1 %v602_v27  ;;  %v523_v26 = vunpack.c.l.bf16 %v345_v15  ;;  %v337_v27 = vld [vmem:[#allocation3 + $0x150] sm:$0xff]  ;;  %v518_v31 = vunpack.c.h.bf16 %v342_v23  ;;  %v306_v15 = vld [vmem:[#allocation3 + $0x58] sm:$0xff] }
  0x51   : > { %733 = vmatpush2.msra.mxu0 %v599_v28  ;;  %804 = vmatpush2.msra.mxu1 %v601_v29  ;;  %v525_v28 = vunpack.c.l.bf16 %v346_v17  ;;  %v338_v29 = vld [vmem:[#allocation3 + $0x158] sm:$0xff]  ;;  %v508_v36 = vunpack.c.h.bf16 %v337_v27  ;;  %v454_v17 = vunpack.c.h.bf16 %v310_v9 }
  0x52   : > { %734 = vmatprep.subr.mxu0 %v592_v32  ;;  %805 = vmatprep.subr.mxu1 %v594_v33  ;;  %v515_v32 = vunpack.c.l.bf16 %v341_v21  ;;  %v333_v33 = vld [vmem:[#allocation3 + $0x130] sm:$0xff]  ;;  %v510_v37 = vunpack.c.h.bf16 %v338_v29  ;;  %v302_v21 = vld [vmem:[#allocation3 + $0x38] sm:$0xff] }
  0x53   : > { %735 = vmatpush2.msra.mxu0 %v591_v34  ;;  %806 = vmatpush2.msra.mxu1 %v593_v35  ;;  %v517_v34 = vunpack.c.l.bf16 %v342_v23  ;;  %v334_v35 = vld [vmem:[#allocation3 + $0x138] sm:$0xff]  ;;  %v500_v42 = vunpack.c.h.bf16 %v333_v33  ;;  %v446_v23 = vunpack.c.h.bf16 %v306_v15 }
  0x54   : > { %736 = vmatprep.subr.mxu0 %v584_v38  ;;  %807 = vmatprep.subr.mxu1 %v586_v39  ;;  %v507_v38 = vunpack.c.l.bf16 %v337_v27  ;;  %v329_v39 = vld [vmem:[#allocation3 + $0x110] sm:$0xff]  ;;  %v502_v43 = vunpack.c.h.bf16 %v334_v35  ;;  %v298_v27 = vld [vmem:[#allocation3 + $0x18] sm:$0xff] }
  0x55   : > { %737 = vmatpush2.msra.mxu0 %v583_v40  ;;  %808 = vmatpush2.msra.mxu1 %v585_v41  ;;  %v509_v40 = vunpack.c.l.bf16 %v338_v29  ;;  %v330_v41 = vld [vmem:[#allocation3 + $0x118] sm:$0xff]  ;;  %v492_v48 = vunpack.c.h.bf16 %v329_v39  ;;  %v438_v29 = vunpack.c.h.bf16 %v302_v21 }
  0x56   : > { %738 = vmatprep.subr.mxu0 %v576_v44  ;;  %809 = vmatprep.subr.mxu1 %v578_v45  ;;  %v499_v44 = vunpack.c.l.bf16 %v333_v33  ;;  %v325_v45 = vld [vmem:[#allocation3 + $0xf0] sm:$0xff]  ;;  %v494_v49 = vunpack.c.h.bf16 %v330_v41  ;;  %v422_v33 = vld [vmem:[#allocation3 + $0x3f8] sm:$0xff] }
  0x57   : > { %739 = vmatpush2.msra.mxu0 %v575_v46  ;;  %810 = vmatpush2.msra.mxu1 %v577_v47  ;;  %v501_v46 = vunpack.c.l.bf16 %v334_v35  ;;  %v326_v47 = vld [vmem:[#allocation3 + $0xf8] sm:$0xff]  ;;  %v484_v54 = vunpack.c.h.bf16 %v325_v45  ;;  %v430_v35 = vunpack.c.h.bf16 %v298_v27 }
  0x58   : > { %740 = vmatprep.subr.mxu0 %v568_v50  ;;  %811 = vmatprep.subr.mxu1 %v570_v51  ;;  %v491_v50 = vunpack.c.l.bf16 %v329_v39  ;;  %v321_v51 = vld [vmem:[#allocation3 + $0xd0] sm:$0xff]  ;;  %v486_v55 = vunpack.c.h.bf16 %v326_v47  ;;  %v418_v39 = vld [vmem:[#allocation3 + $0x3d8] sm:$0xff] }
  0x59   : > { %741 = vmatpush2.msra.mxu0 %v567_v52  ;;  %812 = vmatpush2.msra.mxu1 %v569_v53  ;;  %v493_v52 = vunpack.c.l.bf16 %v330_v41  ;;  %v322_v53 = vld [vmem:[#allocation3 + $0xd8] sm:$0xff]  ;;  %v678_v41 = vunpack.c.h.bf16 %v422_v33 }
  0x5a   : > { %742 = vmatprep.subr.mxu0 %v560_v56  ;;  %813 = vmatprep.subr.mxu1 %v562_v57  ;;  %v483_v56 = vunpack.c.l.bf16 %v325_v45  ;;  %v317_v57 = vld [vmem:[#allocation3 + $0xb0] sm:$0xff]  ;;  %v477_v2 = vunpack.c.l.bf16 %v322_v53  ;;  %v414_v45 = vld [vmem:[#allocation3 + $0x3b8] sm:$0xff] }
  0x5b   : > { %743 = vmatpush2.msra.mxu0 %v559_v59  ;;  %814 = vmatpush2.msra.mxu1 %v561_v60  ;;  %v485_v59 = vunpack.c.l.bf16 %v326_v47  ;;  %v318_v60 = vld [vmem:[#allocation3 + $0xb8] sm:$0xff]  ;;  %v468_v4 = vunpack.c.h.bf16 %v317_v57  ;;  %v670_v47 = vunpack.c.h.bf16 %v418_v39 }
  0x5c   : > { %744 = vmatprep.subr.mxu0 %v552_v61  ;;  %815 = vmatprep.subr.mxu1 %v554_v62  ;;  %v476_v61 = vunpack.c.h.bf16 %v321_v51  ;;  %v478_v62 = vunpack.c.h.bf16 %v322_v53  ;;  %v470_v5 = vunpack.c.h.bf16 %v318_v60  ;;  %v662_v53 = vunpack.c.h.bf16 %v414_v45 }
  0x5d   : > { %745 = vmatpush2.msra.mxu0 %v551_v63  ;;  %746 = vmatprep.mubr.f32.mxu0 %v3690_v0  ;;  %v475_v63 = vunpack.c.l.bf16 %v321_v51  ;;  %v410_v51 = vld [vmem:[#allocation3 + $0x398] sm:$0xff] }
  0x5e   : > { %816 = vmatpush2.msra.mxu1 %v553_v3  ;;  %817 = vmatprep.mubr.f32.mxu1 %v3690_v0  ;;  %v314_v3 = vld [vmem:[#allocation3 + $0x98] sm:$0xff] }
  0x5f   : > { %747 = vmatmul.mubr.f32.vlgmr.msra.gmra.mxu0 %v3686_v58  ;;  %818 = vmatmul.mubr.f32.vlgmr.msra.gmra.mxu1 %v3686_v58  ;;  %v462_v11 = vunpack.c.h.bf16 %v314_v3 }
  0x60   : > { %824 = vmatprep.subr.mxu0 %v548_v6  ;;  %895 = vmatprep.subr.mxu1 %v550_v7  ;;  %v467_v6 = vunpack.c.l.bf16 %v317_v57  ;;  %v309_v7 = vld [vmem:[#allocation3 + $0x70] sm:$0xff]  ;;  %v406_v57 = vld [vmem:[#allocation3 + $0x378] sm:$0xff] }
  0x61   : > { %825 = vmatpush1.msra.mxu0 %v547_v8  ;;  %896 = vmatpush1.msra.mxu1 %v549_v10  ;;  %v469_v8 = vunpack.c.l.bf16 %v318_v60  ;;  %v460_v10 = vunpack.c.h.bf16 %v313_v1  ;;  %v654_v60 = vunpack.c.h.bf16 %v410_v51 }
  0x62   : > { %826 = vmatprep.subr.mxu0 %v540_v12  ;;  %897 = vmatprep.subr.mxu1 %v542_v13  ;;  %v459_v12 = vunpack.c.l.bf16 %v313_v1  ;;  %v305_v13 = vld [vmem:[#allocation3 + $0x50] sm:$0xff]  ;;  %v402_v1 = vld [vmem:[#allocation3 + $0x358] sm:$0xff] }
  0x63   : > { %827 = vmatpush1.msra.mxu0 %v539_v14  ;;  %898 = vmatpush1.msra.mxu1 %v541_v16  ;;  %v461_v14 = vunpack.c.l.bf16 %v314_v3  ;;  %v452_v16 = vunpack.c.h.bf16 %v309_v7  ;;  %v646_v3 = vunpack.c.h.bf16 %v406_v57 }
  0x64   : > { %828 = vmatprep.subr.mxu0 %v532_v18  ;;  %899 = vmatprep.subr.mxu1 %v534_v19  ;;  %v451_v18 = vunpack.c.l.bf16 %v309_v7  ;;  %v301_v19 = vld [vmem:[#allocation3 + $0x30] sm:$0xff]  ;;  %v398_v7 = vld [vmem:[#allocation3 + $0x338] sm:$0xff] }
  0x65   : > { %829 = vmatpush1.msra.mxu0 %v531_v20  ;;  %900 = vmatpush1.msra.mxu1 %v533_v22  ;;  %v453_v20 = vunpack.c.l.bf16 %v310_v9  ;;  %v444_v22 = vunpack.c.h.bf16 %v305_v13  ;;  %v638_v9 = vunpack.c.h.bf16 %v402_v1 }
  0x66   : > { %830 = vmatprep.subr.mxu0 %v524_v24  ;;  %901 = vmatprep.subr.mxu1 %v526_v25  ;;  %v443_v24 = vunpack.c.l.bf16 %v305_v13  ;;  %v297_v25 = vld [vmem:[#allocation3 + $0x10] sm:$0xff]  ;;  %v394_v13 = vld [vmem:[#allocation3 + $0x318] sm:$0xff] }
  0x67   : > { %831 = vmatpush1.msra.mxu0 %v523_v26  ;;  %902 = vmatpush1.msra.mxu1 %v525_v28  ;;  %v445_v26 = vunpack.c.l.bf16 %v306_v15  ;;  %v436_v28 = vunpack.c.h.bf16 %v301_v19  ;;  %v630_v15 = vunpack.c.h.bf16 %v398_v7 }
  0x68   : > { %832 = vmatprep.subr.mxu0 %v516_v30  ;;  %903 = vmatprep.subr.mxu1 %v518_v31  ;;  %v435_v30 = vunpack.c.l.bf16 %v301_v19  ;;  %v421_v31 = vld [vmem:[#allocation3 + $0x3f0] sm:$0xff]  ;;  %v390_v19 = vld [vmem:[#allocation3 + $0x2f8] sm:$0xff] }
  0x69   : > { %833 = vmatpush1.msra.mxu0 %v515_v32  ;;  %904 = vmatpush1.msra.mxu1 %v517_v34  ;;  %v437_v32 = vunpack.c.l.bf16 %v302_v21  ;;  %v428_v34 = vunpack.c.h.bf16 %v297_v25  ;;  %v622_v21 = vunpack.c.h.bf16 %v394_v13 }
  0x6a   : > { %834 = vmatprep.subr.mxu0 %v508_v36  ;;  %905 = vmatprep.subr.mxu1 %v510_v37  ;;  %v427_v36 = vunpack.c.l.bf16 %v297_v25  ;;  %v417_v37 = vld [vmem:[#allocation3 + $0x3d0] sm:$0xff]  ;;  %v386_v25 = vld [vmem:[#allocation3 + $0x2d8] sm:$0xff] }
  0x6b   : > { %835 = vmatpush1.msra.mxu0 %v507_v38  ;;  %906 = vmatpush1.msra.mxu1 %v509_v40  ;;  %v429_v38 = vunpack.c.l.bf16 %v298_v27  ;;  %v676_v40 = vunpack.c.h.bf16 %v421_v31  ;;  %v614_v27 = vunpack.c.h.bf16 %v390_v19 }
  0x6c   : > { %836 = vmatprep.subr.mxu0 %v500_v42  ;;  %907 = vmatprep.subr.mxu1 %v502_v43  ;;  %v675_v42 = vunpack.c.l.bf16 %v421_v31  ;;  %v413_v43 = vld [vmem:[#allocation3 + $0x3b0] sm:$0xff]  ;;  %v382_v31 = vld [vmem:[#allocation3 + $0x2b8] sm:$0xff] }
  0x6d   : > { %837 = vmatpush1.msra.mxu0 %v499_v44  ;;  %908 = vmatpush1.msra.mxu1 %v501_v46  ;;  %v677_v44 = vunpack.c.l.bf16 %v422_v33  ;;  %v668_v46 = vunpack.c.h.bf16 %v417_v37  ;;  %v606_v33 = vunpack.c.h.bf16 %v386_v25 }
  0x6e   : > { %838 = vmatprep.subr.mxu0 %v492_v48  ;;  %909 = vmatprep.subr.mxu1 %v494_v49  ;;  %v667_v48 = vunpack.c.l.bf16 %v417_v37  ;;  %v409_v49 = vld [vmem:[#allocation3 + $0x390] sm:$0xff]  ;;  %v378_v37 = vld [vmem:[#allocation3 + $0x298] sm:$0xff] }
  0x6f   : > { %839 = vmatpush1.msra.mxu0 %v491_v50  ;;  %910 = vmatpush1.msra.mxu1 %v493_v52  ;;  %v669_v50 = vunpack.c.l.bf16 %v418_v39  ;;  %v660_v52 = vunpack.c.h.bf16 %v413_v43  ;;  %v598_v39 = vunpack.c.h.bf16 %v382_v31 }
  0x70   : > { %840 = vmatprep.subr.mxu0 %v484_v54  ;;  %911 = vmatprep.subr.mxu1 %v486_v55  ;;  %v659_v54 = vunpack.c.l.bf16 %v413_v43  ;;  %v405_v55 = vld [vmem:[#allocation3 + $0x370] sm:$0xff] }
  0x71   : > { %841 = vmatpush1.msra.mxu0 %v483_v56  ;;  %912 = vmatpush1.msra.mxu1 %v485_v59  ;;  %v661_v56 = vunpack.c.l.bf16 %v414_v45  ;;  %v652_v59 = vunpack.c.h.bf16 %v409_v49  ;;  %v374_v45 = vld [vmem:[#allocation3 + $0x278] sm:$0xff] }
  0x72   : > { %842 = vmatprep.subr.mxu0 %v476_v61  ;;  %913 = vmatprep.subr.mxu1 %v478_v62  ;;  %v651_v61 = vunpack.c.l.bf16 %v409_v49  ;;  %v401_v62 = vld [vmem:[#allocation3 + $0x350] sm:$0xff]  ;;  %v589_v49 = vunpack.c.l.bf16 %v378_v37 }
  0x73   : > { %843 = vmatpush1.msra.mxu0 %v475_v63  ;;  %914 = vmatpush1.msra.mxu1 %v477_v2  ;;  %v653_v63 = vunpack.c.l.bf16 %v410_v51  ;;  %v644_v2 = vunpack.c.h.bf16 %v405_v55 }
  0x74   : > { %844 = vmatprep.subr.mxu0 %v468_v4  ;;  %915 = vmatprep.subr.mxu1 %v470_v5  ;;  %v643_v4 = vunpack.c.l.bf16 %v405_v55  ;;  %v397_v5 = vld [vmem:[#allocation3 + $0x330] sm:$0xff]  ;;  %v581_v55 = vunpack.c.l.bf16 %v374_v45 }
  0x75   : > { %845 = vmatpush1.msra.mxu0 %v467_v6  ;;  %916 = vmatpush1.msra.mxu1 %v469_v8  ;;  %v645_v6 = vunpack.c.l.bf16 %v406_v57  ;;  %v636_v8 = vunpack.c.h.bf16 %v401_v62 }
  0x76   : > { %846 = vmatprep.subr.mxu0 %v460_v10  ;;  %917 = vmatprep.subr.mxu1 %v462_v11  ;;  %v635_v10 = vunpack.c.l.bf16 %v401_v62  ;;  %v393_v11 = vld [vmem:[#allocation3 + $0x310] sm:$0xff] }
  0x77   : > { %847 = vmatpush1.msra.mxu0 %v459_v12  ;;  %918 = vmatpush1.msra.mxu1 %v461_v14  ;;  %v637_v12 = vunpack.c.l.bf16 %v402_v1  ;;  %v628_v14 = vunpack.c.h.bf16 %v397_v5 }
  0x78   : > { %848 = vmatprep.subr.mxu0 %v452_v16  ;;  %919 = vmatprep.subr.mxu1 %v454_v17  ;;  %v627_v16 = vunpack.c.l.bf16 %v397_v5  ;;  %v389_v17 = vld [vmem:[#allocation3 + $0x2f0] sm:$0xff] }
  0x79   : > { %849 = vmatpush1.msra.mxu0 %v451_v18  ;;  %920 = vmatpush1.msra.mxu1 %v453_v20  ;;  %v629_v18 = vunpack.c.l.bf16 %v398_v7  ;;  %v620_v20 = vunpack.c.h.bf16 %v393_v11 }
  0x7a   : > { %850 = vmatprep.subr.mxu0 %v444_v22  ;;  %921 = vmatprep.subr.mxu1 %v446_v23  ;;  %v619_v22 = vunpack.c.l.bf16 %v393_v11  ;;  %v385_v23 = vld [vmem:[#allocation3 + $0x2d0] sm:$0xff] }
  0x7b   : > { %851 = vmatpush1.msra.mxu0 %v443_v24  ;;  %922 = vmatpush1.msra.mxu1 %v445_v26  ;;  %v621_v24 = vunpack.c.l.bf16 %v394_v13  ;;  %v612_v26 = vunpack.c.h.bf16 %v389_v17 }
  0x7c   : > { %852 = vmatprep.subr.mxu0 %v436_v28  ;;  %923 = vmatprep.subr.mxu1 %v438_v29  ;;  %v611_v28 = vunpack.c.l.bf16 %v389_v17  ;;  %v381_v29 = vld [vmem:[#allocation3 + $0x2b0] sm:$0xff] }
  0x7d   : > { %853 = vmatpush1.msra.mxu0 %v435_v30  ;;  %924 = vmatpush1.msra.mxu1 %v437_v32  ;;  %v613_v30 = vunpack.c.l.bf16 %v390_v19  ;;  %v604_v32 = vunpack.c.h.bf16 %v385_v23 }
  0x7e   : > { %854 = vmatprep.subr.mxu0 %v428_v34  ;;  %925 = vmatprep.subr.mxu1 %v430_v35  ;;  %v603_v34 = vunpack.c.l.bf16 %v385_v23  ;;  %v377_v35 = vld [vmem:[#allocation3 + $0x290] sm:$0xff]  ;;  %v984_v23 = vlaneseq }
  0x7f   : > { %855 = vmatpush1.msra.mxu0 %v427_v36  ;;  %926 = vmatpush1.msra.mxu1 %v429_v38  ;;  %v605_v36 = vunpack.c.l.bf16 %v386_v25  ;;  %v596_v38 = vunpack.c.h.bf16 %v381_v29  ;;  %v588_v43 = vunpack.c.h.bf16 %v377_v35  ;;  %v3607_v25 = vmov 0  }
  0x80   : > { %856 = vmatprep.subr.mxu0 %v676_v40  ;;  %927 = vmatprep.subr.mxu1 %v678_v41  ;;  %v595_v40 = vunpack.c.l.bf16 %v381_v29  ;;  %v373_v41 = vld [vmem:[#allocation3 + $0x270] sm:$0xff] }
  0x81   : > { %857 = vmatpush2.msra.mxu0 %v675_v42  ;;  %928 = vmatpush2.msra.mxu1 %v677_v44  ;;  %v597_v42 = vunpack.c.l.bf16 %v382_v31  ;;  %v590_v44 = vunpack.c.h.bf16 %v378_v37  ;;  %v579_v51 = vunpack.c.l.bf16 %v373_v41  ;;  %v3474_v29 = vld [vmem:[%s4897_s2 + $0x7] ss:$8 sm:$0xf]  ;;  %v3470_v37 = vld [vmem:[%s4897_s2 + $0x5] ss:$8 sm:$0xf] }
  0x82   : > { %858 = vmatprep.subr.mxu0 %v668_v46  ;;  %929 = vmatprep.subr.mxu1 %v670_v47  ;;  %v587_v46 = vunpack.c.l.bf16 %v377_v35  ;;  %v369_v47 = vld [vmem:[#allocation3 + $0x250] sm:$0xff] }
  0x83   : > { %859 = vmatpush2.msra.mxu0 %v667_v48  ;;  %930 = vmatpush2.msra.mxu1 %v669_v50  ;;  %v580_v48 = vunpack.c.h.bf16 %v373_v41  ;;  %v370_v50 = vld [vmem:[#allocation3 + $0x258] sm:$0xff]  ;;  %v571_v57 = vunpack.c.l.bf16 %v369_v47 }
  0x84   : > { %860 = vmatprep.subr.mxu0 %v660_v52  ;;  %931 = vmatprep.subr.mxu1 %v662_v53  ;;  %v365_v52 = vld [vmem:[#allocation3 + $0x230] sm:$0xff]  ;;  %v582_v53 = vunpack.c.h.bf16 %v374_v45  ;;  %v573_v62 = vunpack.c.l.bf16 %v370_v50 }
  0x85   : > { %861 = vmatpush2.msra.mxu0 %v659_v54  ;;  %932 = vmatpush2.msra.mxu1 %v661_v56  ;;  %v572_v54 = vunpack.c.h.bf16 %v369_v47  ;;  %v366_v56 = vld [vmem:[#allocation3 + $0x238] sm:$0xff]  ;;  %v563_v1 = vunpack.c.l.bf16 %v365_v52 }
  0x86   : > { %862 = vmatprep.subr.mxu0 %v652_v59  ;;  %933 = vmatprep.subr.mxu1 %v654_v60  ;;  %v361_v59 = vld [vmem:[#allocation3 + $0x210] sm:$0xff]  ;;  %v574_v60 = vunpack.c.h.bf16 %v370_v50 }
  0x87   : > { %863 = vmatpush2.msra.mxu0 %v651_v61  ;;  %934 = vmatpush2.msra.mxu1 %v653_v63  ;;  %v564_v61 = vunpack.c.h.bf16 %v365_v52  ;;  %v362_v63 = vld [vmem:[#allocation3 + $0x218] sm:$0xff]  ;;  %v555_v5 = vunpack.c.l.bf16 %v361_v59 }
  0x88   : > { %864 = vmatprep.subr.mxu0 %v644_v2  ;;  %935 = vmatprep.subr.mxu1 %v646_v3  ;;  %v566_v2 = vunpack.c.h.bf16 %v366_v56  ;;  %v556_v3 = vunpack.c.h.bf16 %v361_v59  ;;  %v557_v7 = vunpack.c.l.bf16 %v362_v63  ;;  %v3473_v47 = vld [vmem:[%s4897_s2 + $0x6] ss:$8 sm:$0xf0]  ;;  %v3469_v52 = vld [vmem:[%s4897_s2 + $0x3] ss:$8 sm:$0xf0] }
  0x89   : > { %865 = vmatpush2.msra.mxu0 %v643_v4  ;;  %936 = vmatpush2.msra.mxu1 %v645_v6  ;;  %v565_v4 = vunpack.c.l.bf16 %v366_v56  ;;  %v558_v6 = vunpack.c.h.bf16 %v362_v63 }
  0x8a   : > { %866 = vmatprep.subr.mxu0 %v636_v8  ;;  %937 = vmatprep.subr.mxu1 %v638_v9 }
  0x8b   : > { %867 = vmatpush2.msra.mxu0 %v635_v10  ;;  %938 = vmatpush2.msra.mxu1 %v637_v12 }
  0x8c   : > { %868 = vmatprep.subr.mxu0 %v628_v14  ;;  %939 = vmatprep.subr.mxu1 %v630_v15  ;;  %v3606_v14 = vmov 0.0  }
  0x8d   : > { %869 = vmatpush2.msra.mxu0 %v627_v16  ;;  %940 = vmatpush2.msra.mxu1 %v629_v18 }
  0x8e   : > { %870 = vmatprep.subr.mxu0 %v620_v20  ;;  %941 = vmatprep.subr.mxu1 %v622_v21 }
  0x8f   : > { %871 = vmatpush2.msra.mxu0 %v619_v22  ;;  %942 = vmatpush2.msra.mxu1 %v621_v24  ;;  %v967_v24 = vld [vmem:[%s4899_s4] sm:$0xf] }
  0x90   : > { %872 = vmatprep.subr.mxu0 %v612_v26  ;;  %943 = vmatprep.subr.mxu1 %v614_v27 }
  0x91   : > { %873 = vmatpush2.msra.mxu0 %v611_v28  ;;  %944 = vmatpush2.msra.mxu1 %v613_v30  ;;  %v3789_v28 = vshrl.u32 %v984_v23, 7  ;;  %v3475_v30 = vld [vmem:[%s4897_s2 + $0x7] ss:$8 sm:$0xf0] }
  0x92   : > { %874 = vmatprep.subr.mxu0 %v604_v32  ;;  %945 = vmatprep.subr.mxu1 %v606_v33  ;;  %v3801_v33 = vand.u32 127, %v984_v23 }
  0x93   : > { %875 = vmatpush2.msra.mxu0 %v603_v34  ;;  %946 = vmatpush2.msra.mxu1 %v605_v36  ;;  %v3804_v34 = vsub.s32 0, %v3789_v28  ;;  %v3807_v35 = vsub.s32 1, %v3789_v28  ;;  %v3809_v36 = vor.u32 %v3475_v30, %v3474_v29 }
  0x94   : > { %876 = vmatprep.subr.mxu0 %v596_v38  ;;  %947 = vmatprep.subr.mxu1 %v598_v39  ;;  %v3471_v38 = vld [vmem:[%s4897_s2 + $0x5] ss:$8 sm:$0xf0]  ;;  %vm1581_vm0 = vcmp.lt.s32.totalorder %v3801_v33, 96  ;;  %vm1385_vm1 = vcmp.lt.s32.totalorder %v3801_v33, 127  ;;  %vm1691_vm2 = vcmp.lt.s32.totalorder %v3801_v33, 95 }
  0x95   : > { %877 = vmatpush2.msra.mxu0 %v595_v40  ;;  %948 = vmatpush2.msra.mxu1 %v597_v42  ;;  %v3821_v41 = vor.u32 %v3471_v38, %v3470_v37  ;;  %v3476_v42 = vld [vmem:[%s4897_s2 + $0x40] ss:$8 sm:$0xf]  ;;  %v1602_v45 = vrot.slane %v3809_v36, %v3807_v35  ;;  %vm1495_vm3 = vcmp.lt.s32.totalorder %v3801_v33, 97  ;;  %vm1267_vm4 = vcmp.lt.s32.totalorder %v3801_v33, 1 }
  0x96   : > { %878 = vmatprep.subr.mxu0 %v588_v43  ;;  %949 = vmatprep.subr.mxu1 %v590_v44  ;;  %v3477_v43 = vld [vmem:[%s4897_s2 + $0x40] ss:$8 sm:$0xf0]  ;;  %v1598_v44 = vrot.slane %v3809_v36, %v3804_v34  ;;  %vm1071_vm6 = vcmp.lt.s32.totalorder %v3801_v33, 32  ;;  %vm1181_vm7 = vcmp.lt.s32.totalorder %v3801_v33, 31  ;;  %vm986_vm8 = vcmp.lt.s32.totalorder %v3801_v33, 33 }
  0x97   : > { %879 = vmatpush2.msra.mxu0 %v587_v46  ;;  %888 = vmatprep.mubr.f32.mxu0 %v3690_v0  ;;  %v3472_v46 = vld [vmem:[%s4897_s2 + $0x6] ss:$8 sm:$0xf]  ;;  %v3842_v50 = vor.u32 %v3477_v43, %v3476_v42  ;;  %v1406_v59 = vrot.slane %v3821_v41, %v3807_v35 }
  0x98   : > { %880 = vmatprep.subr.mxu0 %v580_v48  ;;  %950 = vmatpush2.msra.mxu1 %v589_v49 }
  0x99   : > { %881 = vmatpush2.msra.mxu0 %v579_v51  ;;  %951 = vmatprep.subr.mxu1 %v582_v53  ;;  %v3468_v51 = vld [vmem:[%s4897_s2 + $0x3] ss:$8 sm:$0xf] }
  0x9a   : > { %882 = vmatprep.subr.mxu0 %v572_v54  ;;  %952 = vmatpush2.msra.mxu1 %v581_v55  ;;  %v1402_v55 = vrot.slane %v3821_v41, %v3804_v34 }
  0x9b   : > { %883 = vmatpush2.msra.mxu0 %v571_v57  ;;  %953 = vmatprep.subr.mxu1 %v574_v60  ;;  %v3861_v60 = vor.u32 %v3473_v47, %v3472_v46  ;;  %v3464_v46 = vld [vmem:[%s4897_s2 + $0x1] ss:$8 sm:$0xf] }
  0x9c   : > { %884 = vmatprep.subr.mxu0 %v564_v61  ;;  %954 = vmatpush2.msra.mxu1 %v573_v62  ;;  %v3864_v61 = vor.u32 %v3469_v52, %v3468_v51  ;;  %v3465_v47 = vld [vmem:[%s4897_s2 + $0x1] ss:$8 sm:$0xf0] }
  0x9d   : > { %885 = vmatpush2.msra.mxu0 %v563_v1  ;;  %955 = vmatprep.subr.mxu1 %v566_v2 }
  0x9e   : > { %886 = vmatprep.subr.mxu0 %v556_v3  ;;  %956 = vmatpush2.msra.mxu1 %v565_v4  ;;  %v1708_v3 = vrot.slane %v3842_v50, %v3804_v34  ;;  %v3871_v4 = vsub.s32 2, %v3789_v28 }
  0x9f   : > { %887 = vmatpush2.msra.mxu0 %v555_v5  ;;  %957 = vmatprep.subr.mxu1 %v558_v6 }
  0xa0   : > { %889 = vmatmul.mubr.f32.vlgmr.msra.gmra.mxu0 %v3686_v58  ;;  %958 = vmatpush2.msra.mxu1 %v557_v7  ;;  %v1712_v7 = vrot.slane %v3842_v50, %v3807_v35  ;;  %v1410_v52 = vrot.slane %v3821_v41, %v3871_v4 }
  0xa1   : > { %959 = vmatprep.mubr.f32.mxu1 %v3690_v0  ;;  %1899 = vmatprep.mubr.f32.mxu0 %v3606_v14 }
  0xa2   : > { %960 = vmatmul.mubr.f32.vlgmr.msra.gmra.mxu1 %v3686_v58  ;;  %3551 = vset.pattern.permute.xlu0 %v3607_v25  ;;  %v1606_v25 = vrot.slane %v3809_v36, %v3871_v4 }
  0xa3   : > { %1970 = vmatprep.mubr.f32.mxu1 %v3606_v14 }
 0x11f   : > { %v748_v8 = vpop.f32.mrf.mxu0  ;;  %v819_v9 = vpop.f32.mrf.mxu1 }
 0x120   : > { %1361 = vst [vmem:[#allocation2 + $0x128] sm:$0xf] %v748_v8  ;;  %1363 = vst [vmem:[#allocation2 + $0x8] sm:$0xf] %v819_v9  ;;  %1679 = vrot.lane.b32.xlu1 %v819_v9, %s3598_s15  ;;  %1569 = vrot.lane.b32.xlu0 %v819_v9, %s3599_s16 }
 0x121   : > { %v750_v10 = vpop.f32.mrf.mxu0  ;;  %v821_v11 = vpop.f32.mrf.mxu1 }
 0x122   : > { %1362 = vst [vmem:[#allocation2 + $0x110] sm:$0xf] %v750_v10  ;;  %1364 = vst [vmem:[#allocation2 + $0x98] sm:$0xf] %v821_v11 }
 0x124   : > { %1675 = vrot.lane.b32.xlu1 %v748_v8, %s3598_s15  ;;  %1565 = vrot.lane.b32.xlu0 %v748_v8, %s3599_s16 }
 0x128   : > { %1373 = vrot.lane.b32.xlu1 %v819_v9, %s3600_s17  ;;  %1369 = vrot.lane.b32.xlu0 %v748_v8, %s3600_s17 }
 0x12c   : > { %1483 = vrot.lane.b32.xlu1 %v819_v9, %s3601_s18  ;;  %1251 = vrot.lane.b32.xlu0 %v748_v8, %s3602_s19 }
 0x130   : > { %1479 = vrot.lane.b32.xlu1 %v748_v8, %s3601_s18  ;;  %1059 = vrot.lane.b32.xlu0 %v819_v9, %s3603_s20 }
 0x134   : > { %1055 = vrot.lane.b32.xlu1 %v748_v8, %s3603_s20  ;;  %1169 = vrot.lane.b32.xlu0 %v819_v9, %s3604_s21 }
 0x138   : > { %1165 = vrot.lane.b32.xlu1 %v748_v8, %s3604_s21  ;;  %972 = vrot.lane.b32.xlu0 %v819_v9, %s3605_s22 }
 0x13c   : > { %968 = vrot.lane.b32.xlu1 %v748_v8, %s3605_s22  ;;  %1567 = vrot.lane.b32.xlu0 %v750_v10, %s3599_s16 }
 0x140   : > { %1255 = vrot.lane.b32.xlu1 %v819_v9, %s3602_s19  ;;  %1371 = vrot.lane.b32.xlu0 %v750_v10, %s3600_s17 }
 0x144   : > { %1677 = vrot.lane.b32.xlu1 %v750_v10, %s3598_s15  ;;  %1481 = vrot.lane.b32.xlu0 %v750_v10, %s3601_s18 }
 0x148   : > { %1253 = vrot.lane.b32.xlu1 %v750_v10, %s3602_s19  ;;  %1571 = vrot.lane.b32.xlu0 %v821_v11, %s3599_s16 }
 0x14c   : > { %1375 = vrot.lane.b32.xlu1 %v821_v11, %s3600_s17  ;;  %1681 = vrot.lane.b32.xlu0 %v821_v11, %s3598_s15 }
 0x150   : > { %1485 = vrot.lane.b32.xlu1 %v821_v11, %s3601_s18  ;;  %1057 = vrot.lane.b32.xlu0 %v750_v10, %s3603_s20 }
 0x154   : > { %1061 = vrot.lane.b32.xlu1 %v821_v11, %s3603_s20  ;;  %1167 = vrot.lane.b32.xlu0 %v750_v10, %s3604_s21 }
 0x158   : > { %1171 = vrot.lane.b32.xlu1 %v821_v11, %s3604_s21  ;;  %970 = vrot.lane.b32.xlu0 %v750_v10, %s3605_s22  ;;  %v1512_v10 = vrot.slane %v3861_v60, %v3804_v34 }
 0x15c   : > { %974 = vrot.lane.b32.xlu1 %v821_v11, %s3605_s22  ;;  %1257 = vrot.lane.b32.xlu0 %v821_v11, %s3602_s19  ;;  %v1516_v11 = vrot.slane %v3861_v60, %v3807_v35 }
 0x160   : > { %v890_v58 = vpop.f32.mrf.mxu0 }
 0x161   : > { %1365 = vst [vmem:[#allocation2 + $0xa8] sm:$0xf] %v890_v58  ;;  %1377 = vrot.lane.b32.xlu0 %v890_v58, %s3600_s17  ;;  %1573 = vrot.lane.b32.xlu1 %v890_v58, %s3599_s16 }
 0x162   : > { %v892_v0 = vpop.f32.mrf.mxu0  ;;  %v961_v12 = vpop.f32.mrf.mxu1 }
 0x163   : > { %1366 = vst [vmem:[#allocation2 + $0x90] sm:$0xf] %v892_v0  ;;  %1367 = vst [vmem:[#allocation2 + $0xe0] sm:$0xf] %v961_v12 }
 0x164   : > { %v963_v13 = vpop.f32.mrf.mxu1 }
 0x165   : > { %1487 = vrot.lane.b32.xlu0 %v890_v58, %s3601_s18  ;;  %1683 = vrot.lane.b32.xlu1 %v890_v58, %s3598_s15  ;;  %1368 = vst [vmem:[#allocation2 + $0x88] sm:$0xf] %v963_v13 }
 0x169   : > { %1259 = vrot.lane.b32.xlu0 %v890_v58, %s3602_s19  ;;  %1577 = vrot.lane.b32.xlu1 %v961_v12, %s3599_s16 }
 0x16d   : > { %1063 = vrot.lane.b32.xlu0 %v890_v58, %s3603_s20  ;;  %1687 = vrot.lane.b32.xlu1 %v961_v12, %s3598_s15 }
 0x171   : > { %1173 = vrot.lane.b32.xlu0 %v890_v58, %s3604_s21  ;;  %1381 = vrot.lane.b32.xlu1 %v961_v12, %s3600_s17 }
 0x175   : > { %976 = vrot.lane.b32.xlu0 %v890_v58, %s3605_s22  ;;  %1491 = vrot.lane.b32.xlu1 %v961_v12, %s3601_s18  ;;  %v1288_v58 = vrot.slane %v3864_v61, %v3807_v35 }
 0x179   : > { %1263 = vrot.lane.b32.xlu0 %v961_v12, %s3602_s19  ;;  %1067 = vrot.lane.b32.xlu1 %v961_v12, %s3603_s20 }
 0x17d   : > { %1265 = vrot.lane.b32.xlu0 %v963_v13, %s3602_s19  ;;  %1069 = vrot.lane.b32.xlu1 %v963_v13, %s3603_s20 }
 0x181   : > { %1179 = vrot.lane.b32.xlu0 %v963_v13, %s3604_s21  ;;  %982 = vrot.lane.b32.xlu1 %v963_v13, %s3605_s22 }
 0x185   : > { %1261 = vrot.lane.b32.xlu1 %v892_v0, %s3602_s19  ;;  %1575 = vrot.lane.b32.xlu0 %v892_v0, %s3599_s16 }
 0x189   : > { %1689 = vrot.lane.b32.xlu1 %v963_v13, %s3598_s15  ;;  %1685 = vrot.lane.b32.xlu0 %v892_v0, %s3598_s15 }
 0x18d   : > { %1065 = vrot.lane.b32.xlu1 %v892_v0, %s3603_s20  ;;  %1379 = vrot.lane.b32.xlu0 %v892_v0, %s3600_s17 }
 0x191   : > { %1175 = vrot.lane.b32.xlu1 %v892_v0, %s3604_s21  ;;  %1489 = vrot.lane.b32.xlu0 %v892_v0, %s3601_s18 }
 0x192   : > { %v3760_v15 = vpop.permute.xlu1 %1679  ;;  %v3762_v16 = vpop.permute.xlu0 %1569 }
 0x195   : > { %1493 = vrot.lane.b32.xlu1 %v963_v13, %s3601_s18  ;;  %1579 = vrot.lane.b32.xlu0 %v963_v13, %s3599_s16 }
 0x196   : > { %v3766_v17 = vpop.permute.xlu1 %1675  ;;  %v3768_v18 = vpop.permute.xlu0 %1565 }
 0x199   : > { %978 = vrot.lane.b32.xlu1 %v892_v0, %s3605_s22  ;;  %1383 = vrot.lane.b32.xlu0 %v963_v13, %s3600_s17 }
 0x19a   : > { %v3772_v19 = vpop.permute.xlu1 %1373  ;;  %v3774_v20 = vpop.permute.xlu0 %1369 }
 0x19d   : > { %980 = vrot.lane.b32.xlu1 %v961_v12, %s3605_s22  ;;  %1177 = vrot.lane.b32.xlu0 %v961_v12, %s3604_s21 }
 0x19e   : > { %v3778_v21 = vpop.permute.xlu1 %1483  ;;  %v3780_v22 = vpop.permute.xlu0 %1251 }
 0x1a1   : > { %1803 = vperm.xlu0 %3551, %v967_v24   ;;  %v1292_v24 = vrot.slane %v3864_v61, %v3871_v4 }
 0x1a2   : > { %v3785_v26 = vpop.permute.xlu1 %1479  ;;  %v3787_v27 = vpop.permute.xlu0 %1059 }
 0x1a6   : > { %v3797_v31 = vpop.permute.xlu1 %1055  ;;  %v3799_v32 = vpop.permute.xlu0 %1169 }
 0x1aa   : > { %v3817_v39 = vpop.permute.xlu1 %1165  ;;  %v3819_v40 = vpop.permute.xlu0 %972 }
 0x1ae   : > { %v3840_v48 = vpop.permute.xlu1 %968  ;;  %v1568_v49 = vpop.permute.xlu0 %1567 }
 0x1af   : > { %v1587_v53 = vsel %vm1581_vm0, %v1568_v49, %v3762_v16  ;;  %v1588_v54 = vsel %vm1581_vm0, %v3768_v18, %v1568_v49 }
 0x1b0   : > { %v1635_v56 = vmul.f32 %v1598_v44, %v1588_v54  ;;  %v1636_v57 = vmul.f32 %v1602_v45, %v1587_v53 }
 0x1b2   : > { %v1651_v62 = vrot.slane %v1635_v56, 4  ;;  %v1652_v63 = vrot.slane %v1636_v57, 4  ;;  %v3866_v1 = vpop.permute.xlu1 %1255  ;;  %v1372_v2 = vpop.permute.xlu0 %1371  ;;  %v1716_v56 = vrot.slane %v3842_v50, %v3871_v4  ;;  %v3466_v57 = vld [vmem:[%s4897_s2 + $0x2] ss:$8 sm:$0xf] }
 0x1b3   : > { %v1391_v5 = vsel %vm1385_vm1, %v1372_v2, %v3772_v19  ;;  %v1392_v6 = vsel %vm1385_vm1, %v3774_v20, %v1372_v2 }
 0x1b4   : > { %1667 = vst [vmem:[#allocation2 + $0xc0] sm:$0xf0] %v1651_v62  ;;  %1668 = vst [vmem:[#allocation2 + $0x118] sm:$0xf0] %v1652_v63  ;;  %v1439_v8 = vmul.f32 %v1402_v55, %v1392_v6  ;;  %v1440_v9 = vmul.f32 %v1406_v59, %v1391_v5  ;;  %v3936_v5 = vsub.s32 3, %v3789_v28 }
 0x1b5   : > { %v3467_v59 = vld [vmem:[%s4897_s2 + $0x2] ss:$8 sm:$0xf0] }
 0x1b6   : > { %v1455_v0 = vrot.slane %v1439_v8, 4  ;;  %v1456_v12 = vrot.slane %v1440_v9, 4  ;;  %v1678_v13 = vpop.permute.xlu1 %1677  ;;  %v1482_v23 = vpop.permute.xlu0 %1481 }
 0x1b7   : > { %v1697_v29 = vsel %vm1691_vm2, %v1678_v13, %v3760_v15  ;;  %v1698_v30 = vsel %vm1691_vm2, %v3766_v17, %v1678_v13  ;;  %v1501_v37 = vsel %vm1495_vm3, %v1482_v23, %v3778_v21  ;;  %v1502_v38 = vsel %vm1495_vm3, %v3785_v26, %v1482_v23 }
 0x1b8   : > { %1471 = vst [vmem:[#allocation2 + $0x128] sm:$0xf0] %v1455_v0  ;;  %1472 = vst [vmem:[#allocation2 + $0x110] sm:$0xf0] %v1456_v12  ;;  %v1745_v42 = vmul.f32 %v1708_v3, %v1698_v30  ;;  %v1746_v43 = vmul.f32 %v1712_v7, %v1697_v29  ;;  %v1549_v44 = vmul.f32 %v1512_v10, %v1502_v38 }
 0x1b9   : > { %v1550_v45 = vmul.f32 %v1516_v11, %v1501_v37  ;;  %v3933_v3 = vor.u32 %v3465_v47, %v3464_v46  ;;  %v3942_v10 = vor.u32 %v3467_v59, %v3466_v57  ;;  %v1520_v0 = vrot.slane %v3861_v60, %v3871_v4 }
 0x1ba   : > { %1753 = vst [vmem:[#allocation2 + $0x58] sm:$0xf] %v1745_v42  ;;  %1754 = vst [vmem:[#allocation2 + $0x78] sm:$0xf] %v1746_v43  ;;  %v1254_v49 = vpop.permute.xlu1 %1253  ;;  %v3911_v51 = vpop.permute.xlu0 %1571 }
 0x1bb   : > { %1557 = vst [vmem:[#allocation2 + $0xc0] sm:$0xf] %v1549_v44  ;;  %1558 = vst [vmem:[#allocation2 + $0x118] sm:$0xf] %v1550_v45  ;;  %v1273_v53 = vsel %vm1267_vm4, %v1254_v49, %v3866_v1  ;;  %v1274_v54 = vsel %vm1267_vm4, %v3780_v22, %v1254_v49  ;;  %v1586_v55 = vsel %vm1581_vm0, %v3762_v16, %v3911_v51 }
 0x1bc   : > { %v1322_v62 = vmul.f32 %v1288_v58, %v1274_v54  ;;  %v1323_v63 = vmul.f32 %v1292_v24, %v1273_v53  ;;  %v1637_v2 = vmul.f32 %v1606_v25, %v1586_v55  ;;  %v1092_v23 = vrot.slane %v3933_v3, %v3807_v35  ;;  %v996_v24 = vld [vmem:[%s4897_s2] ss:$8 sm:$0xf0] }
 0x1bd   : > { %v1100_v42 = vrot.slane %v3933_v3, %v3936_v5  ;;  %v1202_v43 = vrot.slane %v3942_v10, %v3807_v35 }
 0x1be   : > { %v1338_v16 = vrot.slane %v1322_v62, 4  ;;  %v1339_v6 = vrot.slane %v1323_v63, 4  ;;  %v1653_v7 = vrot.slane %v1637_v2, 4  ;;  %v3938_v8 = vpop.permute.xlu1 %1375  ;;  %v3940_v9 = vpop.permute.xlu0 %1681 }
 0x1bf   : > { %v1390_v11 = vsel %vm1385_vm1, %v3772_v19, %v3938_v8  ;;  %v1696_v58 = vsel %vm1691_vm2, %v3760_v15, %v3940_v9  ;;  %v1096_v19 = vrot.slane %v3933_v3, %v3871_v4  ;;  %v995_v15 = vld [vmem:[%s4897_s2] ss:$8 sm:$0xf] }
 0x1c0   : > { %1354 = vst [vmem:[#allocation2 + $0x108] sm:$0xf0] %v1338_v16  ;;  %1355 = vst [vmem:[#allocation2 + $0x138] sm:$0xf0] %v1339_v6  ;;  %v1441_v12 = vmul.f32 %v1410_v52, %v1390_v11  ;;  %v1747_v13 = vmul.f32 %v1716_v56, %v1696_v58  ;;  %v3984_v49 = vor.u32 %v996_v24, %v995_v15  ;;  %v1778_v56 = vld [vmem:[#allocation2 + $0x110] sm:$0xff]  ;;  %v1777_v2 = vld [vmem:[#allocation2 + $0x128] sm:$0xff] }
 0x1c1   : > { %1669 = vst [vmem:[#allocation2 + $0xd8] sm:$0xf0] %v1653_v7  ;;  %v1794_v25 = vld [vmem:[#allocation2 + $0x78] sm:$0xf]  ;;  %v1210_v16 = vrot.slane %v3942_v10, %v3936_v5 }
 0x1c2   : > { %v1793_v29 = vld [vmem:[#allocation2 + $0x58] sm:$0xf]  ;;  %v1457_v30 = vrot.slane %v1441_v12, 4  ;;  %1755 = vst [vmem:[#allocation2 + $0x30] sm:$0xf] %v1747_v13  ;;  %3478 = vmatprep.subr.msk.mxu0 %vm1810_vm5, %v1794_v25  ;;  %v3966_v37 = vpop.permute.xlu1 %1485  ;;  %v1058_v38 = vpop.permute.xlu0 %1057  ;;  %v1785_v55 = vld [vmem:[#allocation2 + $0xc0] sm:$0xff]  ;;  %v1006_v58 = vrot.slane %v3984_v49, %v3807_v35 }
 0x1c3   : > { %v1500_v44 = vsel %vm1495_vm3, %v3778_v21, %v3966_v37  ;;  %v1077_v45 = vsel %vm1071_vm6, %v1058_v38, %v3787_v27  ;;  %v1078_v46 = vsel %vm1071_vm6, %v3797_v31, %v1058_v38  ;;  %3479 = vmatpush1.msk.msra.mxu0 %vm1810_vm5, %v1793_v29  ;;  %v1786_v47 = vld [vmem:[#allocation2 + $0x118] sm:$0xff]  ;;  %v1206_v21 = vrot.slane %v3942_v10, %v3871_v4 }
 0x1c4   : > { %1473 = vst [vmem:[#allocation2 + $0x8] sm:$0xf0] %v1457_v30  ;;  %v1551_v52 = vmul.f32 %v1520_v0, %v1500_v44  ;;  %v1126_v53 = vmul.f32 %v1092_v23, %v1078_v46  ;;  %v1127_v54 = vmul.f32 %v1096_v19, %v1077_v45  ;;  %1859 = vmatprep.subr.mxu0 %v1786_v47 }
 0x1c5   : > { %1860 = vmatpush1.msra.mxu0 %v1785_v55  ;;  %v1014_v30 = vrot.slane %v3984_v49, %v3936_v5  ;;  %v1296_v44 = vrot.slane %v3864_v61, %v3936_v5  ;;  %v1414_v55 = vrot.slane %v3821_v41, %v3936_v5 }
 0x1c6   : > { %1559 = vst [vmem:[#allocation2 + $0xd8] sm:$0xf] %v1551_v52  ;;  %v1142_v57 = vrot.slane %v1126_v53, 4  ;;  %v1143_v59 = vrot.slane %v1127_v54, 4  ;;  %v3988_v62 = vpop.permute.xlu1 %1061  ;;  %v1168_v63 = vpop.permute.xlu0 %1167  ;;  %1861 = vmatprep.subr.mxu0 %v1778_v56 }
 0x1c7   : > { %v1076_v6 = vsel %vm1071_vm6, %v3787_v27, %v3988_v62  ;;  %v1187_v7 = vsel %vm1181_vm7, %v1168_v63, %v3799_v32  ;;  %v1188_v11 = vsel %vm1181_vm7, %v3817_v39, %v1168_v63  ;;  %1862 = vmatpush1.msra.mxu0 %v1777_v2  ;;  %v1010_v27 = vrot.slane %v3984_v49, %v3871_v4 }
 0x1c8   : > { %1158 = vst [vmem:[#allocation2 + $0xd0] sm:$0xf0] %v1142_v57  ;;  %1159 = vst [vmem:[#allocation2 + $0x10] sm:$0xf0] %v1143_v59  ;;  %v1128_v0 = vmul.f32 %v1100_v42, %v1076_v6  ;;  %v1236_v12 = vmul.f32 %v1202_v43, %v1188_v11  ;;  %v1237_v13 = vmul.f32 %v1206_v21, %v1187_v7  ;;  %v4053_v7 = vsub.s32 4, %v3789_v28 }
 0x1c9   : > { %v1610_v21 = vrot.slane %v3809_v36, %v3936_v5  ;;  %v1524_v63 = vrot.slane %v3861_v60, %v3936_v5  ;;  %v1720_v6 = vrot.slane %v3842_v50, %v3936_v5 }
 0x1ca   : > { %v1144_v23 = vrot.slane %v1128_v0, 4  ;;  %1244 = vst [vmem:[#allocation2 + $0x108] sm:$0xf] %v1236_v12  ;;  %1245 = vst [vmem:[#allocation2 + $0x138] sm:$0xf] %v1237_v13  ;;  %v4007_v19 = vpop.permute.xlu1 %1171  ;;  %v971_v15 = vpop.permute.xlu0 %970 }
 0x1cb   : > { %v1186_v24 = vsel %vm1181_vm7, %v3799_v32, %v4007_v19  ;;  %v992_v25 = vsel %vm986_vm8, %v971_v15, %v3819_v40  ;;  %v993_v29 = vsel %vm986_vm8, %v3840_v48, %v971_v15 }
 0x1cc   : > { %1160 = vst [vmem:[#allocation2 + $0x48] sm:$0xf0] %v1144_v23  ;;  %v1238_v38 = vmul.f32 %v1210_v16, %v1186_v24  ;;  %v1040_v42 = vmul.f32 %v1006_v58, %v993_v29  ;;  %v1041_v43 = vmul.f32 %v1010_v27, %v992_v25  ;;  %v1300_v23 = vrot.slane %v3864_v61, %v4053_v7 }
 0x1ce   : > { %1246 = vst [vmem:[#allocation2 + $0xf0] sm:$0xf] %v1238_v38  ;;  %1048 = vst [vmem:[#allocation2 + $0xd0] sm:$0xf] %v1040_v42  ;;  %v4023_v32 = vpop.permute.xlu1 %974  ;;  %v1258_v45 = vpop.permute.xlu0 %1257 }
 0x1cf   : > { %1049 = vst [vmem:[#allocation2 + $0x10] sm:$0xf] %v1041_v43  ;;  %v991_v46 = vsel %vm986_vm8, %v3819_v40, %v4023_v32  ;;  %v1272_v47 = vsel %vm1267_vm4, %v3866_v1, %v1258_v45 }
 0x1d0   : > { %v1042_v52 = vmul.f32 %v1014_v30, %v991_v46  ;;  %v1324_v53 = vmul.f32 %v1296_v44, %v1272_v47  ;;  %v1214_v44 = vrot.slane %v3942_v10, %v4053_v7 }
 0x1d1   : > { %v1770_v54 = vld [vmem:[#allocation2 + $0x108] sm:$0xff] }
 0x1d2   : > { %1050 = vst [vmem:[#allocation2 + $0x48] sm:$0xf] %v1042_v52  ;;  %v1340_v56 = vrot.slane %v1324_v53, 4  ;;  %1863 = vmatprep.subr.mxu0 %v1770_v54  ;;  %v1795_v53 = vld [vmem:[#allocation2 + $0x30] sm:$0xf] }
 0x1d3   : > { %v4036_v57 = vpop.permute.xlu0 %1377  ;;  %v4038_v59 = vpop.permute.xlu1 %1573 }
 0x1d4   : > { %1356 = vst [vmem:[#allocation2 + $0xf0] sm:$0xf0] %v1340_v56  ;;  %v1389_v40 = vsel %vm1385_vm1, %v3938_v8, %v4036_v57  ;;  %v1585_v1 = vsel %vm1581_vm0, %v3911_v51, %v4038_v59  ;;  %v1018_v56 = vrot.slane %v3984_v49, %v4053_v7 }
 0x1d5   : > { %v1442_v2 = vmul.f32 %v1414_v55, %v1389_v40  ;;  %v1638_v16 = vmul.f32 %v1610_v21, %v1585_v1  ;;  %v1787_v21 = vld [vmem:[#allocation2 + $0xd8] sm:$0xff] }
 0x1d7   : > { %v1458_v11 = vrot.slane %v1442_v2, 4  ;;  %v1654_v58 = vrot.slane %v1638_v16, 4  ;;  %v4055_v0 = vpop.permute.xlu0 %1487  ;;  %v4057_v8 = vpop.permute.xlu1 %1683  ;;  %v1779_v2 = vld [vmem:[#allocation2 + $0x8] sm:$0xff] }
 0x1d8   : > { %v1499_v51 = vsel %vm1495_vm3, %v3966_v37, %v4055_v0  ;;  %v1695_v12 = vsel %vm1691_vm2, %v3940_v9, %v4057_v8  ;;  %v1104_v9 = vrot.slane %v3933_v3, %v4053_v7 }
 0x1d9   : > { %1474 = vst [vmem:[#allocation2 + $0x98] sm:$0xf0] %v1458_v11  ;;  %1670 = vst [vmem:[#allocation2 + $0xa0] sm:$0xf0] %v1654_v58  ;;  %v1552_v13 = vmul.f32 %v1524_v63, %v1499_v51  ;;  %v1748_v27 = vmul.f32 %v1720_v6, %v1695_v12  ;;  %v1771_v11 = vld [vmem:[#allocation2 + $0x138] sm:$0xff]  ;;  %v4109_v58 = vsub.s32 7, %v3789_v28 }
 0x1da   : > { %v1764_v51 = vld [vmem:[#allocation2 + $0x48] sm:$0xff]  ;;  %v4114_v12 = vld [vmem:[%s4898_s3] sm:$0xf] }
 0x1db   : > { %1560 = vst [vmem:[#allocation2 + $0xa0] sm:$0xf] %v1552_v13  ;;  %1756 = vst [vmem:[#allocation2 + $0x40] sm:$0xf] %v1748_v27  ;;  %v4069_v15 = vpop.permute.xlu0 %1259  ;;  %v4071_v24 = vpop.permute.xlu1 %1577  ;;  %v1772_v16 = vld [vmem:[#allocation2 + $0xf0] sm:$0xff] }
 0x1dc   : > { %v1271_v37 = vsel %vm1267_vm4, %v1258_v45, %v4069_v15  ;;  %v1763_v27 = vld [vmem:[#allocation2 + $0x10] sm:$0xff] }
 0x1dd   : > { %v1325_v25 = vmul.f32 %v1300_v23, %v1271_v37  ;;  %v1284_v23 = vrot.slane %v3864_v61, %v3804_v34  ;;  %v1312_v37 = vrot.slane %v3864_v61, %v4109_v58 }
 0x1df   : > { %v1341_v29 = vrot.slane %v1325_v25, 4  ;;  %v4078_v30 = vpop.permute.xlu0 %1063  ;;  %v4080_v38 = vpop.permute.xlu1 %1687  ;;  %v1088_v25 = vrot.slane %v3933_v3, %v3804_v34 }
 0x1e0   : > { %v1075_v42 = vsel %vm1071_vm6, %v3988_v62, %v4078_v30  ;;  %v1780_v40 = vld [vmem:[#allocation2 + $0x98] sm:$0xff] }
 0x1e1   : > { %1357 = vst [vmem:[#allocation2 + $0x18] sm:$0xf0] %v1341_v29  ;;  %v1129_v43 = vmul.f32 %v1104_v9, %v1075_v42  ;;  %v1116_v9 = vrot.slane %v3933_v3, %v4109_v58 }
 0x1e2   : > { %v1796_v45 = vld [vmem:[#allocation2 + $0x40] sm:$0xf] }
 0x1e3   : > { %v1145_v46 = vrot.slane %v1129_v43, 4  ;;  %v4088_v47 = vpop.permute.xlu0 %1173  ;;  %3481 = vmatprep.subr.msk.mxu1 %vm1810_vm5, %v1796_v45  ;;  %v4091_v52 = vpop.permute.xlu1 %1381  ;;  %v1788_v62 = vld [vmem:[#allocation2 + $0xa0] sm:$0xff]  ;;  %v1198_v43 = vrot.slane %v3942_v10, %v3804_v34  ;;  %v4134_v45 = vsub.s32 5, %v3789_v28 }
 0x1e4   : > { %v1185_v54 = vsel %vm1181_vm7, %v4007_v19, %v4088_v47  ;;  %3482 = vmatpush1.msk.msra.mxu1 %vm1810_vm5, %v1795_v53 }
 0x1e5   : > { %1161 = vst [vmem:[#allocation2 + $0x120] sm:$0xf0] %v1145_v46  ;;  %v1239_v55 = vmul.f32 %v1214_v44, %v1185_v54  ;;  %1930 = vmatprep.subr.mxu1 %v1788_v62  ;;  %v1002_v44 = vrot.slane %v3984_v49, %v3804_v34  ;;  %v4137_v46 = vsub.s32 6, %v3789_v28 }
 0x1e6   : > { %1931 = vmatpush1.msra.mxu1 %v1787_v21 }
 0x1e7   : > { %1247 = vst [vmem:[#allocation2 + $0x18] sm:$0xf] %v1239_v55  ;;  %v4100_v1 = vpop.permute.xlu0 %976  ;;  %1932 = vmatprep.subr.mxu1 %v1780_v40  ;;  %v4102_v63 = vpop.permute.xlu1 %1491 }
 0x1e8   : > { %v990_v19 = vsel %vm986_vm8, %v4023_v32, %v4100_v1  ;;  %1933 = vmatpush1.msra.mxu1 %v1779_v2 }
 0x1e9   : > { %v1043_v6 = vmul.f32 %v1018_v56, %v990_v19  ;;  %1934 = vmatprep.subr.mxu1 %v1772_v16 }
 0x1ea   : > { %1935 = vmatpush1.msra.mxu1 %v1771_v11 }
 0x1eb   : > { %1051 = vst [vmem:[#allocation2 + $0x120] sm:$0xf] %v1043_v6  ;;  %v1264_v13 = vpop.permute.xlu0 %1263  ;;  %1936 = vmatprep.subr.mxu1 %v1764_v51  ;;  %v4116_v32 = vpop.permute.xlu1 %1067 }
 0x1ec   : > { %1937 = vmatpush1.msra.mxu1 %v1763_v27  ;;  %v1304_v27 = vrot.slane %v3864_v61, %v4134_v45 }
 0x1ed   : > { %3483 = vmatmul.mubr.msk.f32.vlgmr.msra.gmra.mxu1 %vm1806_vm9, %v4114_v12 }
 0x1ee   : > { %2112 = vmatprep.mubr.f32.mxu1 %v3606_v14 }
 0x1ef   : > { %v1266_v29 = vpop.permute.xlu0 %1265  ;;  %v1070_v42 = vpop.permute.xlu1 %1069 }
 0x1f0   : > { %v1268_v53 = vsel %vm1267_vm4, %v1264_v13, %v1266_v29  ;;  %v1275_v54 = vsel %vm1267_vm4, %v1266_v29, %v3780_v22  ;;  %v1072_v62 = vsel %vm1071_vm6, %v4116_v32, %v1070_v42  ;;  %v1079_v55 = vsel %vm1071_vm6, %v1070_v42, %v3797_v31 }
 0x1f1   : > { %v1321_v21 = vmul.f32 %v1284_v23, %v1275_v54  ;;  %v1328_v56 = vmul.f32 %v1312_v37, %v1268_v53  ;;  %v1125_v40 = vmul.f32 %v1088_v25, %v1079_v55  ;;  %v1132_v28 = vmul.f32 %v1116_v9, %v1072_v62 }
 0x1f2   : > { %v1308_v23 = vrot.slane %v3864_v61, %v4137_v46  ;;  %v1618_v9 = vrot.slane %v3809_v36, %v4134_v45  ;;  %v1732_v42 = vrot.slane %v3842_v50, %v4137_v46  ;;  %v1736_v61 = vrot.slane %v3842_v50, %v4109_v58 }
 0x1f3   : > { %v1337_v2 = vrot.slane %v1321_v21, 4  ;;  %v1344_v19 = vrot.slane %v1328_v56, 4  ;;  %v1141_v16 = vrot.slane %v1125_v40, 4  ;;  %v1148_v6 = vrot.slane %v1132_v28, 4  ;;  %v4150_v11 = vpop.permute.xlu0 %1179  ;;  %v4152_v51 = vpop.permute.xlu1 %982 }
 0x1f4   : > { %v1189_v22 = vsel %vm1181_vm7, %v4150_v11, %v3817_v39  ;;  %v994_v31 = vsel %vm986_vm8, %v4152_v51, %v3840_v48  ;;  %v1614_v39 = vrot.slane %v3809_v36, %v4053_v7 }
 0x1f5   : > { %1353 = vst [vmem:[#allocation2 + $0x80] sm:$0xf0] %v1337_v2  ;;  %1360 = vst [vmem:[#allocation2 + $0x20] sm:$0xf0] %v1344_v19  ;;  %v1235_v37 = vmul.f32 %v1198_v43, %v1189_v22  ;;  %v1039_v25 = vmul.f32 %v1002_v44, %v994_v31  ;;  %v1724_v43 = vrot.slane %v3842_v50, %v4053_v7 }
 0x1f6   : > { %1157 = vst [vmem:[#allocation2 + $0xb0] sm:$0xf0] %v1141_v16  ;;  %1164 = vst [vmem:[#allocation2 + $0x100] sm:$0xf0] %v1148_v6  ;;  %v1728_v44 = vrot.slane %v3842_v50, %v4134_v45  ;;  %v1108_v50 = vrot.slane %v3933_v3, %v4134_v45  ;;  %v1422_v2 = vrot.slane %v3821_v41, %v4134_v45 }
 0x1f7   : > { %1243 = vst [vmem:[#allocation2 + $0x80] sm:$0xf] %v1235_v37  ;;  %1047 = vst [vmem:[#allocation2 + $0xb0] sm:$0xf] %v1039_v25  ;;  %v1262_v48 = vpop.permute.xlu1 %1261  ;;  %v1576_v29 = vpop.permute.xlu0 %1575 }
 0x1f8   : > { %v1269_v53 = vsel %vm1267_vm4, %v1262_v48, %v1264_v13  ;;  %v1270_v54 = vsel %vm1267_vm4, %v4069_v15, %v1262_v48  ;;  %v1583_v62 = vsel %vm1581_vm0, %v1576_v29, %v4071_v24  ;;  %v1584_v55 = vsel %vm1581_vm0, %v4038_v59, %v1576_v29 }
 0x1f9   : > { %v1326_v21 = vmul.f32 %v1304_v27, %v1270_v54  ;;  %v1327_v56 = vmul.f32 %v1308_v23, %v1269_v53  ;;  %v1639_v40 = vmul.f32 %v1614_v39, %v1584_v55  ;;  %v1640_v28 = vmul.f32 %v1618_v9, %v1583_v62  ;;  %v1762_v53 = vld [vmem:[#allocation2 + $0xd0] sm:$0xff] }
 0x1fa   : > { %v1112_v13 = vrot.slane %v3933_v3, %v4137_v46  ;;  %v1418_v15 = vrot.slane %v3821_v41, %v4053_v7  ;;  %v1528_v54 = vrot.slane %v3861_v60, %v4053_v7 }
 0x1fb   : > { %v1342_v19 = vrot.slane %v1326_v21, 4  ;;  %v1343_v16 = vrot.slane %v1327_v56, 4  ;;  %v1655_v6 = vrot.slane %v1639_v40, 4  ;;  %v1656_v59 = vrot.slane %v1640_v28, 4  ;;  %v1690_v22 = vpop.permute.xlu1 %1689  ;;  %v1686_v31 = vpop.permute.xlu0 %1685 }
 0x1fc   : > { %v1692_v27 = vsel %vm1691_vm2, %v4080_v38, %v1690_v22  ;;  %v1699_v3 = vsel %vm1691_vm2, %v1690_v22, %v3766_v17  ;;  %v1693_v23 = vsel %vm1691_vm2, %v1686_v31, %v4080_v38  ;;  %v1694_v37 = vsel %vm1691_vm2, %v4057_v8, %v1686_v31 }
 0x1fd   : > { %1358 = vst [vmem:[#allocation2 + $0xc8] sm:$0xf0] %v1342_v19  ;;  %1359 = vst [vmem:[#allocation2 + $0x70] sm:$0xf0] %v1343_v16  ;;  %v1751_v25 = vmul.f32 %v1732_v42, %v1692_v27  ;;  %v1752_v39 = vmul.f32 %v1736_v61, %v1699_v3  ;;  %v1749_v9 = vmul.f32 %v1724_v43, %v1694_v37 }
 0x1fe   : > { %1671 = vst [vmem:[#allocation2 + $0x68] sm:$0xf0] %v1655_v6  ;;  %1672 = vst [vmem:[#allocation2 + $0x130] sm:$0xf0] %v1656_v59  ;;  %v1750_v48 = vmul.f32 %v1728_v44, %v1693_v23  ;;  %v1769_v29 = vld [vmem:[#allocation2 + $0x80] sm:$0xff]  ;;  %v1218_v8 = vrot.slane %v3942_v10, %v4134_v45  ;;  %v1532_v42 = vrot.slane %v3861_v60, %v4134_v45  ;;  %v1761_v55 = vld [vmem:[#allocation2 + $0xb0] sm:$0xff] }
 0x1ff   : > { %1759 = vst [vmem:[#allocation2 + $0xb8] sm:$0xf] %v1751_v25  ;;  %1760 = vst [vmem:[#allocation2 + $0x60] sm:$0xf] %v1752_v39  ;;  %1864 = vmatpush1.msra.mxu0 %v1769_v29  ;;  %v1066_v17 = vpop.permute.xlu1 %1065  ;;  %v1380_v38 = vpop.permute.xlu0 %1379 }
 0x200   : > { %1757 = vst [vmem:[#allocation2 + $0x28] sm:$0xf] %v1749_v9  ;;  %1758 = vst [vmem:[#allocation2] sm:$0xf] %v1750_v48  ;;  %v1073_v61 = vsel %vm1071_vm6, %v1066_v17, %v4116_v32  ;;  %v1074_v43 = vsel %vm1071_vm6, %v4078_v30, %v1066_v17  ;;  %v1387_v44 = vsel %vm1385_vm1, %v1380_v38, %v4091_v52  ;;  %1865 = vmatprep.subr.mxu0 %v1762_v53 }
 0x201   : > { %v1388_v62 = vsel %vm1385_vm1, %v4036_v57, %v1380_v38  ;;  %v1130_v21 = vmul.f32 %v1108_v50, %v1074_v43  ;;  %v1131_v56 = vmul.f32 %v1112_v13, %v1073_v61  ;;  %v1444_v28 = vmul.f32 %v1422_v2, %v1387_v44  ;;  %1866 = vmatpush1.msra.mxu0 %v1761_v55 }
 0x202   : > { %v1443_v40 = vmul.f32 %v1418_v15, %v1388_v62  ;;  %v1536_v32 = vrot.slane %v3861_v60, %v4137_v46  ;;  %v1540_v30 = vrot.slane %v3861_v60, %v4109_v58  ;;  %3480 = vmatmul.mubr.msk.f32.vlgmr.msra.gmra.mxu0 %vm1806_vm9, %v4114_v12  ;;  %v1622_v2 = vrot.slane %v3809_v36, %v4137_v46 }
 0x203   : > { %v1146_v19 = vrot.slane %v1130_v21, 4  ;;  %v1147_v16 = vrot.slane %v1131_v56, 4  ;;  %v1460_v57 = vrot.slane %v1444_v28, 4  ;;  %v4233_v59 = vpop.permute.xlu1 %1175  ;;  %v1490_v50 = vpop.permute.xlu0 %1489  ;;  %2041 = vmatprep.mubr.f32.mxu0 %v3606_v14  ;;  %v1022_v9 = vrot.slane %v3984_v49, %v4134_v45 }
 0x204   : > { %v1459_v6 = vrot.slane %v1443_v40, 4  ;;  %v1184_v13 = vsel %vm1181_vm7, %v4088_v47, %v4233_v59  ;;  %v1497_v60 = vsel %vm1495_vm3, %v1490_v50, %v4102_v63  ;;  %v1498_v15 = vsel %vm1495_vm3, %v4055_v0, %v1490_v50 }
 0x205   : > { %1162 = vst [vmem:[#allocation2 + $0x38] sm:$0xf0] %v1146_v19  ;;  %1163 = vst [vmem:[#allocation2 + $0xf8] sm:$0xf0] %v1147_v16  ;;  %v1240_v22 = vmul.f32 %v1218_v8, %v1184_v13  ;;  %v1553_v31 = vmul.f32 %v1528_v54, %v1498_v15  ;;  %v1554_v27 = vmul.f32 %v1532_v42, %v1497_v60 }
 0x206   : > { %1475 = vst [vmem:[#allocation2 + $0xa8] sm:$0xf0] %v1459_v6  ;;  %1476 = vst [vmem:[#allocation2 + $0x90] sm:$0xf0] %v1460_v57  ;;  %v1626_v47 = vrot.slane %v3809_v36, %v4109_v58  ;;  %v1800_v3 = vld [vmem:[#allocation2 + $0x60] sm:$0xf]  ;;  %v1426_v48 = vrot.slane %v3821_v41, %v4137_v46  ;;  %v1430_v36 = vrot.slane %v3821_v41, %v4109_v58 }
 0x207   : > { %v1798_v23 = vld [vmem:[#allocation2] sm:$0xf]  ;;  %v1797_v37 = vld [vmem:[#allocation2 + $0x28] sm:$0xf]  ;;  %1248 = vst [vmem:[#allocation2 + $0xc8] sm:$0xf] %v1240_v22  ;;  %3487 = vmatprep.subr.msk.mxu1 %vm1810_vm5, %v1800_v3  ;;  %v1494_v0 = vpop.permute.xlu1 %1493  ;;  %v1580_v25 = vpop.permute.xlu0 %1579  ;;  %v1222_v21 = vrot.slane %v3942_v10, %v4137_v46  ;;  %v1226_v28 = vrot.slane %v3942_v10, %v4109_v58 }
 0x208   : > { %1561 = vst [vmem:[#allocation2 + $0x68] sm:$0xf] %v1553_v31  ;;  %1562 = vst [vmem:[#allocation2 + $0x130] sm:$0xf] %v1554_v27  ;;  %3484 = vmatprep.subr.msk.mxu0 %vm1810_vm5, %v1798_v23  ;;  %v1799_v39 = vld [vmem:[#allocation2 + $0xb8] sm:$0xf]  ;;  %v1496_v29 = vsel %vm1495_vm3, %v4102_v63, %v1494_v0  ;;  %v1503_v17 = vsel %vm1495_vm3, %v1494_v0, %v3785_v26  ;;  %v1582_v38 = vsel %vm1581_vm0, %v4071_v24, %v1580_v25 }
 0x209   : > { %v1589_v53 = vsel %vm1581_vm0, %v1580_v25, %v3768_v18  ;;  %3485 = vmatpush1.msk.msra.mxu0 %vm1810_vm5, %v1797_v37  ;;  %v1555_v8 = vmul.f32 %v1536_v32, %v1496_v29  ;;  %v1556_v41 = vmul.f32 %v1540_v30, %v1503_v17  ;;  %v1641_v54 = vmul.f32 %v1622_v2, %v1582_v38 }
 0x20a   : > { %v1642_v42 = vmul.f32 %v1626_v47, %v1589_v53  ;;  %3488 = vmatpush1.msk.msra.mxu1 %vm1810_vm5, %v1799_v39  ;;  %v1026_v24 = vrot.slane %v3984_v49, %v4137_v46  ;;  %v1030_v18 = vrot.slane %v3984_v49, %v4109_v58  ;;  %v1765_v47 = vld [vmem:[#allocation2 + $0x120] sm:$0xff] }
 0x20b   : > { %1563 = vst [vmem:[#allocation2 + $0x50] sm:$0xf] %v1555_v8  ;;  %1564 = vst [vmem:[#allocation2 + $0xe8] sm:$0xf] %v1556_v41  ;;  %v1657_v63 = vrot.slane %v1641_v54, 4  ;;  %v979_v61 = vpop.permute.xlu1 %978  ;;  %v1384_v43 = vpop.permute.xlu0 %1383 }
 0x20c   : > { %v1658_v26 = vrot.slane %v1642_v42, 4  ;;  %v989_v44 = vsel %vm986_vm8, %v4100_v1, %v979_v61  ;;  %v1386_v62 = vsel %vm1385_vm1, %v4091_v52, %v1384_v43  ;;  %v1393_v55 = vsel %vm1385_vm1, %v1384_v43, %v3774_v20 }
 0x20d   : > { %1673 = vst [vmem:[#allocation2 + $0x50] sm:$0xf0] %v1657_v63  ;;  %v1044_v56 = vmul.f32 %v1022_v9, %v989_v44  ;;  %v1445_v40 = vmul.f32 %v1426_v48, %v1386_v62  ;;  %v1446_v49 = vmul.f32 %v1430_v36, %v1393_v55  ;;  %v1782_v50 = vld [vmem:[#allocation2 + $0x90] sm:$0xff] }
 0x20e   : > { %1674 = vst [vmem:[#allocation2 + $0xe8] sm:$0xf0] %v1658_v26  ;;  %v1774_v22 = vld [vmem:[#allocation2 + $0xc8] sm:$0xff] }
 0x20f   : > { %v1790_v1 = vld [vmem:[#allocation2 + $0x130] sm:$0xff]  ;;  %v1789_v32 = vld [vmem:[#allocation2 + $0x68] sm:$0xff]  ;;  %1052 = vst [vmem:[#allocation2 + $0x38] sm:$0xf] %v1044_v56  ;;  %v1461_v30 = vrot.slane %v1445_v40, 4  ;;  %v1462_v52 = vrot.slane %v1446_v49, 4  ;;  %v981_v19 = vpop.permute.xlu1 %980  ;;  %v1178_v16 = vpop.permute.xlu0 %1177 }
 0x210   : > { %2001 = vmatprep.subr.mxu0 %v1790_v1  ;;  %v987_v20 = vsel %vm986_vm8, %v981_v19, %v4152_v51  ;;  %v988_v6 = vsel %vm986_vm8, %v979_v61, %v981_v19  ;;  %v1182_v57 = vsel %vm1181_vm7, %v1178_v16, %v4150_v11  ;;  %v1183_v10 = vsel %vm1181_vm7, %v4233_v59, %v1178_v16  ;;  %v1781_v51 = vld [vmem:[#allocation2 + $0xa8] sm:$0xff]  ;;  %v1773_v11 = vld [vmem:[#allocation2 + $0x18] sm:$0xff] }
 0x211   : > { %2002 = vmatpush1.msra.mxu0 %v1789_v32  ;;  %1477 = vst [vmem:[#allocation2 + $0xe0] sm:$0xf0] %v1461_v30  ;;  %1478 = vst [vmem:[#allocation2 + $0x88] sm:$0xf0] %v1462_v52  ;;  %v1045_v13 = vmul.f32 %v1026_v24, %v988_v6  ;;  %v1046_v60 = vmul.f32 %v1030_v18, %v987_v20  ;;  %v1241_v15 = vmul.f32 %v1222_v21, %v1183_v10 }
 0x212   : > { %v1242_v2 = vmul.f32 %v1226_v28, %v1182_v57  ;;  %2003 = vmatprep.subr.mxu0 %v1782_v50 }
 0x213   : > { %2004 = vmatpush1.msra.mxu0 %v1781_v51  ;;  %1053 = vst [vmem:[#allocation2 + $0xf8] sm:$0xf] %v1045_v13  ;;  %1054 = vst [vmem:[#allocation2 + $0x100] sm:$0xf] %v1046_v60 }
 0x214   : > { %1249 = vst [vmem:[#allocation2 + $0x70] sm:$0xf] %v1241_v15  ;;  %1250 = vst [vmem:[#allocation2 + $0x20] sm:$0xf] %v1242_v2  ;;  %2005 = vmatprep.subr.mxu0 %v1774_v22  ;;  %v1791_v31 = vld [vmem:[#allocation2 + $0x50] sm:$0xff] }
 0x215   : > { %2006 = vmatpush1.msra.mxu0 %v1773_v11  ;;  %v1792_v59 = vld [vmem:[#allocation2 + $0xe8] sm:$0xff] }
 0x216   : > { %2072 = vmatprep.subr.mxu1 %v1792_v59  ;;  %v1766_v27 = vld [vmem:[#allocation2 + $0x38] sm:$0xff] }
 0x217   : > { %2073 = vmatpush1.msra.mxu1 %v1791_v31  ;;  %2007 = vmatprep.subr.mxu0 %v1766_v27 }
 0x218   : > { %2008 = vmatpush1.msra.mxu0 %v1765_v47  ;;  %v1784_v3 = vld [vmem:[#allocation2 + $0x88] sm:$0xff]  ;;  %v1783_v23 = vld [vmem:[#allocation2 + $0xe0] sm:$0xff] }
 0x219   : > { %3486 = vmatmul.mubr.msk.f32.vlgmr.msra.gmra.mxu0 %vm1806_vm9, %v4114_v12  ;;  %2074 = vmatprep.subr.mxu1 %v1784_v3 }
 0x21a   : > { %2075 = vmatpush1.msra.mxu1 %v1783_v23  ;;  %3104 = vmatprep.mubr.f32.mxu0 %v3606_v14  ;;  %v1768_v25 = vld [vmem:[#allocation2 + $0x100] sm:$0xff]  ;;  %v1767_v39 = vld [vmem:[#allocation2 + $0xf8] sm:$0xff] }
 0x21b   : > { %v1776_v37 = vld [vmem:[#allocation2 + $0x20] sm:$0xff]  ;;  %v1775_v0 = vld [vmem:[#allocation2 + $0x70] sm:$0xff] }
 0x21c   : > { %2076 = vmatprep.subr.mxu1 %v1776_v37  ;;  %v1804_v48 = vpop.permute.xlu0 %1803 }
 0x21d   : > { %2077 = vmatpush1.msra.mxu1 %v1775_v0 }
 0x21e   : > { %2078 = vmatprep.subr.mxu1 %v1768_v25 }
 0x21f   : > { %2079 = vmatpush1.msra.mxu1 %v1767_v39 }
 0x220   : > { %3489 = vmatmul.mubr.msk.f32.vlgmr.msra.gmra.mxu1 %vm1806_vm9, %v4114_v12 }
 0x221   : > { %3175 = vmatprep.mubr.f32.mxu1 %v3606_v14 }
 0x2ad   : > { %v1972_v38 = vpop.f32.mrf.mxu1 }
 0x2ae   : > { %v1973_v41 = vadd.f32 %v1972_v38, %v1804_v48 }
 0x2af   : > { %v1974_v54 = vpop.f32.mrf.mxu1 }
 0x2b0   : > { %v2122_v63 = vsel %vm1810_vm5, %v1973_v41, 0.0  ;;  %v1975_v26 = vadd.f32 %v1974_v54, %v1804_v48 }
 0x2b2   : > { %v2124_v12 = vsel %vm1810_vm5, %v1975_v26, 0.0 }
 0x2c2   : > { %v1901_v9 = vpop.f32.mrf.mxu0 }
 0x2c3   : > { %v1902_v29 = vadd.f32 %v1901_v9, %v1804_v48 }
 0x2c4   : > { %v1903_v36 = vpop.f32.mrf.mxu0 }
 0x2c5   : > { %v1904_v17 = vadd.f32 %v1903_v36, %v1804_v48  ;;  %v2119_v53 = vsel %vm1810_vm5, %v1902_v29, 0.0 }
 0x2c7   : > { %v2120_v8 = vsel %vm1810_vm5, %v1904_v17, 0.0 }
 0x2c8   : > { %v2121_v42 = vadd.f32 %v2120_v8, %v2119_v53 }
 0x2ca   : > { %v2123_v61 = vadd.f32 %v2122_v63, %v2121_v42 }
 0x2cc   : > { %v2125_v18 = vadd.f32 %v2124_v12, %v2123_v61 }
 0x2d9   : > { %v2043_v43 = vpop.f32.mrf.mxu0 }
 0x2da   : > { %v2044_v24 = vadd.f32 %v2043_v43, %v1804_v48 }
 0x2db   : > { %v2045_v44 = vpop.f32.mrf.mxu0 }
 0x2dc   : > { %v2126_v62 = vsel %vm1810_vm5, %v2044_v24, 0.0  ;;  %v2046_v55 = vadd.f32 %v2045_v44, %v1804_v48 }
 0x2dd   : > { %v2127_v21 = vadd.f32 %v2126_v62, %v2125_v18 }
 0x2de   : > { %v2128_v56 = vsel %vm1810_vm5, %v2046_v55, 0.0 }
 0x2df   : > { %v2129_v28 = vadd.f32 %v2128_v56, %v2127_v21 }
 0x2e0   : > { %v2114_v40 = vpop.f32.mrf.mxu1 }
 0x2e1   : > { %v2115_v49 = vadd.f32 %v2114_v40, %v1804_v48 }
 0x2e2   : > { %v2116_v1 = vpop.f32.mrf.mxu1 }
 0x2e3   : > { %v2130_v32 = vsel %vm1810_vm5, %v2115_v49, 0.0  ;;  %v2117_v30 = vadd.f32 %v2116_v1, %v1804_v48 }
 0x2e4   : > { %v2131_v52 = vadd.f32 %v2130_v32, %v2129_v28 }
 0x2e5   : > { %v2132_v19 = vsel %vm1810_vm5, %v2117_v30, 0.0 }
 0x2e6   : > { %v2133_v16 = vadd.f32 %v2132_v19, %v2131_v52 }
 0x2e8   : > { %2134 = vadd.xlane.f32.xlu1 %v2133_v16  ;;  %v3500_v16 = vld [vmem:[%s4897_s2 + $0x7] ss:$8 sm:$0xf] }
 0x371   : > { %v2135_v20 = vpop.xlane.xlu1 %2134 }
 0x372   : > { %v2137_v6 = vmul.f32 0.0009765625, %v2135_v20  ;;  %v3501_v20 = vld [vmem:[%s4897_s2 + $0x7] ss:$8 sm:$0xf0] }
 0x374   : > { %v2138_v57 = vsub.f32 %v1902_v29, %v2137_v6  ;;  %v2139_v10 = vsub.f32 %v1904_v17, %v2137_v6  ;;  %v2140_v50 = vsub.f32 %v1973_v41, %v2137_v6  ;;  %v2141_v13 = vsub.f32 %v1975_v26, %v2137_v6 }
 0x375   : > { %v2142_v60 = vsub.f32 %v2044_v24, %v2137_v6  ;;  %v2143_v22 = vsub.f32 %v2046_v55, %v2137_v6  ;;  %v2144_v47 = vsub.f32 %v2115_v49, %v2137_v6  ;;  %v2145_v0 = vsub.f32 %v2117_v30, %v2137_v6 }
 0x376   : > { %v2146_v15 = vmul.f32 %v2138_v57, %v2138_v57  ;;  %v2147_v2 = vmul.f32 %v2139_v10, %v2139_v10  ;;  %v2148_v51 = vmul.f32 %v2140_v50, %v2140_v50  ;;  %v2149_v11 = vmul.f32 %v2141_v13, %v2141_v13 }
 0x377   : > { %v2150_v3 = vmul.f32 %v2142_v60, %v2142_v60  ;;  %v2151_v25 = vmul.f32 %v2143_v22, %v2143_v22  ;;  %v2152_v48 = vmul.f32 %v2144_v47, %v2144_v47  ;;  %v2153_v17 = vmul.f32 %v2145_v0, %v2145_v0 }
 0x378   : > { %v2154_v59 = vsel %vm1810_vm5, %v2146_v15, 0.0  ;;  %v2155_v31 = vsel %vm1810_vm5, %v2147_v2, 0.0  ;;  %v2157_v23 = vsel %vm1810_vm5, %v2148_v51, 0.0  ;;  %v2159_v39 = vsel %vm1810_vm5, %v2149_v11, 0.0 }
 0x379   : > { %v2156_v27 = vadd.f32 %v2155_v31, %v2154_v59  ;;  %v2161_v36 = vsel %vm1810_vm5, %v2150_v3, 0.0  ;;  %v2163_v38 = vsel %vm1810_vm5, %v2151_v25, 0.0  ;;  %v2165_v8 = vsel %vm1810_vm5, %v2152_v48, 0.0 }
 0x37a   : > { %v2167_v54 = vsel %vm1810_vm5, %v2153_v17, 0.0  ;;  %v4420_v6 = vor.u32 %v3501_v20, %v3500_v16 }
 0x37b   : > { %v2158_v37 = vadd.f32 %v2157_v23, %v2156_v27  ;;  %v2191_v23 = vld [vmem:[%s4901_s6] sm:$0xff] }
 0x37c   : > { %v2807_v51 = vrot.slane %v4420_v6, %v3804_v34  ;;  %v2815_v16 = vrot.slane %v4420_v6, %v3871_v4 }
 0x37d   : > { %v2160_v9 = vadd.f32 %v2159_v39, %v2158_v37  ;;  %v3496_v37 = vld [vmem:[%s4897_s2 + $0x5] ss:$8 sm:$0xf] }
 0x37f   : > { %v2162_v29 = vadd.f32 %v2161_v36, %v2160_v9 }
 0x381   : > { %v2164_v53 = vadd.f32 %v2163_v38, %v2162_v29  ;;  %v3498_v38 = vld [vmem:[%s4897_s2 + $0x6] ss:$8 sm:$0xf] }
 0x383   : > { %v2166_v41 = vadd.f32 %v2165_v8, %v2164_v53  ;;  %v3499_v53 = vld [vmem:[%s4897_s2 + $0x6] ss:$8 sm:$0xf0] }
 0x385   : > { %v2168_v42 = vadd.f32 %v2167_v54, %v2166_v41 }
 0x387   : > { %2169 = vadd.xlane.f32.xlu0 %v2168_v42 }
 0x410   : > { %v2170_v63 = vpop.xlane.xlu0 %2169 }
 0x411   : > { %v2171_v26 = vmul.f32 0.0009765625, %v2170_v63 }
 0x413   : > { %v2172_v61 = vadd.f32 1e-05, %v2171_v26 }
 0x415   : > { %3553 = vrsqrt.f32 %v2172_v61  ;;  %v4492_v61 = vor.u32 %v3499_v53, %v3498_v38 }
 0x422   : > { %v3554_v12 = vpop.eup %3553 }
 0x423   : > { %v2176_v43 = vmul.f32 %v3554_v12, %v2140_v50  ;;  %v2175_v24 = vmul.f32 %v3554_v12, %v2139_v10  ;;  %v2174_v18 = vmul.f32 %v3554_v12, %v2138_v57  ;;  %v2177_v44 = vmul.f32 %v3554_v12, %v2141_v13  ;;  %v3502_v10 = vld [vmem:[%s4897_s2 + $0x40] ss:$8 sm:$0xf] }
 0x424   : > { %v2178_v62 = vmul.f32 %v3554_v12, %v2142_v60  ;;  %v2181_v55 = vmul.f32 %v3554_v12, %v2145_v0  ;;  %v2179_v21 = vmul.f32 %v3554_v12, %v2143_v22  ;;  %v2180_v56 = vmul.f32 %v3554_v12, %v2144_v47  ;;  %v3503_v50 = vld [vmem:[%s4897_s2 + $0x40] ss:$8 sm:$0xf0]  ;;  %v3497_v0 = vld [vmem:[%s4897_s2 + $0x5] ss:$8 sm:$0xf0] }
 0x425   : > { %v2184_v40 = vmax.f32 %v2176_v43, 0.0  ;;  %v2183_v49 = vmax.f32 %v2175_v24, 0.0  ;;  %v2182_v28 = vmax.f32 %v2174_v18, 0.0  ;;  %v2185_v1 = vmax.f32 %v2177_v44, 0.0 }
 0x426   : > { %v4322_v32 = vmax.f32 %v2178_v62, 0.0  ;;  %v4324_v30 = vmax.f32 %v2181_v55, 0.0  ;;  %v4326_v52 = vmax.f32 %v2179_v21, 0.0  ;;  %v4328_v19 = vmax.f32 %v2180_v56, 0.0 }
 0x427   : > { %2780 = vrot.lane.b32.xlu0 %v2184_v40, %s3599_s16  ;;  %2578 = vst [vmem:[#allocation2 + $0x8] sm:$0xf] %v2184_v40  ;;  %2778 = vrot.lane.b32.xlu1 %v2183_v49, %s3599_s16  ;;  %2577 = vst [vmem:[#allocation2 + $0x110] sm:$0xf] %v2183_v49  ;;  %v2811_v57 = vrot.slane %v4420_v6, %v3807_v35  ;;  %v4445_v22 = vor.u32 %v3503_v50, %v3502_v10 }
 0x428   : > { %2576 = vst [vmem:[#allocation2 + $0x128] sm:$0xf] %v2182_v28  ;;  %2579 = vst [vmem:[#allocation2 + $0x98] sm:$0xf] %v2185_v1  ;;  %v4473_v17 = vor.u32 %v3497_v0, %v3496_v37  ;;  %v2727_v55 = vrot.slane %v4492_v61, %v3807_v35 }
 0x429   : > { %2580 = vst [vmem:[#allocation2 + $0xa8] sm:$0xf] %v4322_v32  ;;  %2583 = vst [vmem:[#allocation2 + $0x88] sm:$0xf] %v4324_v30  ;;  %v2919_v3 = vrot.slane %v4445_v22, %v3807_v35  ;;  %v2915_v29 = vrot.slane %v4445_v22, %v3804_v34 }
 0x42a   : > { %2581 = vst [vmem:[#allocation2 + $0x90] sm:$0xf] %v4326_v52  ;;  %2582 = vst [vmem:[#allocation2 + $0xe0] sm:$0xf] %v4328_v19  ;;  %v2619_v63 = vrot.slane %v4473_v17, %v3807_v35  ;;  %v2615_v26 = vrot.slane %v4473_v17, %v3804_v34 }
 0x42b   : > { %2886 = vrot.lane.b32.xlu1 %v2183_v49, %s3598_s15  ;;  %2776 = vrot.lane.b32.xlu0 %v2182_v28, %s3599_s16  ;;  %v3494_v21 = vld [vmem:[%s4897_s2 + $0x3] ss:$8 sm:$0xf] }
 0x42f   : > { %2888 = vrot.lane.b32.xlu1 %v2184_v40, %s3598_s15  ;;  %2586 = vrot.lane.b32.xlu0 %v2183_v49, %s3600_s17 }
 0x433   : > { %2884 = vrot.lane.b32.xlu1 %v2182_v28, %s3598_s15  ;;  %2694 = vrot.lane.b32.xlu0 %v2183_v49, %s3601_s18 }
 0x437   : > { %2588 = vrot.lane.b32.xlu1 %v2184_v40, %s3600_s17  ;;  %2584 = vrot.lane.b32.xlu0 %v2182_v28, %s3600_s17 }
 0x43b   : > { %2696 = vrot.lane.b32.xlu1 %v2184_v40, %s3601_s18  ;;  %2468 = vrot.lane.b32.xlu0 %v2182_v28, %s3602_s19 }
 0x43f   : > { %2692 = vrot.lane.b32.xlu1 %v2182_v28, %s3601_s18  ;;  %2782 = vrot.lane.b32.xlu0 %v2185_v1, %s3599_s16 }
 0x443   : > { %2470 = vrot.lane.b32.xlu1 %v2183_v49, %s3602_s19  ;;  %2890 = vrot.lane.b32.xlu0 %v2185_v1, %s3598_s15 }
 0x447   : > { %2784 = vrot.lane.b32.xlu1 %v4322_v32, %s3599_s16  ;;  %2482 = vrot.lane.b32.xlu0 %v4324_v30, %s3602_s19 }
 0x44b   : > { %2892 = vrot.lane.b32.xlu1 %v4322_v32, %s3598_s15  ;;  %2278 = vrot.lane.b32.xlu0 %v2183_v49, %s3603_s20 }
 0x44f   : > { %2276 = vrot.lane.b32.xlu1 %v2182_v28, %s3603_s20  ;;  %2386 = vrot.lane.b32.xlu0 %v2183_v49, %s3604_s21 }
 0x453   : > { %2384 = vrot.lane.b32.xlu1 %v2182_v28, %s3604_s21  ;;  %2592 = vrot.lane.b32.xlu0 %v4322_v32, %s3600_s17 }
 0x457   : > { %2590 = vrot.lane.b32.xlu1 %v2185_v1, %s3600_s17  ;;  %2700 = vrot.lane.b32.xlu0 %v4322_v32, %s3601_s18 }
 0x45b   : > { %2698 = vrot.lane.b32.xlu1 %v2185_v1, %s3601_s18  ;;  %2398 = vrot.lane.b32.xlu0 %v4324_v30, %s3604_s21 }
 0x45f   : > { %2290 = vrot.lane.b32.xlu1 %v4324_v30, %s3603_s20  ;;  %2194 = vrot.lane.b32.xlu0 %v2183_v49, %s3605_s22 }
 0x463   : > { %2192 = vrot.lane.b32.xlu1 %v2182_v28, %s3605_s22  ;;  %2474 = vrot.lane.b32.xlu0 %v2185_v1, %s3602_s19 }
 0x467   : > { %2472 = vrot.lane.b32.xlu1 %v2184_v40, %s3602_s19  ;;  %2280 = vrot.lane.b32.xlu0 %v2184_v40, %s3603_s20 }
 0x46b   : > { %2206 = vrot.lane.b32.xlu1 %v4324_v30, %s3605_s22  ;;  %2388 = vrot.lane.b32.xlu0 %v2184_v40, %s3604_s21 }
 0x46f   : > { %2282 = vrot.lane.b32.xlu1 %v2185_v1, %s3603_s20  ;;  %2786 = vrot.lane.b32.xlu0 %v4326_v52, %s3599_s16 }
 0x473   : > { %2390 = vrot.lane.b32.xlu1 %v2185_v1, %s3604_s21  ;;  %2894 = vrot.lane.b32.xlu0 %v4326_v52, %s3598_s15 }
 0x477   : > { %2788 = vrot.lane.b32.xlu1 %v4328_v19, %s3599_s16  ;;  %2196 = vrot.lane.b32.xlu0 %v2184_v40, %s3605_s22  ;;  %v3495_v40 = vld [vmem:[%s4897_s2 + $0x3] ss:$8 sm:$0xf0] }
 0x478   : > { %v4522_v20 = vor.u32 %v3495_v40, %v3494_v21 }
 0x47b   : > { %2896 = vrot.lane.b32.xlu1 %v4328_v19, %s3598_s15  ;;  %2594 = vrot.lane.b32.xlu0 %v4326_v52, %s3600_s17 }
 0x47f   : > { %2198 = vrot.lane.b32.xlu1 %v2185_v1, %s3605_s22  ;;  %2702 = vrot.lane.b32.xlu0 %v4326_v52, %s3601_s18 }
 0x483   : > { %2596 = vrot.lane.b32.xlu1 %v4328_v19, %s3600_s17  ;;  %2476 = vrot.lane.b32.xlu0 %v4322_v32, %s3602_s19 }
 0x487   : > { %2704 = vrot.lane.b32.xlu1 %v4328_v19, %s3601_s18  ;;  %2790 = vrot.lane.b32.xlu0 %v4324_v30, %s3599_s16 }
 0x48b   : > { %2478 = vrot.lane.b32.xlu1 %v4326_v52, %s3602_s19  ;;  %2284 = vrot.lane.b32.xlu0 %v4322_v32, %s3603_s20 }
 0x48f   : > { %2898 = vrot.lane.b32.xlu1 %v4324_v30, %s3598_s15  ;;  %2392 = vrot.lane.b32.xlu0 %v4322_v32, %s3604_s21 }
 0x493   : > { %2286 = vrot.lane.b32.xlu1 %v4326_v52, %s3603_s20  ;;  %2598 = vrot.lane.b32.xlu0 %v4324_v30, %s3600_s17 }
 0x497   : > { %2394 = vrot.lane.b32.xlu1 %v4326_v52, %s3604_s21  ;;  %2200 = vrot.lane.b32.xlu0 %v4322_v32, %s3605_s22 }
 0x499   : > { %v4434_v13 = vpop.permute.xlu0 %2780  ;;  %v2779_v60 = vpop.permute.xlu1 %2778 }
 0x49a   : > { %v2797_v15 = vsel %vm1581_vm0, %v2779_v60, %v4434_v13 }
 0x49b   : > { %v2845_v2 = vmul.f32 %v2811_v57, %v2797_v15  ;;  %2706 = vrot.lane.b32.xlu1 %v4324_v30, %s3601_s18  ;;  %2480 = vrot.lane.b32.xlu0 %v4328_v19, %s3602_s19 }
 0x49d   : > { %v2861_v11 = vrot.slane %v2845_v2, 4  ;;  %v2887_v59 = vpop.permute.xlu1 %2886  ;;  %v4447_v31 = vpop.permute.xlu0 %2776 }
 0x49e   : > { %v2798_v27 = vsel %vm1581_vm0, %v4447_v31, %v2779_v60 }
 0x49f   : > { %2877 = vst [vmem:[#allocation2 + $0x118] sm:$0xf0] %v2861_v11  ;;  %v2844_v47 = vmul.f32 %v2807_v51, %v2798_v27  ;;  %2202 = vrot.lane.b32.xlu1 %v4326_v52, %s3605_s22  ;;  %2396 = vrot.lane.b32.xlu0 %v4328_v19, %s3604_s21  ;;  %v2503_v11 = vrot.slane %v4522_v20, %v3807_v35 }
 0x4a1   : > { %v2860_v25 = vrot.slane %v2844_v47, 4  ;;  %v2889_v39 = vpop.permute.xlu1 %2888  ;;  %v2587_v9 = vpop.permute.xlu0 %2586 }
 0x4a2   : > { %v2905_v48 = vsel %vm1691_vm2, %v2887_v59, %v2889_v39 }
 0x4a3   : > { %2876 = vst [vmem:[#allocation2 + $0xc0] sm:$0xf0] %v2860_v25  ;;  %v2953_v36 = vmul.f32 %v2919_v3, %v2905_v48  ;;  %2288 = vrot.lane.b32.xlu1 %v4328_v19, %s3603_s20  ;;  %3010 = vperm.xlu0 %3551, %v2191_v23   ;;  %v2819_v25 = vrot.slane %v4420_v6, %v3936_v5  ;;  %v3490_v48 = vld [vmem:[%s4897_s2 + $0x1] ss:$8 sm:$0xf]  ;;  %s293_s20 = scalar_lea.vmem %s4902_s7, %s3519_s8 }
 0x4a5   : > { %2961 = vst [vmem:[#allocation2 + $0x78] sm:$0xf] %v2953_v36  ;;  %v4481_v8 = vpop.permute.xlu1 %2884  ;;  %v2695_v41 = vpop.permute.xlu0 %2694 }
 0x4a6   : > { %v2906_v54 = vsel %vm1691_vm2, %v4481_v8, %v2887_v59  ;;  %v2923_v59 = vrot.slane %v4445_v22, %v3871_v4 }
 0x4a7   : > { %v2952_v42 = vmul.f32 %v2915_v29, %v2906_v54  ;;  %2204 = vrot.lane.b32.xlu1 %v4328_v19, %s3605_s22  ;;  %v2723_v19 = vrot.slane %v4492_v61, %v3804_v34  ;;  %v3491_v29 = vld [vmem:[%s4897_s2 + $0x1] ss:$8 sm:$0xf0] }
 0x4a9   : > { %2960 = vst [vmem:[#allocation2 + $0x58] sm:$0xf] %v2952_v42  ;;  %v4494_v12 = vpop.permute.xlu1 %2588  ;;  %v4496_v43 = vpop.permute.xlu0 %2584 }
 0x4aa   : > { %v2605_v24 = vsel %vm1385_vm1, %v2587_v9, %v4494_v12  ;;  %v2606_v18 = vsel %vm1385_vm1, %v4496_v43, %v2587_v9  ;;  %v2499_v9 = vrot.slane %v4522_v20, %v3804_v34 }
 0x4ab   : > { %v2653_v44 = vmul.f32 %v2619_v63, %v2605_v24  ;;  %v2652_v62 = vmul.f32 %v2615_v26, %v2606_v18  ;;  %v2927_v26 = vrot.slane %v4445_v22, %v3936_v5  ;;  %v4566_v24 = vor.u32 %v3491_v29, %v3490_v48  ;;  %v3492_v18 = vld [vmem:[%s4897_s2 + $0x2] ss:$8 sm:$0xf] }
 0x4ac   : > { %v3001_v56 = vld [vmem:[#allocation2 + $0x78] sm:$0xf] }
 0x4ad   : > { %v2669_v49 = vrot.slane %v2653_v44, 4  ;;  %v2668_v28 = vrot.slane %v2652_v62, 4  ;;  %3504 = vmatprep.subr.msk.mxu0 %vm1810_vm5, %v3001_v56  ;;  %v4513_v1 = vpop.permute.xlu1 %2696  ;;  %v2469_v32 = vpop.permute.xlu0 %2468  ;;  %v3493_v62 = vld [vmem:[%s4897_s2 + $0x2] ss:$8 sm:$0xf0] }
 0x4ae   : > { %v2713_v30 = vsel %vm1495_vm3, %v2695_v41, %v4513_v1 }
 0x4af   : > { %2685 = vst [vmem:[#allocation2 + $0x110] sm:$0xf0] %v2669_v49  ;;  %2684 = vst [vmem:[#allocation2 + $0x128] sm:$0xf0] %v2668_v28  ;;  %v2761_v52 = vmul.f32 %v2727_v55, %v2713_v30 }
 0x4b0   : > { %v3000_v57 = vld [vmem:[#allocation2 + $0x58] sm:$0xf] }
 0x4b1   : > { %2769 = vst [vmem:[#allocation2 + $0x118] sm:$0xf] %v2761_v52  ;;  %3505 = vmatpush1.msk.msra.mxu0 %vm1810_vm5, %v3000_v57  ;;  %v4525_v10 = vpop.permute.xlu1 %2692  ;;  %v2783_v50 = vpop.permute.xlu0 %2782  ;;  %v2311_v52 = vrot.slane %v4566_v24, %v3807_v35 }
 0x4b2   : > { %v2714_v60 = vsel %vm1495_vm3, %v4525_v10, %v2695_v41  ;;  %v2796_v15 = vsel %vm1581_vm0, %v4434_v13, %v2783_v50 }
 0x4b3   : > { %v2760_v2 = vmul.f32 %v2723_v19, %v2714_v60  ;;  %v2846_v51 = vmul.f32 %v2815_v16, %v2796_v15  ;;  %v4583_v19 = vor.u32 %v3493_v62, %v3492_v18 }
 0x4b5   : > { %2768 = vst [vmem:[#allocation2 + $0xc0] sm:$0xf] %v2760_v2  ;;  %v2862_v27 = vrot.slane %v2846_v51, 4  ;;  %v4537_v47 = vpop.permute.xlu1 %2470  ;;  %v2891_v3 = vpop.permute.xlu0 %2890  ;;  %v2419_v15 = vrot.slane %v4583_v19, %v3807_v35 }
 0x4b6   : > { %v2490_v23 = vsel %vm1267_vm4, %v2469_v32, %v4537_v47  ;;  %v2904_v13 = vsel %vm1691_vm2, %v2889_v39, %v2891_v3  ;;  %v2985_v49 = vld [vmem:[#allocation2 + $0x110] sm:$0xff] }
 0x4b7   : > { %2878 = vst [vmem:[#allocation2 + $0xd8] sm:$0xf0] %v2862_v27  ;;  %v2537_v37 = vmul.f32 %v2503_v11, %v2490_v23  ;;  %v2954_v0 = vmul.f32 %v2923_v59, %v2904_v13  ;;  %v2627_v23 = vrot.slane %v4473_v17, %v3936_v5 }
 0x4b8   : > { %v2993_v36 = vld [vmem:[#allocation2 + $0x118] sm:$0xff] }
 0x4b9   : > { %v2553_v38 = vrot.slane %v2537_v37, 4  ;;  %2962 = vst [vmem:[#allocation2 + $0x30] sm:$0xf] %v2954_v0  ;;  %v4554_v39 = vpop.permute.xlu1 %2784  ;;  %3064 = vmatprep.subr.mxu0 %v2993_v36  ;;  %v4556_v53 = vpop.permute.xlu0 %2482  ;;  %v2731_v36 = vrot.slane %v4492_v61, %v3871_v4 }
 0x4ba   : > { %v2795_v41 = vsel %vm1581_vm0, %v2783_v50, %v4554_v39  ;;  %v2491_v54 = vsel %vm1267_vm4, %v4556_v53, %v2469_v32  ;;  %v2984_v32 = vld [vmem:[#allocation2 + $0x128] sm:$0xff] }
 0x4bb   : > { %2569 = vst [vmem:[#allocation2 + $0x108] sm:$0xf0] %v2553_v38  ;;  %v2847_v42 = vmul.f32 %v2819_v25, %v2795_v41  ;;  %v2536_v63 = vmul.f32 %v2499_v9, %v2491_v54  ;;  %v2735_v41 = vrot.slane %v4492_v61, %v3936_v5  ;;  %v2415_v54 = vrot.slane %v4583_v19, %v3804_v34 }
 0x4bc   : > { %v2992_v44 = vld [vmem:[#allocation2 + $0xc0] sm:$0xff] }
 0x4bd   : > { %v2863_v55 = vrot.slane %v2847_v42, 4  ;;  %v2552_v21 = vrot.slane %v2536_v63, 4  ;;  %v4574_v56 = vpop.permute.xlu1 %2892  ;;  %3065 = vmatpush1.msra.mxu0 %v2992_v44  ;;  %v4576_v40 = vpop.permute.xlu0 %2278  ;;  %v2216_v42 = vld [vmem:[%s4897_s2] ss:$8 sm:$0xf] }
 0x4be   : > { %v2903_v28 = vsel %vm1691_vm2, %v2891_v3, %v4574_v56  ;;  %3066 = vmatprep.subr.mxu0 %v2985_v49  ;;  %v2623_v3 = vrot.slane %v4473_v17, %v3871_v4  ;;  %v2307_v49 = vrot.slane %v4566_v24, %v3804_v34 }
 0x4bf   : > { %2879 = vst [vmem:[#allocation2 + $0xa0] sm:$0xf0] %v2863_v55  ;;  %2568 = vst [vmem:[#allocation2 + $0x80] sm:$0xf0] %v2552_v21  ;;  %v2955_v30 = vmul.f32 %v2927_v26, %v2903_v28  ;;  %3067 = vmatpush1.msra.mxu0 %v2984_v32 }
 0x4c0   : > { %v3002_v25 = vld [vmem:[#allocation2 + $0x30] sm:$0xf] }
 0x4c1   : > { %2963 = vst [vmem:[#allocation2 + $0x40] sm:$0xf] %v2955_v30  ;;  %v2277_v16 = vpop.permute.xlu1 %2276  ;;  %v4585_v57 = vpop.permute.xlu0 %2386 }
 0x4c2   : > { %v2298_v50 = vsel %vm1071_vm6, %v2277_v16, %v4576_v40 }
 0x4c3   : > { %v2345_v60 = vmul.f32 %v2311_v52, %v2298_v50 }
 0x4c5   : > { %v2361_v2 = vrot.slane %v2345_v60, 4  ;;  %v2385_v51 = vpop.permute.xlu1 %2384  ;;  %v4592_v11 = vpop.permute.xlu0 %2592 }
 0x4c6   : > { %v2406_v59 = vsel %vm1181_vm7, %v2385_v51, %v4585_v57 }
 0x4c7   : > { %2377 = vst [vmem:[#allocation2 + $0xd0] sm:$0xf0] %v2361_v2  ;;  %v2453_v27 = vmul.f32 %v2419_v15, %v2406_v59 }
 0x4c8   : > { %v3003_v13 = vld [vmem:[#allocation2 + $0x40] sm:$0xf] }
 0x4c9   : > { %2461 = vst [vmem:[#allocation2 + $0x108] sm:$0xf] %v2453_v27  ;;  %v2591_v37 = vpop.permute.xlu1 %2590  ;;  %3507 = vmatprep.subr.msk.mxu1 %vm1810_vm5, %v3003_v13  ;;  %v4602_v0 = vpop.permute.xlu0 %2700 }
 0x4ca   : > { %v2603_v9 = vsel %vm1385_vm1, %v2591_v37, %v4592_v11  ;;  %v2604_v48 = vsel %vm1385_vm1, %v4494_v12, %v2591_v37  ;;  %3508 = vmatpush1.msk.msra.mxu1 %vm1810_vm5, %v3002_v25  ;;  %v2217_v12 = vld [vmem:[%s4897_s2] ss:$8 sm:$0xf0]  ;;  %v2507_v37 = vrot.slane %v4522_v20, %v3871_v4  ;;  %v2315_v25 = vrot.slane %v4566_v24, %v3871_v4 }
 0x4cb   : > { %v2654_v29 = vmul.f32 %v2623_v3, %v2604_v48  ;;  %v2655_v38 = vmul.f32 %v2627_v23, %v2603_v9  ;;  %v4636_v52 = vor.u32 %v2217_v12, %v2216_v42 }
 0x4cd   : > { %v2670_v63 = vrot.slane %v2654_v29, 4  ;;  %v2671_v26 = vrot.slane %v2655_v38, 4  ;;  %v2699_v18 = vpop.permute.xlu1 %2698  ;;  %v4623_v44 = vpop.permute.xlu0 %2398  ;;  %v2223_v12 = vrot.slane %v4636_v52, %v3804_v34 }
 0x4ce   : > { %v2711_v62 = vsel %vm1495_vm3, %v2699_v18, %v4602_v0  ;;  %v2712_v55 = vsel %vm1495_vm3, %v4513_v1, %v2699_v18  ;;  %v2407_v21 = vsel %vm1181_vm7, %v4623_v44, %v2385_v51  ;;  %v2227_v51 = vrot.slane %v4636_v52, %v3807_v35 }
 0x4cf   : > { %2686 = vst [vmem:[#allocation2 + $0x8] sm:$0xf0] %v2670_v63  ;;  %2687 = vst [vmem:[#allocation2 + $0x98] sm:$0xf0] %v2671_v26  ;;  %v2762_v28 = vmul.f32 %v2731_v36, %v2712_v55  ;;  %v2763_v32 = vmul.f32 %v2735_v41, %v2711_v62  ;;  %v2452_v30 = vmul.f32 %v2415_v54, %v2407_v21 }
 0x4d0   : > { %v2977_v50 = vld [vmem:[#allocation2 + $0x108] sm:$0xff]  ;;  %v2423_v55 = vrot.slane %v4583_v19, %v3871_v4 }
 0x4d1   : > { %2770 = vst [vmem:[#allocation2 + $0xd8] sm:$0xf] %v2762_v28  ;;  %2771 = vst [vmem:[#allocation2 + $0xa0] sm:$0xf] %v2763_v32  ;;  %v4638_v60 = vpop.permute.xlu1 %2290  ;;  %v4640_v1 = vpop.permute.xlu0 %2194  ;;  %3068 = vmatprep.subr.mxu0 %v2977_v50 }
 0x4d2   : > { %2460 = vst [vmem:[#allocation2 + $0x80] sm:$0xf] %v2452_v30  ;;  %v2299_v15 = vsel %vm1071_vm6, %v4638_v60, %v2277_v16  ;;  %v2511_v16 = vrot.slane %v4522_v20, %v3936_v5 }
 0x4d3   : > { %v2344_v2 = vmul.f32 %v2307_v49, %v2299_v15  ;;  %v2319_v15 = vrot.slane %v4566_v24, %v3936_v5 }
 0x4d5   : > { %v2360_v59 = vrot.slane %v2344_v2, 4  ;;  %v2193_v27 = vpop.permute.xlu1 %2192  ;;  %v4647_v3 = vpop.permute.xlu0 %2474  ;;  %v2823_v2 = vrot.slane %v4420_v6, %v4053_v7 }
 0x4d6   : > { %v2214_v23 = vsel %vm986_vm8, %v2193_v27, %v4640_v1  ;;  %v2987_v42 = vld [vmem:[#allocation2 + $0x98] sm:$0xff]  ;;  %v2986_v62 = vld [vmem:[#allocation2 + $0x8] sm:$0xff] }
 0x4d7   : > { %2376 = vst [vmem:[#allocation2 + $0xb0] sm:$0xf0] %v2360_v59  ;;  %v2261_v13 = vmul.f32 %v2227_v51, %v2214_v23 }
 0x4d8   : > { %v2995_v35 = vld [vmem:[#allocation2 + $0xa0] sm:$0xff]  ;;  %v2994_v48 = vld [vmem:[#allocation2 + $0xd8] sm:$0xff] }
 0x4d9   : > { %v2976_v9 = vld [vmem:[#allocation2 + $0x80] sm:$0xff]  ;;  %2269 = vst [vmem:[#allocation2 + $0xd0] sm:$0xf] %v2261_v13  ;;  %v2473_v36 = vpop.permute.xlu1 %2472  ;;  %3135 = vmatprep.subr.mxu1 %v2995_v35  ;;  %v2281_v29 = vpop.permute.xlu0 %2280 }
 0x4da   : > { %3069 = vmatpush1.msra.mxu0 %v2976_v9  ;;  %v2488_v38 = vsel %vm1267_vm4, %v2473_v36, %v4647_v3  ;;  %v2489_v41 = vsel %vm1267_vm4, %v4537_v47, %v2473_v36  ;;  %v2297_v54 = vsel %vm1071_vm6, %v4576_v40, %v2281_v29  ;;  %3136 = vmatpush1.msra.mxu1 %v2994_v48 }
 0x4db   : > { %v2538_v63 = vmul.f32 %v2507_v37, %v2489_v41  ;;  %v2539_v26 = vmul.f32 %v2511_v16, %v2488_v38  ;;  %v2346_v18 = vmul.f32 %v2315_v25, %v2297_v54  ;;  %3137 = vmatprep.subr.mxu1 %v2987_v42  ;;  %v2427_v16 = vrot.slane %v4583_v19, %v3936_v5 }
 0x4dc   : > { %3138 = vmatpush1.msra.mxu1 %v2986_v62  ;;  %v2931_v25 = vrot.slane %v4445_v22, %v4053_v7  ;;  %v2827_v54 = vrot.slane %v4420_v6, %v4134_v45  ;;  %v2231_v42 = vrot.slane %v4636_v52, %v3871_v4 }
 0x4dd   : > { %v2554_v21 = vrot.slane %v2538_v63, 4  ;;  %v2555_v47 = vrot.slane %v2539_v26, 4  ;;  %v2362_v49 = vrot.slane %v2346_v18, 4  ;;  %v4671_v28 = vpop.permute.xlu1 %2206  ;;  %v2389_v40 = vpop.permute.xlu0 %2388 }
 0x4de   : > { %v2215_v32 = vsel %vm986_vm8, %v4671_v28, %v2193_v27  ;;  %v2405_v34 = vsel %vm1181_vm7, %v4585_v57, %v2389_v40 }
 0x4df   : > { %2570 = vst [vmem:[#allocation2 + $0x138] sm:$0xf0] %v2554_v21  ;;  %2571 = vst [vmem:[#allocation2 + $0xf0] sm:$0xf0] %v2555_v47  ;;  %v2260_v30 = vmul.f32 %v2223_v12, %v2215_v32  ;;  %v2454_v50 = vmul.f32 %v2423_v55, %v2405_v34  ;;  %v4710_v12 = vld [vmem:[%s4900_s5] sm:$0xff]  ;;  %v2935_v21 = vrot.slane %v4445_v22, %v4134_v45 }
 0x4e0   : > { %2378 = vst [vmem:[#allocation2 + $0x10] sm:$0xf0] %v2362_v49  ;;  %v2969_v51 = vld [vmem:[#allocation2 + $0xd0] sm:$0xff]  ;;  %v2631_v47 = vrot.slane %v4473_v17, %v4053_v7 }
 0x4e1   : > { %2268 = vst [vmem:[#allocation2 + $0xb0] sm:$0xf] %v2260_v30  ;;  %2462 = vst [vmem:[#allocation2 + $0x138] sm:$0xf] %v2454_v50  ;;  %v4683_v59 = vpop.permute.xlu1 %2282  ;;  %v2787_v27 = vpop.permute.xlu0 %2786  ;;  %3070 = vmatprep.subr.mxu0 %v2969_v51 }
 0x4e2   : > { %v2296_v57 = vsel %vm1071_vm6, %v2281_v29, %v4683_v59  ;;  %v2794_v23 = vsel %vm1581_vm0, %v4554_v39, %v2787_v27 }
 0x4e3   : > { %v2347_v13 = vmul.f32 %v2319_v15, %v2296_v57  ;;  %v2848_v37 = vmul.f32 %v2823_v2, %v2794_v23  ;;  %v2235_v15 = vrot.slane %v4636_v52, %v3936_v5  ;;  %v2739_v2 = vrot.slane %v4492_v61, %v4053_v7 }
 0x4e5   : > { %v2363_v35 = vrot.slane %v2347_v13, 4  ;;  %v2864_v9 = vrot.slane %v2848_v37, 4  ;;  %v4695_v48 = vpop.permute.xlu1 %2390  ;;  %v2895_v36 = vpop.permute.xlu0 %2894 }
 0x4e6   : > { %v2404_v29 = vsel %vm1181_vm7, %v2389_v40, %v4695_v48  ;;  %v2902_v39 = vsel %vm1691_vm2, %v4574_v56, %v2895_v36 }
 0x4e7   : > { %2379 = vst [vmem:[#allocation2 + $0x48] sm:$0xf0] %v2363_v35  ;;  %2880 = vst [vmem:[#allocation2 + $0x68] sm:$0xf0] %v2864_v9  ;;  %v2455_v38 = vmul.f32 %v2427_v16, %v2404_v29  ;;  %v2956_v41 = vmul.f32 %v2931_v25, %v2902_v39  ;;  %v2635_v25 = vrot.slane %v4473_v17, %v4134_v45 }
 0x4e8   : > { %v2968_v63 = vld [vmem:[#allocation2 + $0xb0] sm:$0xff]  ;;  %v2978_v13 = vld [vmem:[#allocation2 + $0x138] sm:$0xff]  ;;  %v2515_v35 = vrot.slane %v4522_v20, %v4053_v7  ;;  %v2743_v39 = vrot.slane %v4492_v61, %v4134_v45 }
 0x4e9   : > { %2463 = vst [vmem:[#allocation2 + $0xf0] sm:$0xf] %v2455_v38  ;;  %2964 = vst [vmem:[#allocation2 + $0x28] sm:$0xf] %v2956_v41  ;;  %v2789_v26 = vpop.permute.xlu1 %2788  ;;  %v2197_v56 = vpop.permute.xlu0 %2196  ;;  %3071 = vmatpush1.msra.mxu0 %v2968_v63 }
 0x4ea   : > { %v2793_v18 = vsel %vm1581_vm0, %v2787_v27, %v2789_v26  ;;  %v2213_v62 = vsel %vm986_vm8, %v4640_v1, %v2197_v56  ;;  %3506 = vmatmul.mubr.msk.f32.vlgmr.msra.gmra.mxu0 %vm1806_vm9, %v4710_v12 }
 0x4eb   : > { %v2849_v4 = vmul.f32 %v2827_v54, %v2793_v18  ;;  %v2262_v55 = vmul.f32 %v2231_v42, %v2213_v62  ;;  %3246 = vmatprep.mubr.f32.mxu0 %v3606_v14  ;;  %v2831_v54 = vrot.slane %v4420_v6, %v4137_v46  ;;  %v2835_v42 = vrot.slane %v4420_v6, %v4109_v58 }
 0x4ed   : > { %v2865_v49 = vrot.slane %v2849_v4, 4  ;;  %2270 = vst [vmem:[#allocation2 + $0x10] sm:$0xf] %v2262_v55  ;;  %v4724_v40 = vpop.permute.xlu1 %2896  ;;  %v2595_v32 = vpop.permute.xlu0 %2594 }
 0x4ee   : > { %v2901_v1 = vsel %vm1691_vm2, %v2895_v36, %v4724_v40  ;;  %v2602_v34 = vsel %vm1385_vm1, %v4592_v11, %v2595_v32 }
 0x4ef   : > { %2881 = vst [vmem:[#allocation2 + $0x130] sm:$0xf0] %v2865_v49  ;;  %v2957_v30 = vmul.f32 %v2935_v21, %v2901_v1  ;;  %v2656_v50 = vmul.f32 %v2631_v47, %v2602_v34  ;;  %v2519_v47 = vrot.slane %v4522_v20, %v4134_v45  ;;  %v2323_v34 = vrot.slane %v4566_v24, %v4053_v7 }
 0x4f0   : > { %v2979_v51 = vld [vmem:[#allocation2 + $0xf0] sm:$0xff] }
 0x4f1   : > { %2965 = vst [vmem:[#allocation2] sm:$0xf] %v2957_v30  ;;  %v2672_v27 = vrot.slane %v2656_v50, 4  ;;  %v4736_v57 = vpop.permute.xlu1 %2198  ;;  %3139 = vmatprep.subr.mxu1 %v2979_v51  ;;  %v2703_v23 = vpop.permute.xlu0 %2702 }
 0x4f2   : > { %v2212_v11 = vsel %vm986_vm8, %v2197_v56, %v4736_v57  ;;  %v2710_v37 = vsel %vm1495_vm3, %v4602_v0, %v2703_v23  ;;  %3140 = vmatpush1.msra.mxu1 %v2978_v13 }
 0x4f3   : > { %2688 = vst [vmem:[#allocation2 + $0xa8] sm:$0xf0] %v2672_v27  ;;  %v2263_v5 = vmul.f32 %v2235_v15, %v2212_v11  ;;  %v2764_v16 = vmul.f32 %v2739_v2, %v2710_v37  ;;  %v2943_v37 = vrot.slane %v4445_v22, %v4109_v58 }
 0x4f4   : > { %v2970_v2 = vld [vmem:[#allocation2 + $0x10] sm:$0xff] }
 0x4f5   : > { %2271 = vst [vmem:[#allocation2 + $0x48] sm:$0xf] %v2263_v5  ;;  %2772 = vst [vmem:[#allocation2 + $0x68] sm:$0xf] %v2764_v16  ;;  %v4748_v9 = vpop.permute.xlu1 %2596  ;;  %v2477_v36 = vpop.permute.xlu0 %2476  ;;  %v2431_v5 = vrot.slane %v4583_v19, %v4053_v7 }
 0x4f6   : > { %v2601_v29 = vsel %vm1385_vm1, %v2595_v32, %v4748_v9  ;;  %v2487_v0 = vsel %vm1267_vm4, %v4647_v3, %v2477_v36  ;;  %v3004_v3 = vld [vmem:[#allocation2 + $0x28] sm:$0xf] }
 0x4f7   : > { %v2657_v38 = vmul.f32 %v2635_v25, %v2601_v29  ;;  %v2540_v41 = vmul.f32 %v2515_v35, %v2487_v0 }
 0x4f8   : > { %v3005_v63 = vld [vmem:[#allocation2] sm:$0xf] }
 0x4f9   : > { %v2673_v56 = vrot.slane %v2657_v38, 4  ;;  %v2556_v18 = vrot.slane %v2540_v41, 4  ;;  %v4762_v62 = vpop.permute.xlu1 %2704  ;;  %v2791_v4 = vpop.permute.xlu0 %2790  ;;  %3510 = vmatprep.subr.msk.mxu0 %vm1810_vm5, %v3005_v63 }
 0x4fa   : > { %v2709_v55 = vsel %vm1495_vm3, %v2703_v23, %v4762_v62  ;;  %v2792_v21 = vsel %vm1581_vm0, %v2789_v26, %v2791_v4  ;;  %v2799_v6 = vsel %vm1581_vm0, %v2791_v4, %v4447_v31  ;;  %3511 = vmatpush1.msk.msra.mxu0 %vm1810_vm5, %v3004_v3  ;;  %v2939_v23 = vrot.slane %v4445_v22, %v4137_v46 }
 0x4fb   : > { %2689 = vst [vmem:[#allocation2 + $0x90] sm:$0xf0] %v2673_v56  ;;  %2572 = vst [vmem:[#allocation2 + $0x18] sm:$0xf0] %v2556_v18  ;;  %v2765_v49 = vmul.f32 %v2743_v39, %v2709_v55  ;;  %v2850_v32 = vmul.f32 %v2831_v54, %v2792_v21  ;;  %v2851_v1 = vmul.f32 %v2835_v42, %v2799_v6  ;;  %v2988_v6 = vld [vmem:[#allocation2 + $0xa8] sm:$0xff] }
 0x4fc   : > { %v2971_v30 = vld [vmem:[#allocation2 + $0x48] sm:$0xff]  ;;  %v2643_v54 = vrot.slane %v4473_v17, %v4109_v58  ;;  %v2435_v4 = vrot.slane %v4583_v19, %v4134_v45 }
 0x4fd   : > { %2773 = vst [vmem:[#allocation2 + $0x130] sm:$0xf] %v2765_v49  ;;  %v2866_v26 = vrot.slane %v2850_v32, 4  ;;  %v2867_v50 = vrot.slane %v2851_v1, 4  ;;  %v4778_v15 = vpop.permute.xlu1 %2478  ;;  %3141 = vmatprep.subr.mxu1 %v2971_v30  ;;  %v2285_v31 = vpop.permute.xlu0 %2284 }
 0x4fe   : > { %v2486_v51 = vsel %vm1267_vm4, %v2477_v36, %v4778_v15  ;;  %v2295_v27 = vsel %vm1071_vm6, %v4683_v59, %v2285_v31  ;;  %3142 = vmatpush1.msra.mxu1 %v2970_v2  ;;  %v2327_v36 = vrot.slane %v4566_v24, %v4134_v45  ;;  %v2523_v2 = vrot.slane %v4522_v20, %v4137_v46 }
 0x4ff   : > { %2882 = vst [vmem:[#allocation2 + $0x50] sm:$0xf0] %v2866_v26  ;;  %2883 = vst [vmem:[#allocation2 + $0xe8] sm:$0xf0] %v2867_v50  ;;  %v2541_v13 = vmul.f32 %v2519_v47, %v2486_v51  ;;  %v2348_v11 = vmul.f32 %v2323_v34, %v2295_v27  ;;  %3509 = vmatmul.mubr.msk.f32.vlgmr.msra.gmra.mxu1 %vm1806_vm9, %v4710_v12  ;;  %v2239_v47 = vrot.slane %v4636_v52, %v4053_v7 }
 0x500   : > { %3317 = vmatprep.mubr.f32.mxu1 %v3606_v14  ;;  %v2639_v14 = vrot.slane %v4473_v17, %v4137_v46  ;;  %v2747_v26 = vrot.slane %v4492_v61, %v4137_v46  ;;  %v2751_v50 = vrot.slane %v4492_v61, %v4109_v58  ;;  %v2527_v51 = vrot.slane %v4522_v20, %v4109_v58 }
 0x501   : > { %v2557_v59 = vrot.slane %v2541_v13, 4  ;;  %v2364_v16 = vrot.slane %v2348_v11, 4  ;;  %v2899_v25 = vpop.permute.xlu1 %2898  ;;  %v2393_v35 = vpop.permute.xlu0 %2392  ;;  %v2243_v61 = vrot.slane %v4636_v52, %v4134_v45  ;;  %v2439_v11 = vrot.slane %v4583_v19, %v4137_v46 }
 0x502   : > { %v2900_v29 = vsel %vm1691_vm2, %v4724_v40, %v2899_v25  ;;  %v2907_v22 = vsel %vm1691_vm2, %v2899_v25, %v4481_v8  ;;  %v2403_v0 = vsel %vm1181_vm7, %v4695_v48, %v2393_v35  ;;  %v2996_v48 = vld [vmem:[#allocation2 + $0x68] sm:$0xff]  ;;  %v2989_v18 = vld [vmem:[#allocation2 + $0x90] sm:$0xff] }
 0x503   : > { %2573 = vst [vmem:[#allocation2 + $0xc8] sm:$0xf0] %v2557_v59  ;;  %2380 = vst [vmem:[#allocation2 + $0x120] sm:$0xf0] %v2364_v16  ;;  %v2958_v39 = vmul.f32 %v2939_v23, %v2900_v29  ;;  %v2959_v38 = vmul.f32 %v2943_v37, %v2907_v22  ;;  %v2456_v41 = vmul.f32 %v2431_v5, %v2403_v0 }
 0x504   : > { %v2997_v40 = vld [vmem:[#allocation2 + $0x130] sm:$0xff]  ;;  %v2443_v37 = vrot.slane %v4583_v19, %v4109_v58  ;;  %v2331_v0 = vrot.slane %v4566_v24, %v4137_v46 }
 0x505   : > { %2966 = vst [vmem:[#allocation2 + $0xb8] sm:$0xf] %v2958_v39  ;;  %2967 = vst [vmem:[#allocation2 + $0x60] sm:$0xf] %v2959_v38  ;;  %v4810_v8 = vpop.permute.xlu1 %2286  ;;  %v2599_v42 = vpop.permute.xlu0 %2598  ;;  %3206 = vmatprep.subr.mxu0 %v2997_v40 }
 0x506   : > { %2464 = vst [vmem:[#allocation2 + $0x18] sm:$0xf] %v2456_v41  ;;  %v2294_v63 = vsel %vm1071_vm6, %v2285_v31, %v4810_v8  ;;  %v2600_v56 = vsel %vm1385_vm1, %v4748_v9, %v2599_v42  ;;  %v2607_v17 = vsel %vm1385_vm1, %v2599_v42, %v4496_v43  ;;  %3207 = vmatpush1.msra.mxu0 %v2996_v48 }
 0x507   : > { %v2349_v3 = vmul.f32 %v2327_v36, %v2294_v63  ;;  %v2658_v55 = vmul.f32 %v2639_v14, %v2600_v56  ;;  %v2659_v21 = vmul.f32 %v2643_v54, %v2607_v17  ;;  %3208 = vmatprep.subr.mxu0 %v2989_v18  ;;  %v2335_v41 = vrot.slane %v4566_v24, %v4109_v58 }
 0x508   : > { %3209 = vmatpush1.msra.mxu0 %v2988_v6  ;;  %v2247_v24 = vrot.slane %v4636_v52, %v4137_v46  ;;  %v2251_v17 = vrot.slane %v4636_v52, %v4109_v58 }
 0x509   : > { %v2365_v49 = vrot.slane %v2349_v3, 4  ;;  %v2674_v9 = vrot.slane %v2658_v55, 4  ;;  %v2675_v32 = vrot.slane %v2659_v21, 4  ;;  %v2395_v1 = vpop.permute.xlu1 %2394  ;;  %v2201_v34 = vpop.permute.xlu0 %2200 }
 0x50a   : > { %v2402_v43 = vsel %vm1181_vm7, %v2393_v35, %v2395_v1  ;;  %v2211_v30 = vsel %vm986_vm8, %v4736_v57, %v2201_v34 }
 0x50b   : > { %2381 = vst [vmem:[#allocation2 + $0x38] sm:$0xf0] %v2365_v49  ;;  %2690 = vst [vmem:[#allocation2 + $0xe0] sm:$0xf0] %v2674_v9  ;;  %v2457_v7 = vmul.f32 %v2435_v4, %v2402_v43  ;;  %v2264_v31 = vmul.f32 %v2239_v47, %v2211_v30 }
 0x50c   : > { %2691 = vst [vmem:[#allocation2 + $0x88] sm:$0xf0] %v2675_v32  ;;  %v3007_v27 = vld [vmem:[#allocation2 + $0x60] sm:$0xf]  ;;  %v3006_v23 = vld [vmem:[#allocation2 + $0xb8] sm:$0xf] }
 0x50d   : > { %2465 = vst [vmem:[#allocation2 + $0xc8] sm:$0xf] %v2457_v7  ;;  %2272 = vst [vmem:[#allocation2 + $0x120] sm:$0xf] %v2264_v31  ;;  %v2707_v57 = vpop.permute.xlu1 %2706  ;;  %3513 = vmatprep.subr.msk.mxu1 %vm1810_vm5, %v3007_v27  ;;  %v2481_v13 = vpop.permute.xlu0 %2480 }
 0x50e   : > { %v2708_v20 = vsel %vm1495_vm3, %v4762_v62, %v2707_v57  ;;  %v2715_v5 = vsel %vm1495_vm3, %v2707_v57, %v4525_v10  ;;  %v2484_v59 = vsel %vm1267_vm4, %v2481_v13, %v4556_v53  ;;  %v2485_v45 = vsel %vm1267_vm4, %v4778_v15, %v2481_v13  ;;  %3514 = vmatpush1.msk.msra.mxu1 %vm1810_vm5, %v3006_v23 }
 0x50f   : > { %v2766_v16 = vmul.f32 %v2747_v26, %v2708_v20  ;;  %v2767_v19 = vmul.f32 %v2751_v50, %v2715_v5  ;;  %v2542_v25 = vmul.f32 %v2523_v2, %v2485_v45  ;;  %v2543_v35 = vmul.f32 %v2527_v51, %v2484_v59 }
 0x511   : > { %2774 = vst [vmem:[#allocation2 + $0x50] sm:$0xf] %v2766_v16  ;;  %2775 = vst [vmem:[#allocation2 + $0xe8] sm:$0xf] %v2767_v19  ;;  %v2558_v62 = vrot.slane %v2542_v25, 4  ;;  %v2559_v36 = vrot.slane %v2543_v35, 4  ;;  %v2203_v29 = vpop.permute.xlu1 %2202  ;;  %v2397_v10 = vpop.permute.xlu0 %2396 }
 0x512   : > { %v2210_v22 = vsel %vm986_vm8, %v2201_v34, %v2203_v29  ;;  %v2400_v53 = vsel %vm1181_vm7, %v2397_v10, %v4623_v44  ;;  %v2401_v15 = vsel %vm1181_vm7, %v2395_v1, %v2397_v10  ;;  %v2980_v44 = vld [vmem:[#allocation2 + $0x18] sm:$0xff]  ;;  %v2990_v58 = vld [vmem:[#allocation2 + $0xe0] sm:$0xff] }
 0x513   : > { %2574 = vst [vmem:[#allocation2 + $0x70] sm:$0xf0] %v2558_v62  ;;  %2575 = vst [vmem:[#allocation2 + $0x20] sm:$0xf0] %v2559_v36  ;;  %v2265_v14 = vmul.f32 %v2243_v61, %v2210_v22  ;;  %v2458_v39 = vmul.f32 %v2439_v11, %v2401_v15  ;;  %v2459_v38 = vmul.f32 %v2443_v37, %v2400_v53  ;;  %v2991_v6 = vld [vmem:[#allocation2 + $0x88] sm:$0xff] }
 0x514   : > { %v2981_v54 = vld [vmem:[#allocation2 + $0xc8] sm:$0xff] }
 0x515   : > { %2273 = vst [vmem:[#allocation2 + $0x38] sm:$0xf] %v2265_v14  ;;  %2466 = vst [vmem:[#allocation2 + $0x70] sm:$0xf] %v2458_v39  ;;  %v2289_v40 = vpop.permute.xlu1 %2288  ;;  %3210 = vmatprep.subr.mxu0 %v2981_v54 }
 0x516   : > { %2467 = vst [vmem:[#allocation2 + $0x20] sm:$0xf] %v2459_v38  ;;  %v2292_v42 = vsel %vm1071_vm6, %v2289_v40, %v4638_v60  ;;  %v2293_v48 = vsel %vm1071_vm6, %v4810_v8, %v2289_v40  ;;  %3211 = vmatpush1.msra.mxu0 %v2980_v44 }
 0x517   : > { %v2350_v63 = vmul.f32 %v2331_v0, %v2293_v48  ;;  %v2351_v56 = vmul.f32 %v2335_v41, %v2292_v42 }
 0x518   : > { %v2999_v18 = vld [vmem:[#allocation2 + $0xe8] sm:$0xff]  ;;  %v2998_v4 = vld [vmem:[#allocation2 + $0x50] sm:$0xff] }
 0x519   : > { %v2366_v3 = vrot.slane %v2350_v63, 4  ;;  %v2367_v55 = vrot.slane %v2351_v56, 4  ;;  %v2205_v21 = vpop.permute.xlu1 %2204  ;;  %3277 = vmatprep.subr.mxu1 %v2999_v18 }
 0x51a   : > { %v2208_v60 = vsel %vm986_vm8, %v2205_v21, %v4671_v28  ;;  %v2209_v8 = vsel %vm986_vm8, %v2203_v29, %v2205_v21  ;;  %3278 = vmatpush1.msra.mxu1 %v2998_v4  ;;  %v2972_v28 = vld [vmem:[#allocation2 + $0x120] sm:$0xff] }
 0x51b   : > { %2382 = vst [vmem:[#allocation2 + $0xf8] sm:$0xf0] %v2366_v3  ;;  %2383 = vst [vmem:[#allocation2 + $0x100] sm:$0xf0] %v2367_v55  ;;  %v2266_v46 = vmul.f32 %v2247_v24, %v2209_v8  ;;  %v2267_v47 = vmul.f32 %v2251_v17, %v2208_v60  ;;  %3279 = vmatprep.subr.mxu1 %v2991_v6 }
 0x51c   : > { %3280 = vmatpush1.msra.mxu1 %v2990_v58  ;;  %v2973_v52 = vld [vmem:[#allocation2 + $0x38] sm:$0xff]  ;;  %v2982_v9 = vld [vmem:[#allocation2 + $0x70] sm:$0xff] }
 0x51d   : > { %v2983_v49 = vld [vmem:[#allocation2 + $0x20] sm:$0xff]  ;;  %2274 = vst [vmem:[#allocation2 + $0xf8] sm:$0xf] %v2266_v46  ;;  %2275 = vst [vmem:[#allocation2 + $0x100] sm:$0xf] %v2267_v47  ;;  %3212 = vmatprep.subr.mxu0 %v2973_v52 }
 0x51e   : > { %3281 = vmatprep.subr.mxu1 %v2983_v49  ;;  %3213 = vmatpush1.msra.mxu0 %v2972_v28  ;;  %v3011_v43 = vpop.permute.xlu0 %3010 }
 0x51f   : > { %3282 = vmatpush1.msra.mxu1 %v2982_v9  ;;  %3512 = vmatmul.mubr.msk.f32.vlgmr.msra.gmra.mxu0 %vm1806_vm9, %v4710_v12 }
 0x524   : > { %v2975_v33 = vld [vmem:[#allocation2 + $0x100] sm:$0xff]  ;;  %v2974_v32 = vld [vmem:[#allocation2 + $0xf8] sm:$0xff] }
 0x525   : > { %3283 = vmatprep.subr.mxu1 %v2975_v33 }
 0x526   : > { %3284 = vmatpush1.msra.mxu1 %v2974_v32 }
 0x527   : > { %3515 = vmatmul.mubr.msk.f32.vlgmr.msra.gmra.mxu1 %vm1806_vm9, %v4710_v12 }
 0x5aa   : > { %v3106_v1 = vpop.f32.mrf.mxu0 }
 0x5ab   : > { %v3107_v50 = vadd.f32 %v3106_v1, %v3011_v43 }
 0x5ac   : > { %v3108_v34 = vpop.f32.mrf.mxu0 }
 0x5ad   : > { %v3109_v26 = vadd.f32 %v3108_v34, %v3011_v43 }
 0x5af   : > { %v3324_v2 = vadd.f32 %v3109_v26, %v3107_v50 }
 0x5bf   : > { %v3177_v30 = vpop.f32.mrf.mxu1 }
 0x5c0   : > { %v3178_v7 = vadd.f32 %v3177_v30, %v3011_v43 }
 0x5c1   : > { %v3179_v31 = vpop.f32.mrf.mxu1 }
 0x5c2   : > { %v3325_v51 = vadd.f32 %v3324_v2, %v3178_v7  ;;  %v3180_v27 = vadd.f32 %v3179_v31, %v3011_v43 }
 0x5c4   : > { %v3326_v61 = vadd.f32 %v3325_v51, %v3180_v27 }
 0x5df   : > { %v3248_v23 = vpop.f32.mrf.mxu0 }
 0x5e0   : > { %v3249_v57 = vadd.f32 %v3248_v23, %v3011_v43 }
 0x5e1   : > { %v3250_v13 = vpop.f32.mrf.mxu0 }
 0x5e2   : > { %v3327_v11 = vadd.f32 %v3326_v61, %v3249_v57  ;;  %v3251_v37 = vadd.f32 %v3250_v13, %v3011_v43 }
 0x5e4   : > { %v3328_v5 = vadd.f32 %v3327_v11, %v3251_v37 }
 0x5e7   : > { %v3319_v20 = vpop.f32.mrf.mxu1 }
 0x5e8   : > { %v3320_v12 = vadd.f32 %v3319_v20, %v3011_v43 }
 0x5e9   : > { %v3321_v59 = vpop.f32.mrf.mxu1 }
 0x5ea   : > { %v3329_v45 = vadd.f32 %v3328_v5, %v3320_v12  ;;  %v3322_v16 = vadd.f32 %v3321_v59, %v3011_v43 }
 0x5ec   : > { %v3330_v19 = vadd.f32 %v3329_v45, %v3322_v16 }
 0x5ee   : > { %3331 = vadd.xlane.f32.xlu1 %v3330_v19 }
 0x677   : > { %v3332_v25 = vpop.xlane.xlu1 %3331 }
 0x678   : > { %v3333_v35 = vmul.f32 0.0009765625, %v3332_v25 }
 0x67a   : > { %v3334_v62 = vsub.f32 %v3107_v50, %v3333_v35  ;;  %v3335_v36 = vsub.f32 %v3109_v26, %v3333_v35  ;;  %v3336_v29 = vsub.f32 %v3178_v7, %v3333_v35  ;;  %v3337_v10 = vsub.f32 %v3180_v27, %v3333_v35 }
 0x67b   : > { %v3338_v15 = vsub.f32 %v3249_v57, %v3333_v35  ;;  %v3339_v39 = vsub.f32 %v3251_v37, %v3333_v35  ;;  %v3340_v54 = vsub.f32 %v3320_v12, %v3333_v35  ;;  %v3341_v42 = vsub.f32 %v3322_v16, %v3333_v35 }
 0x67c   : > { %v3342_v22 = vmul.f32 %v3334_v62, %v3334_v62  ;;  %v3343_v53 = vmul.f32 %v3335_v36, %v3335_v36  ;;  %v3344_v0 = vmul.f32 %v3336_v29, %v3336_v29  ;;  %v3345_v38 = vmul.f32 %v3337_v10, %v3337_v10 }
 0x67d   : > { %v3346_v40 = vmul.f32 %v3338_v15, %v3338_v15  ;;  %v3347_v48 = vmul.f32 %v3339_v39, %v3339_v39  ;;  %v3348_v56 = vmul.f32 %v3340_v54, %v3340_v54  ;;  %v3349_v17 = vmul.f32 %v3341_v42, %v3341_v42 }
 0x67e   : > { %v3350_v14 = vadd.f32 %v3343_v53, %v3342_v22 }
 0x680   : > { %v3351_v41 = vadd.f32 %v3350_v14, %v3344_v0 }
 0x682   : > { %v3352_v44 = vadd.f32 %v3351_v41, %v3345_v38 }
 0x684   : > { %v3353_v63 = vadd.f32 %v3352_v44, %v3346_v40 }
 0x686   : > { %v3354_v24 = vadd.f32 %v3353_v63, %v3347_v48 }
 0x688   : > { %v3355_v18 = vadd.f32 %v3354_v24, %v3348_v56 }
 0x68a   : > { %v3356_v4 = vadd.f32 %v3355_v18, %v3349_v17 }
 0x68c   : > { %3357 = vadd.xlane.f32.xlu0 %v3356_v4 }
 0x715   : > { %v3358_v3 = vpop.xlane.xlu0 %3357 }
 0x716   : > { %v3359_v55 = vmul.f32 0.0009765625, %v3358_v3 }
 0x718   : > { %v3360_v21 = vadd.f32 1e-05, %v3359_v55 }
 0x71a   : > { %3555 = vrsqrt.f32 %v3360_v21 }
 0x727   : > { %v3556_v60 = vpop.eup %3555 }
 0x728   : > { %v3362_v8 = vmul.f32 %v3556_v60, %v3334_v62  ;;  %v3363_v6 = vmul.f32 %v3556_v60, %v3335_v36  ;;  %v3364_v46 = vmul.f32 %v3556_v60, %v3336_v29  ;;  %v3365_v47 = vmul.f32 %v3556_v60, %v3337_v10 }
 0x729   : > { %v3366_v58 = vmul.f32 %v3556_v60, %v3338_v15  ;;  %v3367_v52 = vmul.f32 %v3556_v60, %v3339_v39  ;;  %v3368_v49 = vmul.f32 %v3556_v60, %v3340_v54  ;;  %v3369_v9 = vmul.f32 %v3556_v60, %v3341_v42 }
 0x72a   : > { %v3370_v28 = vmax.f32 %v3362_v8, 0.0  ;;  %v3371_v33 = vmax.f32 %v3363_v6, 0.0  ;;  %v3372_v32 = vmax.f32 %v3364_v46, 0.0  ;;  %v3373_v1 = vmax.f32 %v3365_v47, 0.0 }
 0x72b   : > { %v3374_v34 = vmax.f32 %v3366_v58, 0.0  ;;  %v3375_v43 = vmax.f32 %v3367_v52, 0.0  ;;  %v3376_v30 = vmax.f32 %v3368_v49, 0.0  ;;  %v3377_v26 = vmax.f32 %v3369_v9, 0.0 }
 0x72c   : > { %3378 = vst [vmem:[%s293_s20] sm:$0xff] %v3370_v28  ;;  %3379 = vst [vmem:[%s293_s20 + $0x8] sm:$0xff] %v3371_v33 }
 0x72d   : > { %3380 = vst [vmem:[%s293_s20 + $0x10] sm:$0xff] %v3372_v32  ;;  %3381 = vst [vmem:[%s293_s20 + $0x18] sm:$0xff] %v3373_v1 }
 0x72e   : > { %3382 = vst [vmem:[%s293_s20 + $0x20] sm:$0xff] %v3374_v34  ;;  %3383 = vst [vmem:[%s293_s20 + $0x28] sm:$0xff] %v3375_v43 }
 0x72f   : > { %3384 = vst [vmem:[%s293_s20 + $0x30] sm:$0xff] %v3376_v30  ;;  %3385 = vst [vmem:[%s293_s20 + $0x38] sm:$0xff] %v3377_v26 }
 0x730 PF: > { %s18_s24 = sadd.s32 1, %s3593_s24  }
 0x731   : > { %p15_p1 = scmp.ge.s32.totalorder %s18_s24, 4  }
 0x733   :  { %17 = sbr.rel (!%p15_p1) target bundleno = 1 (0x1), region = 90 }
 0x738   :  { %3407 = vsyncpa [#allocation4], 1 }
 0x739   :  { %3409 = vsyncpa [#allocation4 + $0x1], 1 }

</bundles_post_ra>
